<compile_context>
chip_gen: v6e
topology: v6e:2x2x1
jax: 0.10.0
libtpu: 0.0.40
codegen_flags: <defaults>
</compile_context>

<pallas_src>
import functools
import math

import jax
import jax.numpy as jnp
from jax.experimental import pallas as pl
from jax.experimental.pallas import tpu as pltpu  # noqa: F401  (TPU backend assumed)


# ----------------------------- configuration --------------------------------
D_MODEL = 32
NHEAD = 4
DIM_FF = 64
NUM_LAYERS = 2
NUM_QUERIES = 8     # tgt length  (T)
MEM_LEN = 16        # memory length (S)
BATCH = 2
HEAD_DIM = D_MODEL // NHEAD
LN_EPS = 1e-5


# ------------------------------- kernel -------------------------------------
def decoder_kernel(
    tgtqp_ref, memslab_ref,
    wqkv_s_ref, wdd_ref, whoist_ref, w1_ref, w2_ref, vecd_ref, b1_ref, fln_ref,
    out_ref,
    *, num_layers, batch, t_len, s_len, d_model, nhead,
):
    hd = d_model // nhead
    bt = batch * t_len
    bs = batch * s_len

    tq_slab = tgtqp_ref[...]          # (2*BT, D)  [x ; query_pos]   batch-major rows
    x = tq_slab[:bt]                  # (BT, D)
    qp = tq_slab[bt:]                 # (BT, D)
    mem_slab = memslab_ref[...]       # (2*BS, D)  [memory ; memory + pos]
    mem = mem_slab[:bs]               # (BS, D)
    mem_pos = mem_slab[bs:]           # (BS, D)

    # ---- layer-invariant projections, hoisted out of the layer loop ----
    # k_c / v_c for every layer (cross-attention), and the query_pos correction that
    # recovers the self-attention value projection v = x @ Wv_s from (x+qp) @ Wv_s.
    k_c_all = jnp.dot(mem_pos, whoist_ref[0], preferred_element_type=jnp.float32)   # (BS, L*D)
    v_c_all = jnp.dot(mem, whoist_ref[1], preferred_element_type=jnp.float32)       # (BS, L*D)
    qp_vs_all = jnp.dot(qp, whoist_ref[2], preferred_element_type=jnp.float32)      # (BT, L*D)

    def layer_norm(z, g, b):
        mu = jnp.mean(z, axis=-1, keepdims=True)
        zc = z - mu
        var = jnp.mean(zc * zc, axis=-1, keepdims=True)
        return zc * jax.lax.rsqrt(var + LN_EPS) * g + b

    def split_heads(z, tz):
        # (B*tz, D) -> (B*H, tz, hd)
        zh = jnp.transpose(z.reshape(batch, tz, nhead, hd), (0, 2, 1, 3))
        return zh.reshape(batch * nhead, tz, hd)

    def attention(q, k, v, tq, tk):
        # q: (B*tq, D), k/v: (B*tk, D)  ->  (B*tq, D).  Single head-batched einsum.
        qh = split_heads(q, tq)
        kh = split_heads(k, tk)
        vh = split_heads(v, tk)
        s = jnp.einsum('bqc,bkc->bqk', qh, kh,
                       preferred_element_type=jnp.float32)              # (B*H, tq, tk)
        s = s - jnp.max(s, axis=-1, keepdims=True)
        p = jnp.exp(s)
        p = p * pl.reciprocal(jnp.sum(p, axis=-1, keepdims=True), approx=True)
        o = jnp.einsum('bqk,bkc->bqc', p, vh,
                       preferred_element_type=jnp.float32)               # (B*H, tq, hd)
        o = jnp.transpose(o.reshape(batch, nhead, tq, hd), (0, 2, 1, 3))
        return o.reshape(batch * tq, d_model)

    for l in range(num_layers):
        vec = vecd_ref[l]                                                # (16, D)
        bq_s, bk_s, bv_s, bo_s = vec[0:1], vec[1:2], vec[2:3], vec[3:4]
        bq_c, bk_c, bv_c, bo_c = vec[4:5], vec[5:6], vec[6:7], vec[7:8]
        g1, be1 = vec[8:9], vec[9:10]
        g2, be2 = vec[10:11], vec[11:12]
        g3, be3 = vec[12:13], vec[13:14]
        b2 = vec[14:15]
        b1 = b1_ref[l]                                                   # (1, FF)

        wo_s = wdd_ref[3 * l + 0]
        wq_c = wdd_ref[3 * l + 1]   # pre-scaled by 1/sqrt(hd)
        wo_c = wdd_ref[3 * l + 2]

        lo, hi = l * d_model, (l + 1) * d_model

        # ---- self-attention: q = k = x + query_pos, v = x (fused QKV matmul) ----
        xq = x + qp
        qkv = jnp.dot(xq, wqkv_s_ref[l], preferred_element_type=jnp.float32)  # (BT, 3D)
        q_s = qkv[:, :d_model] + bq_s            # Wq / bq pre-scaled by 1/sqrt(hd)
        k_s = qkv[:, d_model:2 * d_model] + bk_s
        v_s = qkv[:, 2 * d_model:] - qp_vs_all[:, lo:hi] + bv_s   # (x+qp)@Wv - qp@Wv
        a = attention(q_s, k_s, v_s, t_len, t_len)
        a = jnp.dot(a, wo_s, preferred_element_type=jnp.float32) + bo_s
        x = layer_norm(x + a, g1, be1)           # dropout = identity (eval)

        # ---- cross-attention: q = x + query_pos, k = memory + pos, v = memory ----
        # K / V projections hoisted above the layer loop; only sliced + biased here.
        q_c = jnp.dot(x + qp, wq_c, preferred_element_type=jnp.float32) + bq_c
        k_c = k_c_all[:, lo:hi] + bk_c
        v_c = v_c_all[:, lo:hi] + bv_c
        a2 = attention(q_c, k_c, v_c, t_len, s_len)
        a2 = jnp.dot(a2, wo_c, preferred_element_type=jnp.float32) + bo_c
        x = layer_norm(x + a2, g2, be2)

        # ---- feed-forward ----
        h = jnp.dot(x, w1_ref[l], preferred_element_type=jnp.float32) + b1
        h = jnp.maximum(h, 0.0)
        h = jnp.dot(h, w2_ref[l], preferred_element_type=jnp.float32) + b2
        x = layer_norm(x + h, g3, be3)

    # ---- final decoder LayerNorm, store (B*T, D) directly ----
    fln = fln_ref[...]                     # (2, D)
    out_ref[...] = layer_norm(x, fln[0:1], fln[1:2])


# ------------------------- param packing (one-time) --------------------------
def pack_params(params, nhead):
    """One-time host-side transform: fold softmax scale into Wq/bq, fuse self-attn
    [Wq|Wk|Wv], hoist cross-attn Wk/Wv and the query_pos V-correction into (D, L*D)
    slabs, and pack everything else into a handful of contiguous slabs."""
    layers = params["layers"]
    d = layers[0]["wq_s"].shape[0]
    scale = 1.0 / math.sqrt(d // nhead)

    wqkv_s = jnp.stack([jnp.concatenate([lp["wq_s"] * scale, lp["wk_s"], lp["wv_s"]], axis=1)
                        for lp in layers])                              # (L, D, 3D)
    wdd = jnp.stack([m for lp in layers
                     for m in (lp["wo_s"], lp["wq_c"] * scale, lp["wo_c"])])  # (3L, D, D)
    whoist = jnp.stack([
        jnp.concatenate([lp["wk_c"] for lp in layers], axis=1),         # (D, L*D) cross K
        jnp.concatenate([lp["wv_c"] for lp in layers], axis=1),         # (D, L*D) cross V
        jnp.concatenate([lp["wv_s"] for lp in layers], axis=1),         # (D, L*D) self-V corr
    ])                                                                  # (3, D, L*D)
    w1 = jnp.stack([lp["w1"] for lp in layers])                         # (L, D, FF)
    w2 = jnp.stack([lp["w2"] for lp in layers])                         # (L, FF, D)
    zero_d = jnp.zeros((d,), jnp.float32)
    vecd = jnp.stack([jnp.stack([lp["bq_s"] * scale, lp["bk_s"], lp["bv_s"], lp["bo_s"],
                                 lp["bq_c"] * scale, lp["bk_c"], lp["bv_c"], lp["bo_c"],
                                 lp["g1"], lp["be1"], lp["g2"], lp["be2"],
                                 lp["g3"], lp["be3"], lp["b2"], zero_d])
                      for lp in layers])                                # (L, 16, D)
    b1 = jnp.stack([lp["b1"] for lp in layers])[:, None, :]             # (L, 1, FF)
    fln = jnp.stack([params["norm_g"], params["norm_b"]])               # (2, D)
    return {"wqkv_s": wqkv_s, "wdd": wdd, "whoist": whoist, "w1": w1, "w2": w2,
            "vecd": vecd, "b1": b1, "fln": fln}


# ------------------------------- wrapper -------------------------------------
@functools.partial(jax.jit, static_argnames=("nhead",))
def transformer_decoder(tgt, memory, query_pos, pos, packed, *, nhead):
    """tgt/query_pos: (T, B, D); memory/pos: (S, B, D). Returns (1, T, B, D)
    (matches TransformerDecoder.forward with return_intermediate=False + final norm)."""
    t_len, batch, d = tgt.shape
    s_len = memory.shape[0]
    num_layers = packed["w1"].shape[0]

    # Flatten batch into matmul rows (batch-major), fuse pairs into two input slabs.
    tgt2 = jnp.transpose(tgt, (1, 0, 2)).reshape(batch * t_len, d)
    qp2 = jnp.transpose(query_pos, (1, 0, 2)).reshape(batch * t_len, d)
    mem2 = jnp.transpose(memory, (1, 0, 2)).reshape(batch * s_len, d)
    pos2 = jnp.transpose(pos, (1, 0, 2)).reshape(batch * s_len, d)
    tgtqp = jnp.concatenate([tgt2, qp2], axis=0)                # (2*BT, D)
    memslab = jnp.concatenate([mem2, mem2 + pos2], axis=0)      # (2*BS, D)

    kernel = functools.partial(
        decoder_kernel,
        num_layers=num_layers, batch=batch, t_len=t_len, s_len=s_len,
        d_model=d, nhead=nhead,
    )

    def full_spec(a):
        nd = a.ndim
        return pl.BlockSpec(a.shape, lambda: (0,) * nd)

    inputs = (tgtqp, memslab,
              packed["wqkv_s"], packed["wdd"], packed["whoist"],
              packed["w1"], packed["w2"], packed["vecd"], packed["b1"], packed["fln"])

    out2d = pl.pallas_call(
        kernel,
        out_shape=jax.ShapeDtypeStruct((batch * t_len, d), jnp.float32),
        in_specs=[full_spec(a) for a in inputs],
        out_specs=pl.BlockSpec((batch * t_len, d), lambda: (0, 0)),
    )(*inputs)

    out = out2d.reshape(batch, t_len, d)
    out = jnp.transpose(out, (1, 0, 2))            # (T, B, D)
    return out[None]                               # unsqueeze(0)


# ----------------------- pure-JAX reference (for check) ----------------------
def _layer_norm_ref(x, g, b):
    mu = x.mean(-1, keepdims=True)
    var = ((x - mu) ** 2).mean(-1, keepdims=True)
    return (x - mu) / jnp.sqrt(var + LN_EPS) * g + b


def _mha_ref(q_in, k_in, v_in, wq, bq, wk, bk, wv, bv, wo, bo, nhead):
    tq, bsz, d = q_in.shape
    tk = k_in.shape[0]
    hd = d // nhead
    q = q_in @ wq + bq
    k = k_in @ wk + bk
    v = v_in @ wv + bv

    def split(z, tz):
        return jnp.transpose(z.reshape(tz, bsz, nhead, hd), (1, 2, 0, 3))  # (B, H, tz, hd)

    qh = split(q, tq) / jnp.sqrt(jnp.float32(hd))
    kh = split(k, tk)
    vh = split(v, tk)
    s = jnp.einsum("bhqc,bhkc->bhqk", qh, kh)
    p = jax.nn.softmax(s, axis=-1)
    o = jnp.einsum("bhqk,bhkc->bhqc", p, vh)
    o = jnp.transpose(o, (2, 0, 1, 3)).reshape(tq, bsz, d)
    return o @ wo + bo


def transformer_decoder_ref(tgt, memory, query_pos, pos, params, nhead):
    x = tgt
    for lp in params["layers"]:
        q_in = x + query_pos
        t2 = _mha_ref(q_in, q_in, x, lp["wq_s"], lp["bq_s"], lp["wk_s"], lp["bk_s"],
                      lp["wv_s"], lp["bv_s"], lp["wo_s"], lp["bo_s"], nhead)
        x = _layer_norm_ref(x + t2, lp["g1"], lp["be1"])
        t2 = _mha_ref(x + query_pos, memory + pos, memory,
                      lp["wq_c"], lp["bq_c"], lp["wk_c"], lp["bk_c"],
                      lp["wv_c"], lp["bv_c"], lp["wo_c"], lp["bo_c"], nhead)
        x = _layer_norm_ref(x + t2, lp["g2"], lp["be2"])
        h = jnp.maximum(x @ lp["w1"] + lp["b1"], 0.0)
        h = h @ lp["w2"] + lp["b2"]
        x = _layer_norm_ref(x + h, lp["g3"], lp["be3"])
    x = _layer_norm_ref(x, params["norm_g"], params["norm_b"])
    return x[None]


# --------------------------------- main --------------------------------------
if __name__ == "__main__":
    key = jax.random.PRNGKey(0)
    keys = jax.random.split(key, NUM_LAYERS * 20 + 4)
    kit = iter(keys)

    def w(k, shape, scale=0.05):
        return jax.random.normal(k, shape, dtype=jnp.float32) * scale

    # NOTE: weights are stored in x @ W layout (PyTorch nn.Linear would need W.T).
    layers = []
    for _ in range(NUM_LAYERS):
        layers.append({
            "wq_s": w(next(kit), (D_MODEL, D_MODEL)), "bq_s": w(next(kit), (D_MODEL,)),
            "wk_s": w(next(kit), (D_MODEL, D_MODEL)), "bk_s": w(next(kit), (D_MODEL,)),
            "wv_s": w(next(kit), (D_MODEL, D_MODEL)), "bv_s": w(next(kit), (D_MODEL,)),
            "wo_s": w(next(kit), (D_MODEL, D_MODEL)), "bo_s": w(next(kit), (D_MODEL,)),
            "wq_c": w(next(kit), (D_MODEL, D_MODEL)), "bq_c": w(next(kit), (D_MODEL,)),
            "wk_c": w(next(kit), (D_MODEL, D_MODEL)), "bk_c": w(next(kit), (D_MODEL,)),
            "wv_c": w(next(kit), (D_MODEL, D_MODEL)), "bv_c": w(next(kit), (D_MODEL,)),
            "wo_c": w(next(kit), (D_MODEL, D_MODEL)), "bo_c": w(next(kit), (D_MODEL,)),
            "w1": w(next(kit), (D_MODEL, DIM_FF)), "b1": w(next(kit), (DIM_FF,)),
            "w2": w(next(kit), (DIM_FF, D_MODEL)), "b2": w(next(kit), (D_MODEL,)),
            "g1": jnp.ones((D_MODEL,), jnp.float32), "be1": jnp.zeros((D_MODEL,), jnp.float32),
            "g2": jnp.ones((D_MODEL,), jnp.float32), "be2": jnp.zeros((D_MODEL,), jnp.float32),
            "g3": jnp.ones((D_MODEL,), jnp.float32), "be3": jnp.zeros((D_MODEL,), jnp.float32),
        })
    params = {"layers": layers,
              "norm_g": jnp.ones((D_MODEL,), jnp.float32),
              "norm_b": jnp.zeros((D_MODEL,), jnp.float32)}

    tgt = jax.random.normal(next(kit), (NUM_QUERIES, BATCH, D_MODEL), dtype=jnp.float32)
    memory = jax.random.normal(next(kit), (MEM_LEN, BATCH, D_MODEL), dtype=jnp.float32)
    query_pos = jax.random.normal(next(kit), (NUM_QUERIES, BATCH, D_MODEL), dtype=jnp.float32)
    pos = jax.random.normal(next(kit), (MEM_LEN, BATCH, D_MODEL), dtype=jnp.float32)

    packed = pack_params(params, NHEAD)   # one-time parameter transform (not per-call)

    out = transformer_decoder(tgt, memory, query_pos, pos, packed, nhead=NHEAD)
    jax.block_until_ready(out)

    ref = transformer_decoder_ref(tgt, memory, query_pos, pos, params, NHEAD)
    assert out.shape == (1, NUM_QUERIES, BATCH, D_MODEL)
    err = float(jnp.max(jnp.abs(out - ref)))
    assert jnp.allclose(out, ref, atol=5e-3, rtol=5e-3), err

    print("KERNEL_OK")
</pallas_src>

<mosaic_0001>
module attributes {stable_mosaic.version = 11 : i64} {
  func.func @decoder_kernel(%arg0: memref<32x32xf32, #tpu.memory_space<vmem>>, %arg1: memref<64x32xf32, #tpu.memory_space<vmem>>, %arg2: memref<2x32x96xf32, #tpu.memory_space<vmem>>, %arg3: memref<6x32x32xf32, #tpu.memory_space<vmem>>, %arg4: memref<3x32x64xf32, #tpu.memory_space<vmem>>, %arg5: memref<2x32x64xf32, #tpu.memory_space<vmem>>, %arg6: memref<2x64x32xf32, #tpu.memory_space<vmem>>, %arg7: memref<2x16x32xf32, #tpu.memory_space<vmem>>, %arg8: memref<2x1x64xf32, #tpu.memory_space<vmem>>, %arg9: memref<2x32xf32, #tpu.memory_space<vmem>>, %arg10: memref<16x32xf32, #tpu.memory_space<vmem>>) attributes {dimension_semantics = [], scalar_prefetch = 0 : i64, scratch_operands = 0 : i64, tpu.core_type = #tpu.core_type<tc>} {
    %c0 = arith.constant 0 : index
    %c0_0 = arith.constant 0 : index
    %0 = vector.load %arg0[%c0, %c0_0] : memref<32x32xf32, #tpu.memory_space<vmem>>, vector<32x32xf32>
    %1 = vector.extract_strided_slice %0 {offsets = [0, 0], sizes = [16, 32], strides = [1, 1]} : vector<32x32xf32> to vector<16x32xf32>
    %2 = vector.extract_strided_slice %0 {offsets = [16, 0], sizes = [16, 32], strides = [1, 1]} : vector<32x32xf32> to vector<16x32xf32>
    %c0_1 = arith.constant 0 : index
    %c0_2 = arith.constant 0 : index
    %3 = vector.load %arg1[%c0_1, %c0_2] : memref<64x32xf32, #tpu.memory_space<vmem>>, vector<64x32xf32>
    %4 = vector.extract_strided_slice %3 {offsets = [0, 0], sizes = [32, 32], strides = [1, 1]} : vector<64x32xf32> to vector<32x32xf32>
    %5 = vector.extract_strided_slice %3 {offsets = [32, 0], sizes = [32, 32], strides = [1, 1]} : vector<64x32xf32> to vector<32x32xf32>
    %c0_3 = arith.constant 0 : index
    %c0_4 = arith.constant 0 : index
    %c0_5 = arith.constant 0 : index
    %6 = vector.load %arg4[%c0_3, %c0_4, %c0_5] : memref<3x32x64xf32, #tpu.memory_space<vmem>>, vector<1x32x64xf32>
    %7 = vector.shape_cast %6 : vector<1x32x64xf32> to vector<32x64xf32>
    %cst = arith.constant dense<0.000000e+00> : vector<32x64xf32>
    %8 = tpu.matmul %5, %7, %cst {dimension_numbers = #tpu.dot_dimension_numbers<[1], [0], [0], [1], [0, 0, 1, 1], [], []>} : vector<32x32xf32>, vector<32x64xf32>, vector<32x64xf32> -> vector<32x64xf32>
    %c1 = arith.constant 1 : index
    %c0_6 = arith.constant 0 : index
    %c0_7 = arith.constant 0 : index
    %9 = vector.load %arg4[%c1, %c0_6, %c0_7] : memref<3x32x64xf32, #tpu.memory_space<vmem>>, vector<1x32x64xf32>
    %10 = vector.shape_cast %9 : vector<1x32x64xf32> to vector<32x64xf32>
    %cst_8 = arith.constant dense<0.000000e+00> : vector<32x64xf32>
    %11 = tpu.matmul %4, %10, %cst_8 {dimension_numbers = #tpu.dot_dimension_numbers<[1], [0], [0], [1], [0, 0, 1, 1], [], []>} : vector<32x32xf32>, vector<32x64xf32>, vector<32x64xf32> -> vector<32x64xf32>
    %c2 = arith.constant 2 : index
    %c0_9 = arith.constant 0 : index
    %c0_10 = arith.constant 0 : index
    %12 = vector.load %arg4[%c2, %c0_9, %c0_10] : memref<3x32x64xf32, #tpu.memory_space<vmem>>, vector<1x32x64xf32>
    %13 = vector.shape_cast %12 : vector<1x32x64xf32> to vector<32x64xf32>
    %cst_11 = arith.constant dense<0.000000e+00> : vector<16x64xf32>
    %14 = tpu.matmul %2, %13, %cst_11 {dimension_numbers = #tpu.dot_dimension_numbers<[1], [0], [0], [1], [0, 0, 1, 1], [], []>} : vector<16x32xf32>, vector<32x64xf32>, vector<16x64xf32> -> vector<16x64xf32>
    %c0_12 = arith.constant 0 : index
    %c0_13 = arith.constant 0 : index
    %c0_14 = arith.constant 0 : index
    %15 = vector.load %arg7[%c0_12, %c0_13, %c0_14] : memref<2x16x32xf32, #tpu.memory_space<vmem>>, vector<1x16x32xf32>
    %16 = vector.shape_cast %15 : vector<1x16x32xf32> to vector<16x32xf32>
    %17 = vector.extract_strided_slice %16 {offsets = [0, 0], sizes = [1, 32], strides = [1, 1]} : vector<16x32xf32> to vector<1x32xf32>
    %18 = vector.extract_strided_slice %16 {offsets = [1, 0], sizes = [1, 32], strides = [1, 1]} : vector<16x32xf32> to vector<1x32xf32>
    %19 = vector.extract_strided_slice %16 {offsets = [2, 0], sizes = [1, 32], strides = [1, 1]} : vector<16x32xf32> to vector<1x32xf32>
    %20 = vector.extract_strided_slice %16 {offsets = [3, 0], sizes = [1, 32], strides = [1, 1]} : vector<16x32xf32> to vector<1x32xf32>
    %21 = vector.extract_strided_slice %16 {offsets = [4, 0], sizes = [1, 32], strides = [1, 1]} : vector<16x32xf32> to vector<1x32xf32>
    %22 = vector.extract_strided_slice %16 {offsets = [5, 0], sizes = [1, 32], strides = [1, 1]} : vector<16x32xf32> to vector<1x32xf32>
    %23 = vector.extract_strided_slice %16 {offsets = [6, 0], sizes = [1, 32], strides = [1, 1]} : vector<16x32xf32> to vector<1x32xf32>
    %24 = vector.extract_strided_slice %16 {offsets = [7, 0], sizes = [1, 32], strides = [1, 1]} : vector<16x32xf32> to vector<1x32xf32>
    %25 = vector.extract_strided_slice %16 {offsets = [8, 0], sizes = [1, 32], strides = [1, 1]} : vector<16x32xf32> to vector<1x32xf32>
    %26 = vector.extract_strided_slice %16 {offsets = [9, 0], sizes = [1, 32], strides = [1, 1]} : vector<16x32xf32> to vector<1x32xf32>
    %27 = vector.extract_strided_slice %16 {offsets = [10, 0], sizes = [1, 32], strides = [1, 1]} : vector<16x32xf32> to vector<1x32xf32>
    %28 = vector.extract_strided_slice %16 {offsets = [11, 0], sizes = [1, 32], strides = [1, 1]} : vector<16x32xf32> to vector<1x32xf32>
    %29 = vector.extract_strided_slice %16 {offsets = [12, 0], sizes = [1, 32], strides = [1, 1]} : vector<16x32xf32> to vector<1x32xf32>
    %30 = vector.extract_strided_slice %16 {offsets = [13, 0], sizes = [1, 32], strides = [1, 1]} : vector<16x32xf32> to vector<1x32xf32>
    %31 = vector.extract_strided_slice %16 {offsets = [14, 0], sizes = [1, 32], strides = [1, 1]} : vector<16x32xf32> to vector<1x32xf32>
    %c0_15 = arith.constant 0 : index
    %c0_16 = arith.constant 0 : index
    %c0_17 = arith.constant 0 : index
    %32 = vector.load %arg8[%c0_15, %c0_16, %c0_17] : memref<2x1x64xf32, #tpu.memory_space<vmem>>, vector<1x1x64xf32>
    %33 = vector.shape_cast %32 : vector<1x1x64xf32> to vector<1x64xf32>
    %c0_18 = arith.constant 0 : index
    %c0_19 = arith.constant 0 : index
    %c0_20 = arith.constant 0 : index
    %34 = vector.load %arg3[%c0_18, %c0_19, %c0_20] : memref<6x32x32xf32, #tpu.memory_space<vmem>>, vector<1x32x32xf32>
    %35 = vector.shape_cast %34 : vector<1x32x32xf32> to vector<32x32xf32>
    %c1_21 = arith.constant 1 : index
    %c0_22 = arith.constant 0 : index
    %c0_23 = arith.constant 0 : index
    %36 = vector.load %arg3[%c1_21, %c0_22, %c0_23] : memref<6x32x32xf32, #tpu.memory_space<vmem>>, vector<1x32x32xf32>
    %37 = vector.shape_cast %36 : vector<1x32x32xf32> to vector<32x32xf32>
    %c2_24 = arith.constant 2 : index
    %c0_25 = arith.constant 0 : index
    %c0_26 = arith.constant 0 : index
    %38 = vector.load %arg3[%c2_24, %c0_25, %c0_26] : memref<6x32x32xf32, #tpu.memory_space<vmem>>, vector<1x32x32xf32>
    %39 = vector.shape_cast %38 : vector<1x32x32xf32> to vector<32x32xf32>
    %40 = arith.addf %1, %2 : vector<16x32xf32>
    %c0_27 = arith.constant 0 : index
    %c0_28 = arith.constant 0 : index
    %c0_29 = arith.constant 0 : index
    %41 = vector.load %arg2[%c0_27, %c0_28, %c0_29] : memref<2x32x96xf32, #tpu.memory_space<vmem>>, vector<1x32x96xf32>
    %42 = vector.shape_cast %41 : vector<1x32x96xf32> to vector<32x96xf32>
    %cst_30 = arith.constant dense<0.000000e+00> : vector<16x96xf32>
    %43 = tpu.matmul %40, %42, %cst_30 {dimension_numbers = #tpu.dot_dimension_numbers<[1], [0], [0], [1], [0, 0, 1, 1], [], []>} : vector<16x32xf32>, vector<32x96xf32>, vector<16x96xf32> -> vector<16x96xf32>
    %44 = vector.extract_strided_slice %43 {offsets = [0, 0], sizes = [16, 32], strides = [1, 1]} : vector<16x96xf32> to vector<16x32xf32>
    %45 = vector.broadcast %17 : vector<1x32xf32> to vector<16x32xf32>
    %46 = arith.addf %44, %45 : vector<16x32xf32>
    %47 = vector.extract_strided_slice %43 {offsets = [0, 32], sizes = [16, 32], strides = [1, 1]} : vector<16x96xf32> to vector<16x32xf32>
    %48 = vector.broadcast %18 : vector<1x32xf32> to vector<16x32xf32>
    %49 = arith.addf %47, %48 : vector<16x32xf32>
    %50 = vector.extract_strided_slice %43 {offsets = [0, 64], sizes = [16, 32], strides = [1, 1]} : vector<16x96xf32> to vector<16x32xf32>
    %51 = vector.extract_strided_slice %14 {offsets = [0, 0], sizes = [16, 32], strides = [1, 1]} : vector<16x64xf32> to vector<16x32xf32>
    %52 = arith.subf %50, %51 : vector<16x32xf32>
    %53 = vector.broadcast %19 : vector<1x32xf32> to vector<16x32xf32>
    %54 = arith.addf %52, %53 : vector<16x32xf32>
    %55 = vector.shape_cast %46 : vector<16x32xf32> to vector<2x8x4x8xf32>
    %56 = tpu.transpose %55, [0, 2, 1, 3] : vector<2x8x4x8xf32> -> vector<2x4x8x8xf32>
    %57 = vector.shape_cast %56 : vector<2x4x8x8xf32> to vector<8x8x8xf32>
    %58 = vector.shape_cast %49 : vector<16x32xf32> to vector<2x8x4x8xf32>
    %59 = tpu.transpose %58, [0, 2, 1, 3] : vector<2x8x4x8xf32> -> vector<2x4x8x8xf32>
    %60 = vector.shape_cast %59 : vector<2x4x8x8xf32> to vector<8x8x8xf32>
    %61 = vector.shape_cast %54 : vector<16x32xf32> to vector<2x8x4x8xf32>
    %62 = tpu.transpose %61, [0, 2, 1, 3] : vector<2x8x4x8xf32> -> vector<2x4x8x8xf32>
    %63 = vector.shape_cast %62 : vector<2x4x8x8xf32> to vector<8x8x8xf32>
    "tpu.trace_start"() <{level = 10 : i32, message = "bqc,bkc->bqk"}> : () -> ()
    %cst_31 = arith.constant dense<0.000000e+00> : vector<8x8x8xf32>
    %64 = tpu.matmul %57, %60, %cst_31 {dimension_numbers = #tpu.dot_dimension_numbers<[2], [2], [1], [1], [0, 0, 0, 1, 1, 1], [0], [0]>} : vector<8x8x8xf32>, vector<8x8x8xf32>, vector<8x8x8xf32> -> vector<8x8x8xf32>
    "tpu.trace_stop"() : () -> ()
    %cst_32 = arith.constant dense<0xFF800000> : vector<8x8xf32>
    %65 = vector.multi_reduction <maximumf>, %64, %cst_32 [2] : vector<8x8x8xf32> to vector<8x8xf32>
    %66 = vector.shape_cast %65 : vector<8x8xf32> to vector<8x8x1xf32>
    %67 = vector.broadcast %66 : vector<8x8x1xf32> to vector<8x8x8xf32>
    %68 = arith.subf %64, %67 : vector<8x8x8xf32>
    %69 = math.exp %68 : vector<8x8x8xf32>
    %cst_33 = arith.constant dense<0.000000e+00> : vector<8x8xf32>
    %70 = vector.multi_reduction <add>, %69, %cst_33 [2] : vector<8x8x8xf32> to vector<8x8xf32>
    %71 = vector.shape_cast %70 : vector<8x8xf32> to vector<8x8x1xf32>
    %72 = tpu.reciprocal %71 {approx = true} : vector<8x8x1xf32> -> vector<8x8x1xf32>
    %73 = vector.broadcast %72 : vector<8x8x1xf32> to vector<8x8x8xf32>
    %74 = arith.mulf %69, %73 : vector<8x8x8xf32>
    "tpu.trace_start"() <{level = 10 : i32, message = "bqk,bkc->bqc"}> : () -> ()
    %cst_34 = arith.constant dense<0.000000e+00> : vector<8x8x8xf32>
    %75 = tpu.matmul %74, %63, %cst_34 {dimension_numbers = #tpu.dot_dimension_numbers<[2], [1], [1], [2], [0, 0, 0, 1, 1, 2], [0], [0]>} : vector<8x8x8xf32>, vector<8x8x8xf32>, vector<8x8x8xf32> -> vector<8x8x8xf32>
    "tpu.trace_stop"() : () -> ()
    %76 = vector.shape_cast %75 : vector<8x8x8xf32> to vector<2x4x8x8xf32>
    %77 = tpu.transpose %76, [0, 2, 1, 3] : vector<2x4x8x8xf32> -> vector<2x8x4x8xf32>
    %78 = vector.shape_cast %77 : vector<2x8x4x8xf32> to vector<16x32xf32>
    %cst_35 = arith.constant dense<0.000000e+00> : vector<16x32xf32>
    %79 = tpu.matmul %78, %35, %cst_35 {dimension_numbers = #tpu.dot_dimension_numbers<[1], [0], [0], [1], [0, 0, 1, 1], [], []>} : vector<16x32xf32>, vector<32x32xf32>, vector<16x32xf32> -> vector<16x32xf32>
    %80 = vector.broadcast %20 : vector<1x32xf32> to vector<16x32xf32>
    %81 = arith.addf %79, %80 : vector<16x32xf32>
    %82 = arith.addf %1, %81 : vector<16x32xf32>
    %cst_36 = arith.constant dense<0.000000e+00> : vector<16xf32>
    %83 = vector.multi_reduction <add>, %82, %cst_36 [1] : vector<16x32xf32> to vector<16xf32>
    %84 = vector.shape_cast %83 : vector<16xf32> to vector<16x1xf32>
    %cst_37 = arith.constant 3.200000e+01 : f32
    %85 = vector.broadcast %cst_37 : f32 to vector<16x1xf32>
    %86 = arith.divf %84, %85 : vector<16x1xf32>
    %87 = vector.broadcast %86 : vector<16x1xf32> to vector<16x32xf32>
    %88 = arith.subf %82, %87 : vector<16x32xf32>
    %89 = arith.mulf %88, %88 : vector<16x32xf32>
    %cst_38 = arith.constant dense<0.000000e+00> : vector<16xf32>
    %90 = vector.multi_reduction <add>, %89, %cst_38 [1] : vector<16x32xf32> to vector<16xf32>
    %91 = vector.shape_cast %90 : vector<16xf32> to vector<16x1xf32>
    %cst_39 = arith.constant 3.200000e+01 : f32
    %92 = vector.broadcast %cst_39 : f32 to vector<16x1xf32>
    %93 = arith.divf %91, %92 : vector<16x1xf32>
    %cst_40 = arith.constant 9.99999974E-6 : f32
    %94 = vector.broadcast %cst_40 : f32 to vector<16x1xf32>
    %95 = arith.addf %93, %94 : vector<16x1xf32>
    %96 = math.rsqrt %95 : vector<16x1xf32>
    %97 = vector.broadcast %96 : vector<16x1xf32> to vector<16x32xf32>
    %98 = arith.mulf %88, %97 : vector<16x32xf32>
    %99 = vector.broadcast %25 : vector<1x32xf32> to vector<16x32xf32>
    %100 = arith.mulf %98, %99 : vector<16x32xf32>
    %101 = vector.broadcast %26 : vector<1x32xf32> to vector<16x32xf32>
    %102 = arith.addf %100, %101 : vector<16x32xf32>
    %103 = arith.addf %102, %2 : vector<16x32xf32>
    %cst_41 = arith.constant dense<0.000000e+00> : vector<16x32xf32>
    %104 = tpu.matmul %103, %37, %cst_41 {dimension_numbers = #tpu.dot_dimension_numbers<[1], [0], [0], [1], [0, 0, 1, 1], [], []>} : vector<16x32xf32>, vector<32x32xf32>, vector<16x32xf32> -> vector<16x32xf32>
    %105 = vector.broadcast %21 : vector<1x32xf32> to vector<16x32xf32>
    %106 = arith.addf %104, %105 : vector<16x32xf32>
    %107 = vector.extract_strided_slice %8 {offsets = [0, 0], sizes = [32, 32], strides = [1, 1]} : vector<32x64xf32> to vector<32x32xf32>
    %108 = vector.broadcast %22 : vector<1x32xf32> to vector<32x32xf32>
    %109 = arith.addf %107, %108 : vector<32x32xf32>
    %110 = vector.extract_strided_slice %11 {offsets = [0, 0], sizes = [32, 32], strides = [1, 1]} : vector<32x64xf32> to vector<32x32xf32>
    %111 = vector.broadcast %23 : vector<1x32xf32> to vector<32x32xf32>
    %112 = arith.addf %110, %111 : vector<32x32xf32>
    %113 = vector.shape_cast %106 : vector<16x32xf32> to vector<2x8x4x8xf32>
    %114 = tpu.transpose %113, [0, 2, 1, 3] : vector<2x8x4x8xf32> -> vector<2x4x8x8xf32>
    %115 = vector.shape_cast %114 : vector<2x4x8x8xf32> to vector<8x8x8xf32>
    %116 = vector.shape_cast %109 : vector<32x32xf32> to vector<2x16x4x8xf32>
    %117 = tpu.transpose %116, [0, 2, 1, 3] : vector<2x16x4x8xf32> -> vector<2x4x16x8xf32>
    %118 = vector.shape_cast %117 : vector<2x4x16x8xf32> to vector<8x16x8xf32>
    %119 = vector.shape_cast %112 : vector<32x32xf32> to vector<2x16x4x8xf32>
    %120 = tpu.transpose %119, [0, 2, 1, 3] : vector<2x16x4x8xf32> -> vector<2x4x16x8xf32>
    %121 = vector.shape_cast %120 : vector<2x4x16x8xf32> to vector<8x16x8xf32>
    "tpu.trace_start"() <{level = 10 : i32, message = "bqc,bkc->bqk"}> : () -> ()
    %cst_42 = arith.constant dense<0.000000e+00> : vector<8x8x16xf32>
    %122 = tpu.matmul %115, %118, %cst_42 {dimension_numbers = #tpu.dot_dimension_numbers<[2], [2], [1], [1], [0, 0, 0, 1, 1, 1], [0], [0]>} : vector<8x8x8xf32>, vector<8x16x8xf32>, vector<8x8x16xf32> -> vector<8x8x16xf32>
    "tpu.trace_stop"() : () -> ()
    %cst_43 = arith.constant dense<0xFF800000> : vector<8x8xf32>
    %123 = vector.multi_reduction <maximumf>, %122, %cst_43 [2] : vector<8x8x16xf32> to vector<8x8xf32>
    %124 = vector.shape_cast %123 : vector<8x8xf32> to vector<8x8x1xf32>
    %125 = vector.broadcast %124 : vector<8x8x1xf32> to vector<8x8x16xf32>
    %126 = arith.subf %122, %125 : vector<8x8x16xf32>
    %127 = math.exp %126 : vector<8x8x16xf32>
    %cst_44 = arith.constant dense<0.000000e+00> : vector<8x8xf32>
    %128 = vector.multi_reduction <add>, %127, %cst_44 [2] : vector<8x8x16xf32> to vector<8x8xf32>
    %129 = vector.shape_cast %128 : vector<8x8xf32> to vector<8x8x1xf32>
    %130 = tpu.reciprocal %129 {approx = true} : vector<8x8x1xf32> -> vector<8x8x1xf32>
    %131 = vector.broadcast %130 : vector<8x8x1xf32> to vector<8x8x16xf32>
    %132 = arith.mulf %127, %131 : vector<8x8x16xf32>
    "tpu.trace_start"() <{level = 10 : i32, message = "bqk,bkc->bqc"}> : () -> ()
    %cst_45 = arith.constant dense<0.000000e+00> : vector<8x8x8xf32>
    %133 = tpu.matmul %132, %121, %cst_45 {dimension_numbers = #tpu.dot_dimension_numbers<[2], [1], [1], [2], [0, 0, 0, 1, 1, 2], [0], [0]>} : vector<8x8x16xf32>, vector<8x16x8xf32>, vector<8x8x8xf32> -> vector<8x8x8xf32>
    "tpu.trace_stop"() : () -> ()
    %134 = vector.shape_cast %133 : vector<8x8x8xf32> to vector<2x4x8x8xf32>
    %135 = tpu.transpose %134, [0, 2, 1, 3] : vector<2x4x8x8xf32> -> vector<2x8x4x8xf32>
    %136 = vector.shape_cast %135 : vector<2x8x4x8xf32> to vector<16x32xf32>
    %cst_46 = arith.constant dense<0.000000e+00> : vector<16x32xf32>
    %137 = tpu.matmul %136, %39, %cst_46 {dimension_numbers = #tpu.dot_dimension_numbers<[1], [0], [0], [1], [0, 0, 1, 1], [], []>} : vector<16x32xf32>, vector<32x32xf32>, vector<16x32xf32> -> vector<16x32xf32>
    %138 = vector.broadcast %24 : vector<1x32xf32> to vector<16x32xf32>
    %139 = arith.addf %137, %138 : vector<16x32xf32>
    %140 = arith.addf %102, %139 : vector<16x32xf32>
    %cst_47 = arith.constant dense<0.000000e+00> : vector<16xf32>
    %141 = vector.multi_reduction <add>, %140, %cst_47 [1] : vector<16x32xf32> to vector<16xf32>
    %142 = vector.shape_cast %141 : vector<16xf32> to vector<16x1xf32>
    %cst_48 = arith.constant 3.200000e+01 : f32
    %143 = vector.broadcast %cst_48 : f32 to vector<16x1xf32>
    %144 = arith.divf %142, %143 : vector<16x1xf32>
    %145 = vector.broadcast %144 : vector<16x1xf32> to vector<16x32xf32>
    %146 = arith.subf %140, %145 : vector<16x32xf32>
    %147 = arith.mulf %146, %146 : vector<16x32xf32>
    %cst_49 = arith.constant dense<0.000000e+00> : vector<16xf32>
    %148 = vector.multi_reduction <add>, %147, %cst_49 [1] : vector<16x32xf32> to vector<16xf32>
    %149 = vector.shape_cast %148 : vector<16xf32> to vector<16x1xf32>
    %cst_50 = arith.constant 3.200000e+01 : f32
    %150 = vector.broadcast %cst_50 : f32 to vector<16x1xf32>
    %151 = arith.divf %149, %150 : vector<16x1xf32>
    %cst_51 = arith.constant 9.99999974E-6 : f32
    %152 = vector.broadcast %cst_51 : f32 to vector<16x1xf32>
    %153 = arith.addf %151, %152 : vector<16x1xf32>
    %154 = math.rsqrt %153 : vector<16x1xf32>
    %155 = vector.broadcast %154 : vector<16x1xf32> to vector<16x32xf32>
    %156 = arith.mulf %146, %155 : vector<16x32xf32>
    %157 = vector.broadcast %27 : vector<1x32xf32> to vector<16x32xf32>
    %158 = arith.mulf %156, %157 : vector<16x32xf32>
    %159 = vector.broadcast %28 : vector<1x32xf32> to vector<16x32xf32>
    %160 = arith.addf %158, %159 : vector<16x32xf32>
    %c0_52 = arith.constant 0 : index
    %c0_53 = arith.constant 0 : index
    %c0_54 = arith.constant 0 : index
    %161 = vector.load %arg5[%c0_52, %c0_53, %c0_54] : memref<2x32x64xf32, #tpu.memory_space<vmem>>, vector<1x32x64xf32>
    %162 = vector.shape_cast %161 : vector<1x32x64xf32> to vector<32x64xf32>
    %cst_55 = arith.constant dense<0.000000e+00> : vector<16x64xf32>
    %163 = tpu.matmul %160, %162, %cst_55 {dimension_numbers = #tpu.dot_dimension_numbers<[1], [0], [0], [1], [0, 0, 1, 1], [], []>} : vector<16x32xf32>, vector<32x64xf32>, vector<16x64xf32> -> vector<16x64xf32>
    %164 = vector.broadcast %33 : vector<1x64xf32> to vector<16x64xf32>
    %165 = arith.addf %163, %164 : vector<16x64xf32>
    %cst_56 = arith.constant 0.000000e+00 : f32
    %166 = vector.broadcast %cst_56 : f32 to vector<16x64xf32>
    %167 = arith.maximumf %165, %166 : vector<16x64xf32>
    %c0_57 = arith.constant 0 : index
    %c0_58 = arith.constant 0 : index
    %c0_59 = arith.constant 0 : index
    %168 = vector.load %arg6[%c0_57, %c0_58, %c0_59] : memref<2x64x32xf32, #tpu.memory_space<vmem>>, vector<1x64x32xf32>
    %169 = vector.shape_cast %168 : vector<1x64x32xf32> to vector<64x32xf32>
    %cst_60 = arith.constant dense<0.000000e+00> : vector<16x32xf32>
    %170 = tpu.matmul %167, %169, %cst_60 {dimension_numbers = #tpu.dot_dimension_numbers<[1], [0], [0], [1], [0, 0, 1, 1], [], []>} : vector<16x64xf32>, vector<64x32xf32>, vector<16x32xf32> -> vector<16x32xf32>
    %171 = vector.broadcast %31 : vector<1x32xf32> to vector<16x32xf32>
    %172 = arith.addf %170, %171 : vector<16x32xf32>
    %173 = arith.addf %160, %172 : vector<16x32xf32>
    %cst_61 = arith.constant dense<0.000000e+00> : vector<16xf32>
    %174 = vector.multi_reduction <add>, %173, %cst_61 [1] : vector<16x32xf32> to vector<16xf32>
    %175 = vector.shape_cast %174 : vector<16xf32> to vector<16x1xf32>
    %cst_62 = arith.constant 3.200000e+01 : f32
    %176 = vector.broadcast %cst_62 : f32 to vector<16x1xf32>
    %177 = arith.divf %175, %176 : vector<16x1xf32>
    %178 = vector.broadcast %177 : vector<16x1xf32> to vector<16x32xf32>
    %179 = arith.subf %173, %178 : vector<16x32xf32>
    %180 = arith.mulf %179, %179 : vector<16x32xf32>
    %cst_63 = arith.constant dense<0.000000e+00> : vector<16xf32>
    %181 = vector.multi_reduction <add>, %180, %cst_63 [1] : vector<16x32xf32> to vector<16xf32>
    %182 = vector.shape_cast %181 : vector<16xf32> to vector<16x1xf32>
    %cst_64 = arith.constant 3.200000e+01 : f32
    %183 = vector.broadcast %cst_64 : f32 to vector<16x1xf32>
    %184 = arith.divf %182, %183 : vector<16x1xf32>
    %cst_65 = arith.constant 9.99999974E-6 : f32
    %185 = vector.broadcast %cst_65 : f32 to vector<16x1xf32>
    %186 = arith.addf %184, %185 : vector<16x1xf32>
    %187 = math.rsqrt %186 : vector<16x1xf32>
    %188 = vector.broadcast %187 : vector<16x1xf32> to vector<16x32xf32>
    %189 = arith.mulf %179, %188 : vector<16x32xf32>
    %190 = vector.broadcast %29 : vector<1x32xf32> to vector<16x32xf32>
    %191 = arith.mulf %189, %190 : vector<16x32xf32>
    %192 = vector.broadcast %30 : vector<1x32xf32> to vector<16x32xf32>
    %193 = arith.addf %191, %192 : vector<16x32xf32>
    %c1_66 = arith.constant 1 : index
    %c0_67 = arith.constant 0 : index
    %c0_68 = arith.constant 0 : index
    %194 = vector.load %arg7[%c1_66, %c0_67, %c0_68] : memref<2x16x32xf32, #tpu.memory_space<vmem>>, vector<1x16x32xf32>
    %195 = vector.shape_cast %194 : vector<1x16x32xf32> to vector<16x32xf32>
    %196 = vector.extract_strided_slice %195 {offsets = [0, 0], sizes = [1, 32], strides = [1, 1]} : vector<16x32xf32> to vector<1x32xf32>
    %197 = vector.extract_strided_slice %195 {offsets = [1, 0], sizes = [1, 32], strides = [1, 1]} : vector<16x32xf32> to vector<1x32xf32>
    %198 = vector.extract_strided_slice %195 {offsets = [2, 0], sizes = [1, 32], strides = [1, 1]} : vector<16x32xf32> to vector<1x32xf32>
    %199 = vector.extract_strided_slice %195 {offsets = [3, 0], sizes = [1, 32], strides = [1, 1]} : vector<16x32xf32> to vector<1x32xf32>
    %200 = vector.extract_strided_slice %195 {offsets = [4, 0], sizes = [1, 32], strides = [1, 1]} : vector<16x32xf32> to vector<1x32xf32>
    %201 = vector.extract_strided_slice %195 {offsets = [5, 0], sizes = [1, 32], strides = [1, 1]} : vector<16x32xf32> to vector<1x32xf32>
    %202 = vector.extract_strided_slice %195 {offsets = [6, 0], sizes = [1, 32], strides = [1, 1]} : vector<16x32xf32> to vector<1x32xf32>
    %203 = vector.extract_strided_slice %195 {offsets = [7, 0], sizes = [1, 32], strides = [1, 1]} : vector<16x32xf32> to vector<1x32xf32>
    %204 = vector.extract_strided_slice %195 {offsets = [8, 0], sizes = [1, 32], strides = [1, 1]} : vector<16x32xf32> to vector<1x32xf32>
    %205 = vector.extract_strided_slice %195 {offsets = [9, 0], sizes = [1, 32], strides = [1, 1]} : vector<16x32xf32> to vector<1x32xf32>
    %206 = vector.extract_strided_slice %195 {offsets = [10, 0], sizes = [1, 32], strides = [1, 1]} : vector<16x32xf32> to vector<1x32xf32>
    %207 = vector.extract_strided_slice %195 {offsets = [11, 0], sizes = [1, 32], strides = [1, 1]} : vector<16x32xf32> to vector<1x32xf32>
    %208 = vector.extract_strided_slice %195 {offsets = [12, 0], sizes = [1, 32], strides = [1, 1]} : vector<16x32xf32> to vector<1x32xf32>
    %209 = vector.extract_strided_slice %195 {offsets = [13, 0], sizes = [1, 32], strides = [1, 1]} : vector<16x32xf32> to vector<1x32xf32>
    %210 = vector.extract_strided_slice %195 {offsets = [14, 0], sizes = [1, 32], strides = [1, 1]} : vector<16x32xf32> to vector<1x32xf32>
    %c1_69 = arith.constant 1 : index
    %c0_70 = arith.constant 0 : index
    %c0_71 = arith.constant 0 : index
    %211 = vector.load %arg8[%c1_69, %c0_70, %c0_71] : memref<2x1x64xf32, #tpu.memory_space<vmem>>, vector<1x1x64xf32>
    %212 = vector.shape_cast %211 : vector<1x1x64xf32> to vector<1x64xf32>
    %c3 = arith.constant 3 : index
    %c0_72 = arith.constant 0 : index
    %c0_73 = arith.constant 0 : index
    %213 = vector.load %arg3[%c3, %c0_72, %c0_73] : memref<6x32x32xf32, #tpu.memory_space<vmem>>, vector<1x32x32xf32>
    %214 = vector.shape_cast %213 : vector<1x32x32xf32> to vector<32x32xf32>
    %c4 = arith.constant 4 : index
    %c0_74 = arith.constant 0 : index
    %c0_75 = arith.constant 0 : index
    %215 = vector.load %arg3[%c4, %c0_74, %c0_75] : memref<6x32x32xf32, #tpu.memory_space<vmem>>, vector<1x32x32xf32>
    %216 = vector.shape_cast %215 : vector<1x32x32xf32> to vector<32x32xf32>
    %c5 = arith.constant 5 : index
    %c0_76 = arith.constant 0 : index
    %c0_77 = arith.constant 0 : index
    %217 = vector.load %arg3[%c5, %c0_76, %c0_77] : memref<6x32x32xf32, #tpu.memory_space<vmem>>, vector<1x32x32xf32>
    %218 = vector.shape_cast %217 : vector<1x32x32xf32> to vector<32x32xf32>
    %219 = arith.addf %193, %2 : vector<16x32xf32>
    %c1_78 = arith.constant 1 : index
    %c0_79 = arith.constant 0 : index
    %c0_80 = arith.constant 0 : index
    %220 = vector.load %arg2[%c1_78, %c0_79, %c0_80] : memref<2x32x96xf32, #tpu.memory_space<vmem>>, vector<1x32x96xf32>
    %221 = vector.shape_cast %220 : vector<1x32x96xf32> to vector<32x96xf32>
    %cst_81 = arith.constant dense<0.000000e+00> : vector<16x96xf32>
    %222 = tpu.matmul %219, %221, %cst_81 {dimension_numbers = #tpu.dot_dimension_numbers<[1], [0], [0], [1], [0, 0, 1, 1], [], []>} : vector<16x32xf32>, vector<32x96xf32>, vector<16x96xf32> -> vector<16x96xf32>
    %223 = vector.extract_strided_slice %222 {offsets = [0, 0], sizes = [16, 32], strides = [1, 1]} : vector<16x96xf32> to vector<16x32xf32>
    %224 = vector.broadcast %196 : vector<1x32xf32> to vector<16x32xf32>
    %225 = arith.addf %223, %224 : vector<16x32xf32>
    %226 = vector.extract_strided_slice %222 {offsets = [0, 32], sizes = [16, 32], strides = [1, 1]} : vector<16x96xf32> to vector<16x32xf32>
    %227 = vector.broadcast %197 : vector<1x32xf32> to vector<16x32xf32>
    %228 = arith.addf %226, %227 : vector<16x32xf32>
    %229 = vector.extract_strided_slice %222 {offsets = [0, 64], sizes = [16, 32], strides = [1, 1]} : vector<16x96xf32> to vector<16x32xf32>
    %230 = vector.extract_strided_slice %14 {offsets = [0, 32], sizes = [16, 32], strides = [1, 1]} : vector<16x64xf32> to vector<16x32xf32>
    %231 = arith.subf %229, %230 : vector<16x32xf32>
    %232 = vector.broadcast %198 : vector<1x32xf32> to vector<16x32xf32>
    %233 = arith.addf %231, %232 : vector<16x32xf32>
    %234 = vector.shape_cast %225 : vector<16x32xf32> to vector<2x8x4x8xf32>
    %235 = tpu.transpose %234, [0, 2, 1, 3] : vector<2x8x4x8xf32> -> vector<2x4x8x8xf32>
    %236 = vector.shape_cast %235 : vector<2x4x8x8xf32> to vector<8x8x8xf32>
    %237 = vector.shape_cast %228 : vector<16x32xf32> to vector<2x8x4x8xf32>
    %238 = tpu.transpose %237, [0, 2, 1, 3] : vector<2x8x4x8xf32> -> vector<2x4x8x8xf32>
    %239 = vector.shape_cast %238 : vector<2x4x8x8xf32> to vector<8x8x8xf32>
    %240 = vector.shape_cast %233 : vector<16x32xf32> to vector<2x8x4x8xf32>
    %241 = tpu.transpose %240, [0, 2, 1, 3] : vector<2x8x4x8xf32> -> vector<2x4x8x8xf32>
    %242 = vector.shape_cast %241 : vector<2x4x8x8xf32> to vector<8x8x8xf32>
    "tpu.trace_start"() <{level = 10 : i32, message = "bqc,bkc->bqk"}> : () -> ()
    %cst_82 = arith.constant dense<0.000000e+00> : vector<8x8x8xf32>
    %243 = tpu.matmul %236, %239, %cst_82 {dimension_numbers = #tpu.dot_dimension_numbers<[2], [2], [1], [1], [0, 0, 0, 1, 1, 1], [0], [0]>} : vector<8x8x8xf32>, vector<8x8x8xf32>, vector<8x8x8xf32> -> vector<8x8x8xf32>
    "tpu.trace_stop"() : () -> ()
    %cst_83 = arith.constant dense<0xFF800000> : vector<8x8xf32>
    %244 = vector.multi_reduction <maximumf>, %243, %cst_83 [2] : vector<8x8x8xf32> to vector<8x8xf32>
    %245 = vector.shape_cast %244 : vector<8x8xf32> to vector<8x8x1xf32>
    %246 = vector.broadcast %245 : vector<8x8x1xf32> to vector<8x8x8xf32>
    %247 = arith.subf %243, %246 : vector<8x8x8xf32>
    %248 = math.exp %247 : vector<8x8x8xf32>
    %cst_84 = arith.constant dense<0.000000e+00> : vector<8x8xf32>
    %249 = vector.multi_reduction <add>, %248, %cst_84 [2] : vector<8x8x8xf32> to vector<8x8xf32>
    %250 = vector.shape_cast %249 : vector<8x8xf32> to vector<8x8x1xf32>
    %251 = tpu.reciprocal %250 {approx = true} : vector<8x8x1xf32> -> vector<8x8x1xf32>
    %252 = vector.broadcast %251 : vector<8x8x1xf32> to vector<8x8x8xf32>
    %253 = arith.mulf %248, %252 : vector<8x8x8xf32>
    "tpu.trace_start"() <{level = 10 : i32, message = "bqk,bkc->bqc"}> : () -> ()
    %cst_85 = arith.constant dense<0.000000e+00> : vector<8x8x8xf32>
    %254 = tpu.matmul %253, %242, %cst_85 {dimension_numbers = #tpu.dot_dimension_numbers<[2], [1], [1], [2], [0, 0, 0, 1, 1, 2], [0], [0]>} : vector<8x8x8xf32>, vector<8x8x8xf32>, vector<8x8x8xf32> -> vector<8x8x8xf32>
    "tpu.trace_stop"() : () -> ()
    %255 = vector.shape_cast %254 : vector<8x8x8xf32> to vector<2x4x8x8xf32>
    %256 = tpu.transpose %255, [0, 2, 1, 3] : vector<2x4x8x8xf32> -> vector<2x8x4x8xf32>
    %257 = vector.shape_cast %256 : vector<2x8x4x8xf32> to vector<16x32xf32>
    %cst_86 = arith.constant dense<0.000000e+00> : vector<16x32xf32>
    %258 = tpu.matmul %257, %214, %cst_86 {dimension_numbers = #tpu.dot_dimension_numbers<[1], [0], [0], [1], [0, 0, 1, 1], [], []>} : vector<16x32xf32>, vector<32x32xf32>, vector<16x32xf32> -> vector<16x32xf32>
    %259 = vector.broadcast %199 : vector<1x32xf32> to vector<16x32xf32>
    %260 = arith.addf %258, %259 : vector<16x32xf32>
    %261 = arith.addf %193, %260 : vector<16x32xf32>
    %cst_87 = arith.constant dense<0.000000e+00> : vector<16xf32>
    %262 = vector.multi_reduction <add>, %261, %cst_87 [1] : vector<16x32xf32> to vector<16xf32>
    %263 = vector.shape_cast %262 : vector<16xf32> to vector<16x1xf32>
    %cst_88 = arith.constant 3.200000e+01 : f32
    %264 = vector.broadcast %cst_88 : f32 to vector<16x1xf32>
    %265 = arith.divf %263, %264 : vector<16x1xf32>
    %266 = vector.broadcast %265 : vector<16x1xf32> to vector<16x32xf32>
    %267 = arith.subf %261, %266 : vector<16x32xf32>
    %268 = arith.mulf %267, %267 : vector<16x32xf32>
    %cst_89 = arith.constant dense<0.000000e+00> : vector<16xf32>
    %269 = vector.multi_reduction <add>, %268, %cst_89 [1] : vector<16x32xf32> to vector<16xf32>
    %270 = vector.shape_cast %269 : vector<16xf32> to vector<16x1xf32>
    %cst_90 = arith.constant 3.200000e+01 : f32
    %271 = vector.broadcast %cst_90 : f32 to vector<16x1xf32>
    %272 = arith.divf %270, %271 : vector<16x1xf32>
    %cst_91 = arith.constant 9.99999974E-6 : f32
    %273 = vector.broadcast %cst_91 : f32 to vector<16x1xf32>
    %274 = arith.addf %272, %273 : vector<16x1xf32>
    %275 = math.rsqrt %274 : vector<16x1xf32>
    %276 = vector.broadcast %275 : vector<16x1xf32> to vector<16x32xf32>
    %277 = arith.mulf %267, %276 : vector<16x32xf32>
    %278 = vector.broadcast %204 : vector<1x32xf32> to vector<16x32xf32>
    %279 = arith.mulf %277, %278 : vector<16x32xf32>
    %280 = vector.broadcast %205 : vector<1x32xf32> to vector<16x32xf32>
    %281 = arith.addf %279, %280 : vector<16x32xf32>
    %282 = arith.addf %281, %2 : vector<16x32xf32>
    %cst_92 = arith.constant dense<0.000000e+00> : vector<16x32xf32>
    %283 = tpu.matmul %282, %216, %cst_92 {dimension_numbers = #tpu.dot_dimension_numbers<[1], [0], [0], [1], [0, 0, 1, 1], [], []>} : vector<16x32xf32>, vector<32x32xf32>, vector<16x32xf32> -> vector<16x32xf32>
    %284 = vector.broadcast %200 : vector<1x32xf32> to vector<16x32xf32>
    %285 = arith.addf %283, %284 : vector<16x32xf32>
    %286 = vector.extract_strided_slice %8 {offsets = [0, 32], sizes = [32, 32], strides = [1, 1]} : vector<32x64xf32> to vector<32x32xf32>
    %287 = vector.broadcast %201 : vector<1x32xf32> to vector<32x32xf32>
    %288 = arith.addf %286, %287 : vector<32x32xf32>
    %289 = vector.extract_strided_slice %11 {offsets = [0, 32], sizes = [32, 32], strides = [1, 1]} : vector<32x64xf32> to vector<32x32xf32>
    %290 = vector.broadcast %202 : vector<1x32xf32> to vector<32x32xf32>
    %291 = arith.addf %289, %290 : vector<32x32xf32>
    %292 = vector.shape_cast %285 : vector<16x32xf32> to vector<2x8x4x8xf32>
    %293 = tpu.transpose %292, [0, 2, 1, 3] : vector<2x8x4x8xf32> -> vector<2x4x8x8xf32>
    %294 = vector.shape_cast %293 : vector<2x4x8x8xf32> to vector<8x8x8xf32>
    %295 = vector.shape_cast %288 : vector<32x32xf32> to vector<2x16x4x8xf32>
    %296 = tpu.transpose %295, [0, 2, 1, 3] : vector<2x16x4x8xf32> -> vector<2x4x16x8xf32>
    %297 = vector.shape_cast %296 : vector<2x4x16x8xf32> to vector<8x16x8xf32>
    %298 = vector.shape_cast %291 : vector<32x32xf32> to vector<2x16x4x8xf32>
    %299 = tpu.transpose %298, [0, 2, 1, 3] : vector<2x16x4x8xf32> -> vector<2x4x16x8xf32>
    %300 = vector.shape_cast %299 : vector<2x4x16x8xf32> to vector<8x16x8xf32>
    "tpu.trace_start"() <{level = 10 : i32, message = "bqc,bkc->bqk"}> : () -> ()
    %cst_93 = arith.constant dense<0.000000e+00> : vector<8x8x16xf32>
    %301 = tpu.matmul %294, %297, %cst_93 {dimension_numbers = #tpu.dot_dimension_numbers<[2], [2], [1], [1], [0, 0, 0, 1, 1, 1], [0], [0]>} : vector<8x8x8xf32>, vector<8x16x8xf32>, vector<8x8x16xf32> -> vector<8x8x16xf32>
    "tpu.trace_stop"() : () -> ()
    %cst_94 = arith.constant dense<0xFF800000> : vector<8x8xf32>
    %302 = vector.multi_reduction <maximumf>, %301, %cst_94 [2] : vector<8x8x16xf32> to vector<8x8xf32>
    %303 = vector.shape_cast %302 : vector<8x8xf32> to vector<8x8x1xf32>
    %304 = vector.broadcast %303 : vector<8x8x1xf32> to vector<8x8x16xf32>
    %305 = arith.subf %301, %304 : vector<8x8x16xf32>
    %306 = math.exp %305 : vector<8x8x16xf32>
    %cst_95 = arith.constant dense<0.000000e+00> : vector<8x8xf32>
    %307 = vector.multi_reduction <add>, %306, %cst_95 [2] : vector<8x8x16xf32> to vector<8x8xf32>
    %308 = vector.shape_cast %307 : vector<8x8xf32> to vector<8x8x1xf32>
    %309 = tpu.reciprocal %308 {approx = true} : vector<8x8x1xf32> -> vector<8x8x1xf32>
    %310 = vector.broadcast %309 : vector<8x8x1xf32> to vector<8x8x16xf32>
    %311 = arith.mulf %306, %310 : vector<8x8x16xf32>
    "tpu.trace_start"() <{level = 10 : i32, message = "bqk,bkc->bqc"}> : () -> ()
    %cst_96 = arith.constant dense<0.000000e+00> : vector<8x8x8xf32>
    %312 = tpu.matmul %311, %300, %cst_96 {dimension_numbers = #tpu.dot_dimension_numbers<[2], [1], [1], [2], [0, 0, 0, 1, 1, 2], [0], [0]>} : vector<8x8x16xf32>, vector<8x16x8xf32>, vector<8x8x8xf32> -> vector<8x8x8xf32>
    "tpu.trace_stop"() : () -> ()
    %313 = vector.shape_cast %312 : vector<8x8x8xf32> to vector<2x4x8x8xf32>
    %314 = tpu.transpose %313, [0, 2, 1, 3] : vector<2x4x8x8xf32> -> vector<2x8x4x8xf32>
    %315 = vector.shape_cast %314 : vector<2x8x4x8xf32> to vector<16x32xf32>
    %cst_97 = arith.constant dense<0.000000e+00> : vector<16x32xf32>
    %316 = tpu.matmul %315, %218, %cst_97 {dimension_numbers = #tpu.dot_dimension_numbers<[1], [0], [0], [1], [0, 0, 1, 1], [], []>} : vector<16x32xf32>, vector<32x32xf32>, vector<16x32xf32> -> vector<16x32xf32>
    %317 = vector.broadcast %203 : vector<1x32xf32> to vector<16x32xf32>
    %318 = arith.addf %316, %317 : vector<16x32xf32>
    %319 = arith.addf %281, %318 : vector<16x32xf32>
    %cst_98 = arith.constant dense<0.000000e+00> : vector<16xf32>
    %320 = vector.multi_reduction <add>, %319, %cst_98 [1] : vector<16x32xf32> to vector<16xf32>
    %321 = vector.shape_cast %320 : vector<16xf32> to vector<16x1xf32>
    %cst_99 = arith.constant 3.200000e+01 : f32
    %322 = vector.broadcast %cst_99 : f32 to vector<16x1xf32>
    %323 = arith.divf %321, %322 : vector<16x1xf32>
    %324 = vector.broadcast %323 : vector<16x1xf32> to vector<16x32xf32>
    %325 = arith.subf %319, %324 : vector<16x32xf32>
    %326 = arith.mulf %325, %325 : vector<16x32xf32>
    %cst_100 = arith.constant dense<0.000000e+00> : vector<16xf32>
    %327 = vector.multi_reduction <add>, %326, %cst_100 [1] : vector<16x32xf32> to vector<16xf32>
    %328 = vector.shape_cast %327 : vector<16xf32> to vector<16x1xf32>
    %cst_101 = arith.constant 3.200000e+01 : f32
    %329 = vector.broadcast %cst_101 : f32 to vector<16x1xf32>
    %330 = arith.divf %328, %329 : vector<16x1xf32>
    %cst_102 = arith.constant 9.99999974E-6 : f32
    %331 = vector.broadcast %cst_102 : f32 to vector<16x1xf32>
    %332 = arith.addf %330, %331 : vector<16x1xf32>
    %333 = math.rsqrt %332 : vector<16x1xf32>
    %334 = vector.broadcast %333 : vector<16x1xf32> to vector<16x32xf32>
    %335 = arith.mulf %325, %334 : vector<16x32xf32>
    %336 = vector.broadcast %206 : vector<1x32xf32> to vector<16x32xf32>
    %337 = arith.mulf %335, %336 : vector<16x32xf32>
    %338 = vector.broadcast %207 : vector<1x32xf32> to vector<16x32xf32>
    %339 = arith.addf %337, %338 : vector<16x32xf32>
    %c1_103 = arith.constant 1 : index
    %c0_104 = arith.constant 0 : index
    %c0_105 = arith.constant 0 : index
    %340 = vector.load %arg5[%c1_103, %c0_104, %c0_105] : memref<2x32x64xf32, #tpu.memory_space<vmem>>, vector<1x32x64xf32>
    %341 = vector.shape_cast %340 : vector<1x32x64xf32> to vector<32x64xf32>
    %cst_106 = arith.constant dense<0.000000e+00> : vector<16x64xf32>
    %342 = tpu.matmul %339, %341, %cst_106 {dimension_numbers = #tpu.dot_dimension_numbers<[1], [0], [0], [1], [0, 0, 1, 1], [], []>} : vector<16x32xf32>, vector<32x64xf32>, vector<16x64xf32> -> vector<16x64xf32>
    %343 = vector.broadcast %212 : vector<1x64xf32> to vector<16x64xf32>
    %344 = arith.addf %342, %343 : vector<16x64xf32>
    %cst_107 = arith.constant 0.000000e+00 : f32
    %345 = vector.broadcast %cst_107 : f32 to vector<16x64xf32>
    %346 = arith.maximumf %344, %345 : vector<16x64xf32>
    %c1_108 = arith.constant 1 : index
    %c0_109 = arith.constant 0 : index
    %c0_110 = arith.constant 0 : index
    %347 = vector.load %arg6[%c1_108, %c0_109, %c0_110] : memref<2x64x32xf32, #tpu.memory_space<vmem>>, vector<1x64x32xf32>
    %348 = vector.shape_cast %347 : vector<1x64x32xf32> to vector<64x32xf32>
    %cst_111 = arith.constant dense<0.000000e+00> : vector<16x32xf32>
    %349 = tpu.matmul %346, %348, %cst_111 {dimension_numbers = #tpu.dot_dimension_numbers<[1], [0], [0], [1], [0, 0, 1, 1], [], []>} : vector<16x64xf32>, vector<64x32xf32>, vector<16x32xf32> -> vector<16x32xf32>
    %350 = vector.broadcast %210 : vector<1x32xf32> to vector<16x32xf32>
    %351 = arith.addf %349, %350 : vector<16x32xf32>
    %352 = arith.addf %339, %351 : vector<16x32xf32>
    %cst_112 = arith.constant dense<0.000000e+00> : vector<16xf32>
    %353 = vector.multi_reduction <add>, %352, %cst_112 [1] : vector<16x32xf32> to vector<16xf32>
    %354 = vector.shape_cast %353 : vector<16xf32> to vector<16x1xf32>
    %cst_113 = arith.constant 3.200000e+01 : f32
    %355 = vector.broadcast %cst_113 : f32 to vector<16x1xf32>
    %356 = arith.divf %354, %355 : vector<16x1xf32>
    %357 = vector.broadcast %356 : vector<16x1xf32> to vector<16x32xf32>
    %358 = arith.subf %352, %357 : vector<16x32xf32>
    %359 = arith.mulf %358, %358 : vector<16x32xf32>
    %cst_114 = arith.constant dense<0.000000e+00> : vector<16xf32>
    %360 = vector.multi_reduction <add>, %359, %cst_114 [1] : vector<16x32xf32> to vector<16xf32>
    %361 = vector.shape_cast %360 : vector<16xf32> to vector<16x1xf32>
    %cst_115 = arith.constant 3.200000e+01 : f32
    %362 = vector.broadcast %cst_115 : f32 to vector<16x1xf32>
    %363 = arith.divf %361, %362 : vector<16x1xf32>
    %cst_116 = arith.constant 9.99999974E-6 : f32
    %364 = vector.broadcast %cst_116 : f32 to vector<16x1xf32>
    %365 = arith.addf %363, %364 : vector<16x1xf32>
    %366 = math.rsqrt %365 : vector<16x1xf32>
    %367 = vector.broadcast %366 : vector<16x1xf32> to vector<16x32xf32>
    %368 = arith.mulf %358, %367 : vector<16x32xf32>
    %369 = vector.broadcast %208 : vector<1x32xf32> to vector<16x32xf32>
    %370 = arith.mulf %368, %369 : vector<16x32xf32>
    %371 = vector.broadcast %209 : vector<1x32xf32> to vector<16x32xf32>
    %372 = arith.addf %370, %371 : vector<16x32xf32>
    %c0_117 = arith.constant 0 : index
    %c0_118 = arith.constant 0 : index
    %373 = vector.load %arg9[%c0_117, %c0_118] : memref<2x32xf32, #tpu.memory_space<vmem>>, vector<2x32xf32>
    %374 = vector.extract_strided_slice %373 {offsets = [0, 0], sizes = [1, 32], strides = [1, 1]} : vector<2x32xf32> to vector<1x32xf32>
    %375 = vector.extract_strided_slice %373 {offsets = [1, 0], sizes = [1, 32], strides = [1, 1]} : vector<2x32xf32> to vector<1x32xf32>
    %cst_119 = arith.constant dense<0.000000e+00> : vector<16xf32>
    %376 = vector.multi_reduction <add>, %372, %cst_119 [1] : vector<16x32xf32> to vector<16xf32>
    %377 = vector.shape_cast %376 : vector<16xf32> to vector<16x1xf32>
    %cst_120 = arith.constant 3.200000e+01 : f32
    %378 = vector.broadcast %cst_120 : f32 to vector<16x1xf32>
    %379 = arith.divf %377, %378 : vector<16x1xf32>
    %380 = vector.broadcast %379 : vector<16x1xf32> to vector<16x32xf32>
    %381 = arith.subf %372, %380 : vector<16x32xf32>
    %382 = arith.mulf %381, %381 : vector<16x32xf32>
    %cst_121 = arith.constant dense<0.000000e+00> : vector<16xf32>
    %383 = vector.multi_reduction <add>, %382, %cst_121 [1] : vector<16x32xf32> to vector<16xf32>
    %384 = vector.shape_cast %383 : vector<16xf32> to vector<16x1xf32>
    %cst_122 = arith.constant 3.200000e+01 : f32
    %385 = vector.broadcast %cst_122 : f32 to vector<16x1xf32>
    %386 = arith.divf %384, %385 : vector<16x1xf32>
    %cst_123 = arith.constant 9.99999974E-6 : f32
    %387 = vector.broadcast %cst_123 : f32 to vector<16x1xf32>
    %388 = arith.addf %386, %387 : vector<16x1xf32>
    %389 = math.rsqrt %388 : vector<16x1xf32>
    %390 = vector.broadcast %389 : vector<16x1xf32> to vector<16x32xf32>
    %391 = arith.mulf %381, %390 : vector<16x32xf32>
    %392 = vector.broadcast %374 : vector<1x32xf32> to vector<16x32xf32>
    %393 = arith.mulf %391, %392 : vector<16x32xf32>
    %394 = vector.broadcast %375 : vector<1x32xf32> to vector<16x32xf32>
    %395 = arith.addf %393, %394 : vector<16x32xf32>
    %c0_124 = arith.constant 0 : index
    %c0_125 = arith.constant 0 : index
    %396 = vector.load %arg10[%c0_124, %c0_125] : memref<16x32xf32, #tpu.memory_space<vmem>>, vector<16x32xf32>
    tpu.vector_store %arg10[%c0_124, %c0_125], %395 {strides = array<i32>} : memref<16x32xf32, #tpu.memory_space<vmem>>, vector<16x32xf32>,
    return
  }
}

</mosaic_0001>

<bundles_post_ra>
// kernel: transformer_decoder.1
= control target key start
LH: loop header
LB: loop body
LE: loop exit
PB: predicated region body
PF: predicated region fallthrough
CT: control target
= control target key end

     0   :  { %vm51_vm0 = vcmask 261120   ;;  %v441_v0 = vlaneseq  ;;  %s14320_s23 = smov 32   ;;  %s14322_s12 = smov 120   ;;  %v17057_v61 = vmov 0.0   ;;  %vm14327_vm1 = vmmov 0   ;;  %s17046_s4 = inlined_call_operand.vmem [shape: f32[3,32,64], index: 4, kind: input, shape index: {}]   ;;  %s17047_s1 = inlined_call_operand.vmem [shape: f32[64,32], index: 1, kind: input, shape index: {}]   ;;  %s17048_s0 = inlined_call_operand.vmem [shape: f32[32,32], index: 0, kind: input, shape index: {}]   ;;  %s17049_s7 = inlined_call_operand.vmem [shape: f32[2,16,32], index: 7, kind: input, shape index: {}]   ;;  %s17050_s2 = inlined_call_operand.vmem [shape: f32[2,32,96], index: 2, kind: input, shape index: {}]   ;;  %s17051_s3 = inlined_call_operand.vmem [shape: f32[6,32,32], index: 3, kind: input, shape index: {}]   ;;  %s17052_s5 = inlined_call_operand.vmem [shape: f32[2,32,64], index: 5, kind: input, shape index: {}]   ;;  %s17053_s6 = inlined_call_operand.vmem [shape: f32[2,64,32], index: 6, kind: input, shape index: {}]   ;;  %s17054_s8 = inlined_call_operand.vmem [shape: f32[2,1,64], index: 8, kind: input, shape index: {}]   ;;  %s17055_s9 = inlined_call_operand.vmem [shape: f32[2,32], index: 9, kind: input, shape index: {}]   ;;  %s17056_s10 = inlined_call_operand.vmem [shape: f32[16,32], index: 10, kind: output, shape index: {}]  }
   0x1   :  { %v50_v1 = vld [vmem:[%s17046_s4 + $0x18] sm:$0xff]  ;;  %v49_v2 = vld [vmem:[%s17046_s4 + $0x10] sm:$0xff]  ;;  %v43_v3 = vld [vmem:[%s17047_s1 + $0x20] sm:$0xff]  ;;  %s14323_s13 = smov 104   ;;  %s14324_s14 = smov 96   ;;  %vm1389_vm2 = vcmask 64512  }
   0x2   :  { %13566 = vmatprep.subr.mxu1 %v50_v1  ;;  %v14397_v4 = vshrl.u32 %v441_v0, 7  ;;  %v48_v5 = vld [vmem:[%s17046_s4 + $0x8] sm:$0xff]  ;;  %13574 = vmatprep.mubr.msk.f32.mxu1 %vm51_vm0, %v43_v3  ;;  %v47_v6 = vld [vmem:[%s17046_s4] sm:$0xff]  ;;  %v13036_v9 = vld [vmem:[%s17046_s4 + $0x38] sm:$0xff]  ;;  %s14326_s15 = smov 64   ;;  %s14330_s16 = smov 8  }
   0x3   :  { %13567 = vmatpush3.msra.mxu1 %v50_v1  ;;  %v44_v8 = vld [vmem:[%s17047_s1 + $0x28] sm:$0xff]  ;;  %v45_v10 = vld [vmem:[%s17047_s1 + $0x30] sm:$0xff]  ;;  %v14427_v13 = vld [vmem:[%s17049_s7] sm:$0xff]  ;;  %s14331_s17 = smov 16   ;;  %s14332_s18 = smov 24   ;;  %vm2968_vm3 = vcmask 130048  }
   0x4   :  { %13568 = vmatprep.subr.mxu1 %v49_v2  ;;  %v14407_v7 = vsub.s32 1, %v14397_v4  ;;  %v37_v11 = vld [vmem:[%s17048_s0 + $0x10] sm:$0xff]  ;;  %v13044_v15 = vld [vmem:[%s17046_s4 + $0x58] sm:$0xff]  ;;  %v13034_v17 = vld [vmem:[%s17046_s4 + $0x28] sm:$0xff]  ;;  %v14524_v48 = vsub.s32 0, %v14397_v4  ;;  %v14552_v59 = vsub.s32 2, %v14397_v4 }
   0x5   :  { %13569 = vmatpush3.msra.mxu1 %v49_v2  ;;  %v13035_v12 = vld [vmem:[%s17046_s4 + $0x30] sm:$0xff]  ;;  %13602 = vmatprep.mubr.msk.f32.mxu0 %vm51_vm0, %v37_v11  ;;  %v46_v16 = vld [vmem:[%s17047_s1 + $0x38] sm:$0xff]  ;;  %v39_v18 = vld [vmem:[%s17047_s1] sm:$0xff]  ;;  %v14328_v2 = vmov 1983009808   ;;  %vm2971_vm4 = vcmask 195584  }
   0x6   :  { %13570 = vmatprep.subr.mxu1 %v48_v5  ;;  %v450_v14 = vrot.slane %v14427_v13, %v14407_v7  ;;  %v13033_v19 = vld [vmem:[%s17046_s4 + $0x20] sm:$0xff]  ;;  %13594 = vmatprep.subr.mxu0 %v13044_v15  ;;  %v13043_v20 = vld [vmem:[%s17046_s4 + $0x50] sm:$0xff]  ;;  %v40_v21 = vld [vmem:[%s17047_s1 + $0x8] sm:$0xff]  ;;  %v444_v49 = vrot.slane %v14427_v13, %v14524_v48  ;;  %v470_v62 = vrot.slane %v14427_v13, %v14552_v59  ;;  %v500_v3 = vunpack.c.l.s4 %v14328_v2 }
   0x7   :  { %13571 = vmatpush3.msra.mxu1 %v48_v5  ;;  %v359_v22 = vld [vmem:[%s17050_s2 + $0x18] sm:$0xff]  ;;  %v41_v23 = vld [vmem:[%s17047_s1 + $0x10] sm:$0xff]  ;;  %v35_v24 = vld [vmem:[%s17048_s0] sm:$0xff]  ;;  %13595 = vmatpush3.msra.mxu0 %v13044_v15  ;;  %vm6499_vm5 = vcmask 523264  }
   0x8   :  { %13572 = vmatprep.subr.mxu1 %v47_v6  ;;  %452 = vrot.lane.b32.xlu0 %v450_v14, %s14320_s23  ;;  %v358_v25 = vld [vmem:[%s17050_s2 + $0x10] sm:$0xff]  ;;  %v42_v26 = vld [vmem:[%s17047_s1 + $0x18] sm:$0xff]  ;;  %v13042_v27 = vld [vmem:[%s17046_s4 + $0x48] sm:$0xff]  ;;  %v354_v31 = vadd.f32 %v37_v11, %v35_v24 }
   0x9   :  { %13573 = vmatpush3.msra.mxu1 %v47_v6  ;;  %13596 = vmatprep.subr.mxu0 %v13043_v20  ;;  %v357_v28 = vld [vmem:[%s17050_s2 + $0x8] sm:$0xff]  ;;  %v38_v30 = vld [vmem:[%s17048_s0 + $0x18] sm:$0xff]  ;;  %v356_v32 = vld [vmem:[%s17050_s2] sm:$0xff]  ;;  %v501_v6 = vunpack.c.0.s8 %v500_v3 }
   0xa   :  { %13575 = vmatmul.mubr.msk.f32.vlgmr.msra.gmra.mxu1 %vm51_vm0, %v44_v8  ;;  %13580 = vmatprep.subr.mxu1 %v13036_v9  ;;  %v36_v29 = vld [vmem:[%s17048_s0 + $0x8] sm:$0xff]  ;;  %v13041_v34 = vld [vmem:[%s17046_s4 + $0x40] sm:$0xff]  ;;  %s14321_s4 = smov 112   ;;  %v14329_v8 = vmov 1934713408  }
   0xb   :  { %13581 = vmatpush3.msra.mxu1 %v13036_v9  ;;  %13577 = vmatprep.mubr.msk.f32.mxu1 %vm51_vm0, %v45_v10  ;;  %v355_v33 = vadd.f32 %v38_v30, %v36_v29  ;;  %v532_v9 = vunpack.c.l.s4 %v14329_v8  ;;  %v14574_v13 = vsub.s32 %v501_v6, %v14397_v4 }
   0xc   :  { %13582 = vmatprep.subr.mxu1 %v13035_v12  ;;  %13597 = vmatpush3.msra.mxu0 %v13043_v20 }
   0xd   :  { %13583 = vmatpush3.msra.mxu1 %v13035_v12  ;;  %13598 = vmatprep.subr.mxu0 %v13042_v27 }
   0xe   :  { %13578 = vmatmul.mubr.msk.f32.gmra.mxu1 %vm51_vm0, %v46_v16  ;;  %13584 = vmatprep.subr.mxu1 %v13034_v17  ;;  %v533_v16 = vunpack.c.0.s8 %v532_v9 }
   0xf   :  { %13585 = vmatpush3.msra.mxu1 %v13034_v17  ;;  %13588 = vmatprep.mubr.msk.f32.mxu1 %vm51_vm0, %v39_v18 }
  0x10   :  { %13586 = vmatprep.subr.mxu1 %v13033_v19  ;;  %13599 = vmatpush3.msra.mxu0 %v13042_v27 }
  0x11   :  { %13587 = vmatpush3.msra.mxu1 %v13033_v19  ;;  %13600 = vmatprep.subr.mxu0 %v13041_v34 }
  0x12   :  { %13589 = vmatmul.mubr.msk.f32.vlgmr.msra.gmra.mxu1 %vm51_vm0, %v40_v21  ;;  %13605 = vmatprep.subr.mxu1 %v359_v22  ;;  %v14581_v21 = vsub.s32 %v533_v16, %v14397_v4 }
  0x13   :  { %13606 = vmatpush3.msra.mxu1 %v359_v22  ;;  %13591 = vmatprep.mubr.msk.f32.mxu1 %vm51_vm0, %v41_v23 }
  0x14   :  { %13607 = vmatprep.subr.mxu1 %v358_v25  ;;  %13601 = vmatpush3.msra.mxu0 %v13041_v34 }
  0x15   :  { %13608 = vmatpush3.msra.mxu1 %v358_v25  ;;  %13603 = vmatmul.mubr.msk.f32.vlgmr.msra.gmra.mxu0 %vm51_vm0, %v38_v30 }
  0x16   :  { %13592 = vmatmul.mubr.msk.f32.gmra.mxu1 %vm51_vm0, %v42_v26  ;;  %13609 = vmatprep.subr.mxu1 %v357_v28 }
  0x17   :  { %13610 = vmatpush3.msra.mxu1 %v357_v28  ;;  %13613 = vmatprep.mubr.msk.f32.mxu1 %vm51_vm0, %v354_v31 }
  0x18   :  { %13611 = vmatprep.subr.mxu1 %v356_v32  ;;  %13616 = vmatprep.subr.mxu0 %v17057_v61 }
  0x19   :  { %13612 = vmatpush3.msra.mxu1 %v356_v32  ;;  %13618 = vmatprep.mubr.msk.f32.mxu0 %vm14327_vm1, %v17057_v61 }
  0x1a   :  { %13614 = vmatmul.mubr.msk.f32.vlgmr.msra.gmra.mxu1 %vm51_vm0, %v355_v33  ;;  %13621 = vmatprep.subr.mxu1 %v17057_v61 }
  0x1b   :  { %13623 = vmatprep.mubr.msk.f32.mxu1 %vm14327_vm1, %v17057_v61 }
  0x7a   :  { %v453_v44 = vpop.permute.xlu0 %452 }
  0xca   :  { %v14497_v35 = vpop.f32.mrf.mxu1 }
  0xcc   :  { %v14499_v36 = vpop.f32.mrf.mxu1 }
  0xce   :  { %v14501_v37 = vpop.f32.mrf.mxu1 }
  0xd0   :  { %v14503_v38 = vpop.f32.mrf.mxu1 }
  0xd2   :  { %v14505_v39 = vpop.f32.mrf.mxu1 }
  0xd4   :  { %v14507_v40 = vpop.f32.mrf.mxu1 }
  0xd5   :  { %v14542_v57 = vpop.f32.mrf.mxu0 }
  0xd6   :  { %v14509_v41 = vpop.f32.mrf.mxu1 }
  0xd7   :  { %17060 = vst [vmem:[#allocation2_spill] sm:$0xff] %v14509_v41  ;;  %v14554_v60 = vpop.f32.mrf.mxu0 }
  0xd8   :  { %v14511_v42 = vpop.f32.mrf.mxu1 }
  0xda   :  { %v14513_v43 = vpop.f32.mrf.mxu1 }
  0xdb   :  { %v456_v47 = vadd.f32 %v14513_v43, %v453_v44  ;;  %v14545_v58 = vadd.f32 %v14513_v43, %v444_v49 }
  0xdc   :  { %v14515_v45 = vpop.f32.mrf.mxu1 }
  0xdd   :  { %v455_v46 = vadd.f32 %v453_v44, %v14515_v45  ;;  %v445_v50 = vadd.f32 %v444_v49, %v14515_v45 }
  0xdf   :  { %775 = vrot.lane.b32.xlu1 %v455_v46, %s14321_s4  ;;  %771 = vrot.lane.b32.xlu0 %v455_v46, %s14322_s12 }
  0xe3   :  { %779 = vrot.lane.b32.xlu1 %v455_v46, %s14323_s13  ;;  %773 = vrot.lane.b32.xlu0 %v456_v47, %s14322_s12 }
  0xe7   :  { %777 = vrot.lane.b32.xlu1 %v456_v47, %s14321_s4  ;;  %781 = vrot.lane.b32.xlu0 %v456_v47, %s14323_s13 }
  0xeb   :  { %783 = vrot.lane.b32.xlu1 %v455_v46, %s14324_s14  ;;  %785 = vrot.lane.b32.xlu0 %v456_v47, %s14324_s14 }
  0xef   :  { %485 = vrot.lane.b32.xlu0 %v445_v50, %s14321_s4  ;;  %479 = vrot.lane.b32.xlu1 %v445_v50, %s14322_s12 }
  0xf3   :  { %491 = vrot.lane.b32.xlu1 %v445_v50, %s14323_s13 }
 0x151   :  { %v776_v51 = vpop.permute.xlu1 %775  ;;  %v772_v52 = vpop.permute.xlu0 %771 }
 0x152   :  { %787 = vrot.lane.b32.xlu0 %v772_v52, %s14324_s14  ;;  %791 = vrot.lane.b32.xlu1 %v776_v51, %s14324_s14 }
 0x155   :  { %v780_v53 = vpop.permute.xlu1 %779  ;;  %v774_v54 = vpop.permute.xlu0 %773 }
 0x156   :  { %795 = vrot.lane.b32.xlu0 %v780_v53, %s14324_s14  ;;  %789 = vrot.lane.b32.xlu1 %v774_v54, %s14324_s14 }
 0x159   :  { %v778_v55 = vpop.permute.xlu1 %777  ;;  %v782_v56 = vpop.permute.xlu0 %781 }
 0x15a   :  { %793 = vrot.lane.b32.xlu0 %v778_v55, %s14324_s14  ;;  %797 = vrot.lane.b32.xlu1 %v782_v56, %s14324_s14 }
 0x15d   :  { %v784_v63 = vpop.permute.xlu1 %783  ;;  %v14571_v1 = vpop.permute.xlu0 %785 }
 0x15e   :  { %481 = vrot.lane.b32.xlu0 %v14545_v58, %s14322_s12  ;;  %487 = vrot.lane.b32.xlu1 %v14545_v58, %s14321_s4 }
 0x161   :  { %v480_v0 = vpop.permute.xlu1 %479  ;;  %v486_v10 = vpop.permute.xlu0 %485 }
 0x162   :  { %493 = vrot.lane.b32.xlu0 %v14545_v58, %s14323_s13  ;;  %459 = vrot.lane.b32.xlu1 %v14554_v60, %s14326_s15  ;;  %v497_v14 = vcombine.low %v445_v50, %v486_v10  ;;  %v498_v15 = vcombine.high %v445_v50, %v486_v10 }
 0x164   :  { %v505_v19 = vrot.slane %v497_v14, %v14574_v13  ;;  %v512_v20 = vrot.slane %v498_v15, %v14574_v13 }
 0x165   :  { %v492_v5 = vpop.permute.xlu1 %491 }
 0x166   :  { %472 = vrot.lane.b32.xlu0 %v470_v62, %s14326_s15  ;;  %461 = vrot.lane.b32.xlu1 %v14542_v57, %s14326_s15  ;;  %v513_v11 = vcombine.low %v480_v0, %v492_v5  ;;  %v514_v12 = vcombine.high %v480_v0, %v492_v5 }
 0x168   :  { %v521_v17 = vrot.slane %v513_v11, %v14574_v13  ;;  %v528_v18 = vrot.slane %v514_v12, %v14574_v13 }
 0x16a   :  { %v529_v22 = vcombine.low %v505_v19, %v521_v17  ;;  %v530_v23 = vcombine.high %v505_v19, %v521_v17  ;;  %v545_v24 = vcombine.low %v512_v20, %v528_v18  ;;  %v546_v25 = vcombine.high %v512_v20, %v528_v18 }
 0x16c   :  { %v537_v26 = vrot.slane %v529_v22, %v14581_v21  ;;  %v544_v27 = vrot.slane %v530_v23, %v14581_v21  ;;  %v553_v28 = vrot.slane %v545_v24, %v14581_v21  ;;  %v560_v29 = vrot.slane %v546_v25, %v14581_v21 }
 0x16e   :  { %v633_v30 = vcombine.low %v537_v26, %v544_v27  ;;  %v13057_v31 = vcombine.high %v537_v26, %v544_v27  ;;  %v649_v32 = vcombine.low %v553_v28, %v560_v29  ;;  %v13058_v33 = vcombine.high %v553_v28, %v560_v29 }
 0x170   :  { %v640_v34 = vrot.slane %v633_v30, %v14574_v13  ;;  %v648_v44 = vrot.slane %v13057_v31, %v14574_v13  ;;  %v656_v46 = vrot.slane %v649_v32, %v14574_v13  ;;  %v664_v47 = vrot.slane %v13058_v33, %v14574_v13 }
 0x172   :  { %v665_v53 = vcombine.low %v640_v34, %v648_v44  ;;  %v681_v54 = vcombine.low %v656_v46, %v664_v47  ;;  %v666_v8 = vcombine.high %v640_v34, %v648_v44  ;;  %v682_v9 = vcombine.high %v656_v46, %v664_v47 }
 0x174   :  { %v14599_v12 = vrot.slane %v681_v54, %v14581_v21 }
 0x1c4   :  { %v788_v49 = vpop.permute.xlu0 %787  ;;  %v792_v50 = vpop.permute.xlu1 %791 }
 0x1c5   :  { %v807_v51 = vcombine.low %v784_v63, %v792_v50  ;;  %v808_v52 = vcombine.high %v784_v63, %v792_v50  ;;  %v14596_v63 = vrot.slane %v665_v53, %v14581_v21 }
 0x1c7   :  { %v815_v2 = vrot.slane %v807_v51, %v14574_v13  ;;  %v822_v3 = vrot.slane %v808_v52, %v14574_v13 }
 0x1c8   :  { %v796_v55 = vpop.permute.xlu0 %795  ;;  %v790_v56 = vpop.permute.xlu1 %789 }
 0x1c9   :  { %v823_v62 = vcombine.low %v788_v49, %v796_v55  ;;  %v824_v0 = vcombine.high %v788_v49, %v796_v55 }
 0x1cb   :  { %v831_v5 = vrot.slane %v823_v62, %v14574_v13  ;;  %v838_v6 = vrot.slane %v824_v0, %v14574_v13 }
 0x1cc   :  { %v794_v10 = vpop.permute.xlu0 %793  ;;  %v798_v11 = vpop.permute.xlu1 %797 }
 0x1cd   :  { %v839_v14 = vcombine.low %v815_v2, %v831_v5  ;;  %v840_v15 = vcombine.high %v815_v2, %v831_v5  ;;  %v855_v16 = vcombine.low %v822_v3, %v838_v6  ;;  %v856_v17 = vcombine.high %v822_v3, %v838_v6 }
 0x1ce   :  { %v875_v18 = vcombine.low %v14571_v1, %v794_v10  ;;  %v876_v19 = vcombine.high %v14571_v1, %v794_v10  ;;  %v891_v20 = vcombine.low %v790_v56, %v798_v11  ;;  %v892_v22 = vcombine.high %v790_v56, %v798_v11 }
 0x1cf   :  { %v847_v23 = vrot.slane %v839_v14, %v14581_v21  ;;  %v854_v24 = vrot.slane %v840_v15, %v14581_v21  ;;  %v863_v25 = vrot.slane %v855_v16, %v14581_v21  ;;  %v870_v26 = vrot.slane %v856_v17, %v14581_v21 }
 0x1d0   :  { %v883_v27 = vrot.slane %v875_v18, %v14574_v13  ;;  %v890_v28 = vrot.slane %v876_v19, %v14574_v13  ;;  %v899_v29 = vrot.slane %v891_v20, %v14574_v13  ;;  %v906_v30 = vrot.slane %v892_v22, %v14574_v13  ;;  %v482_v31 = vpop.permute.xlu0 %481  ;;  %v488_v44 = vpop.permute.xlu1 %487 }
 0x1d1   :  { %v943_v1 = vcombine.low %v847_v23, %v854_v24  ;;  %v13061_v32 = vcombine.high %v847_v23, %v854_v24  ;;  %v959_v33 = vcombine.low %v863_v25, %v870_v26  ;;  %v13062_v34 = vcombine.high %v863_v25, %v870_v26 }
 0x1d2   :  { %v907_v46 = vcombine.low %v883_v27, %v899_v29  ;;  %v908_v47 = vcombine.high %v883_v27, %v899_v29  ;;  %v923_v49 = vcombine.low %v890_v28, %v906_v30  ;;  %v924_v50 = vcombine.high %v890_v28, %v906_v30 }
 0x1d3   :  { %v950_v51 = vrot.slane %v943_v1, %v14574_v13  ;;  %v958_v52 = vrot.slane %v13061_v32, %v14574_v13  ;;  %v966_v53 = vrot.slane %v959_v33, %v14574_v13  ;;  %v974_v54 = vrot.slane %v13062_v34, %v14574_v13 }
 0x1d4   :  { %v915_v55 = vrot.slane %v907_v46, %v14581_v21  ;;  %v922_v56 = vrot.slane %v908_v47, %v14581_v21  ;;  %v931_v62 = vrot.slane %v923_v49, %v14581_v21  ;;  %v938_v0 = vrot.slane %v924_v50, %v14581_v21  ;;  %v494_v2 = vpop.permute.xlu0 %493  ;;  %v460_v20 = vpop.permute.xlu1 %459 }
 0x1d5   :  { %v697_v3 = vcombine.low %v14596_v63, %v14599_v12  ;;  %v14622_v5 = vrot.slane %v666_v8, %v14581_v21  ;;  %v14625_v6 = vrot.slane %v682_v9, %v14581_v21  ;;  %v565_v16 = vcombine.low %v14545_v58, %v488_v44 }
 0x1d6   :  { %v1011_v10 = vcombine.low %v915_v55, %v922_v56  ;;  %v13063_v11 = vcombine.high %v915_v55, %v922_v56  ;;  %v1027_v14 = vcombine.low %v931_v62, %v938_v0  ;;  %v13064_v15 = vcombine.high %v931_v62, %v938_v0 }
 0x1d7   :  { %v566_v17 = vcombine.high %v14545_v58, %v488_v44  ;;  %v581_v18 = vcombine.low %v482_v31, %v494_v2  ;;  %v582_v19 = vcombine.high %v482_v31, %v494_v2  ;;  %v975_v22 = vcombine.low %v950_v51, %v958_v52 }
 0x1d8   :  { %v991_v23 = vcombine.low %v966_v53, %v974_v54  ;;  %v14630_v24 = vrot.slane %v1011_v10, %v14574_v13  ;;  %v14633_v8 = vrot.slane %v13063_v11, %v14574_v13  ;;  %v573_v9 = vrot.slane %v565_v16, %v14574_v13  ;;  %v473_v34 = vpop.permute.xlu0 %472 }
 0x1d9   :  { %v580_v25 = vrot.slane %v566_v17, %v14574_v13  ;;  %v589_v26 = vrot.slane %v581_v18, %v14574_v13  ;;  %v596_v27 = vrot.slane %v582_v19, %v14574_v13  ;;  %v976_v58 = vcombine.high %v950_v51, %v958_v52 }
 0x1da   :  { %v992_v28 = vcombine.high %v966_v53, %v974_v54  ;;  %v14640_v29 = vrot.slane %v1027_v14, %v14574_v13  ;;  %v14643_v30 = vrot.slane %v13064_v15, %v14574_v13  ;;  %v1043_v44 = vcombine.low %v14630_v24, %v14633_v8  ;;  %v462_v54 = vpop.permute.xlu1 %461 }
 0x1db   :  { %v597_v31 = vcombine.low %v573_v9, %v589_v26  ;;  %v598_v1 = vcombine.high %v573_v9, %v589_v26  ;;  %v613_v32 = vcombine.low %v580_v25, %v596_v27  ;;  %v614_v33 = vcombine.high %v580_v25, %v596_v27 }
 0x1dc   :  { %v465_v46 = vsub.f32 %v14515_v45, %v460_v20  ;;  %v983_v47 = vrot.slane %v975_v22, %v14581_v21  ;;  %v999_v49 = vrot.slane %v991_v23, %v14581_v21  ;;  %v1059_v55 = vcombine.low %v14640_v29, %v14643_v30 }
 0x1dd   :  { %v605_v50 = vrot.slane %v597_v31, %v14581_v21  ;;  %v612_v51 = vrot.slane %v598_v1, %v14581_v21  ;;  %v621_v52 = vrot.slane %v613_v32, %v14581_v21  ;;  %v628_v53 = vrot.slane %v614_v33, %v14581_v21 }
 0x1de   :  { %v14656_v56 = vadd.f32 %v473_v34, %v465_v46  ;;  %v1007_v62 = vcombine.low %v983_v47, %v999_v49  ;;  %v1008_v45 = vcombine.high %v983_v47, %v999_v49  ;;  %v466_v14 = vsub.f32 %v14513_v43, %v462_v54 }
 0x1df   :  { %v701_v0 = vcombine.low %v605_v50, %v612_v51  ;;  %v13059_v2 = vcombine.high %v605_v50, %v612_v51  ;;  %v717_v10 = vcombine.low %v621_v52, %v628_v53  ;;  %v13060_v11 = vcombine.high %v621_v52, %v628_v53 }
 0x1e0   :  { %13617 = vmatpush3.xpose.msk.msra.mxu0 %vm1389_vm2, %v1007_v62  ;;  %13622 = vmatpush3.xpose.msk.msra.mxu1 %vm1389_vm2, %v1008_v45  ;;  %v990_v15 = vrot.slane %v976_v58, %v14581_v21  ;;  %v1006_v16 = vrot.slane %v992_v28, %v14581_v21  ;;  %v698_v43 = vcombine.high %v14596_v63, %v14599_v12 }
 0x1e1   :  { %v708_v17 = vrot.slane %v701_v0, %v14574_v13  ;;  %v716_v18 = vrot.slane %v13059_v2, %v14574_v13  ;;  %v724_v19 = vrot.slane %v717_v10, %v14574_v13  ;;  %v732_v20 = vrot.slane %v13060_v11, %v14574_v13  ;;  %1085 = vrot.lane.b32.xlu0 %v14656_v56, %s14321_s4 }
 0x1e2   :  { %1081 = vrot.lane.b32.xlu1 %v14656_v56, %s14322_s12  ;;  %13626 = vmatprep.subr.mxu0 %v17057_v61  ;;  %v1009_v22 = vcombine.low %v990_v15, %v1006_v16  ;;  %v1051_v23 = vrot.slane %v1043_v44, %v14581_v21  ;;  %v1010_v26 = vcombine.high %v990_v15, %v1006_v16 }
 0x1e3   :  { %v733_v9 = vcombine.low %v708_v17, %v716_v18  ;;  %v749_v25 = vcombine.low %v724_v19, %v732_v20  ;;  %13619 = vmatmul.mubr.msk.f32.vlgmr.msra.gmra.mxu0 %vm1389_vm2, %v697_v3  ;;  %v1067_v27 = vrot.slane %v1059_v55, %v14581_v21  ;;  %v1044_v58 = vcombine.high %v14630_v24, %v14633_v8 }
 0x1e4   :  { %v1060_v28 = vcombine.high %v14640_v29, %v14643_v30  ;;  %v14684_v31 = vadd.f32 %v473_v34, %v466_v14  ;;  %13624 = vmatmul.mubr.msk.f32.vlgmr.msra.gmra.mxu1 %vm1389_vm2, %v698_v43  ;;  %13631 = vmatprep.subr.mxu1 %v17057_v61  ;;  %v699_v3 = vcombine.low %v14622_v5, %v14625_v6 }
 0x1e5   :  { %13627 = vmatpush3.xpose.msk.msra.mxu0 %vm1389_vm2, %v1009_v22  ;;  %13632 = vmatpush3.xpose.msk.msra.mxu1 %vm1389_vm2, %v1010_v26  ;;  %v741_v63 = vrot.slane %v733_v9, %v14581_v21  ;;  %v757_v12 = vrot.slane %v749_v25, %v14581_v21  ;;  %v700_v24 = vcombine.high %v14622_v5, %v14625_v6 }
 0x1e6   :  { %1089 = vrot.lane.b32.xlu1 %v14656_v56, %s14323_s13  ;;  %1087 = vrot.lane.b32.xlu0 %v14684_v31, %s14321_s4  ;;  %v734_v8 = vcombine.high %v708_v17, %v716_v18  ;;  %v750_v29 = vcombine.high %v724_v19, %v732_v20  ;;  %v1075_v30 = vcombine.low %v1051_v23, %v1067_v27 }
 0x1e7   :  { %13628 = vmatprep.mubr.msk.f32.mxu0 %vm14327_vm1, %v17057_v61  ;;  %13633 = vmatprep.mubr.msk.f32.mxu1 %vm14327_vm1, %v17057_v61  ;;  %v1076_v1 = vcombine.high %v1051_v23, %v1067_v27  ;;  %v1058_v32 = vrot.slane %v1044_v58, %v14581_v21  ;;  %v1074_v33 = vrot.slane %v1060_v28, %v14581_v21 }
 0x1e8   :  { %13629 = vmatmul.mubr.msk.f32.vlgmr.msra.gmra.mxu0 %vm1389_vm2, %v699_v3  ;;  %13634 = vmatmul.mubr.msk.f32.vlgmr.msra.gmra.mxu1 %vm1389_vm2, %v700_v24  ;;  %v765_v5 = vcombine.low %v741_v63, %v757_v12  ;;  %v766_v6 = vcombine.high %v741_v63, %v757_v12  ;;  %v748_v34 = vrot.slane %v734_v8, %v14581_v21 }
 0x1e9   :  { %13636 = vmatprep.subr.mxu0 %v17057_v61  ;;  %13641 = vmatprep.subr.mxu1 %v17057_v61  ;;  %v764_v44 = vrot.slane %v750_v29, %v14581_v21  ;;  %v1077_v46 = vcombine.low %v1058_v32, %v1074_v33  ;;  %v1078_v47 = vcombine.high %v1058_v32, %v1074_v33 }
 0x1ea   :  { %13637 = vmatpush3.xpose.msk.msra.mxu0 %vm1389_vm2, %v1075_v30  ;;  %13642 = vmatpush3.xpose.msk.msra.mxu1 %vm1389_vm2, %v1076_v1 }
 0x1eb   :  { %1083 = vrot.lane.b32.xlu1 %v14684_v31, %s14322_s12  ;;  %13638 = vmatprep.mubr.msk.f32.mxu0 %vm14327_vm1, %v17057_v61  ;;  %v767_v49 = vcombine.low %v748_v34, %v764_v44  ;;  %v768_v50 = vcombine.high %v748_v34, %v764_v44 }
 0x1ec   :  { %13643 = vmatprep.mubr.msk.f32.mxu1 %vm14327_vm1, %v17057_v61  ;;  %13646 = vmatprep.subr.mxu0 %v17057_v61 }
 0x1ed   :  { %13651 = vmatprep.subr.mxu1 %v17057_v61  ;;  %13639 = vmatmul.mubr.msk.f32.vlgmr.msra.gmra.mxu0 %vm1389_vm2, %v765_v5 }
 0x1ee   :  { %13644 = vmatmul.mubr.msk.f32.vlgmr.msra.gmra.mxu1 %vm1389_vm2, %v766_v6  ;;  %13647 = vmatpush3.xpose.msk.msra.mxu0 %vm1389_vm2, %v1077_v46 }
 0x1ef   :  { %13652 = vmatpush3.xpose.msk.msra.mxu1 %vm1389_vm2, %v1078_v47  ;;  %1091 = vrot.lane.b32.xlu1 %v14684_v31, %s14323_s13 }
 0x1f0   :  { %13648 = vmatprep.mubr.msk.f32.mxu0 %vm14327_vm1, %v17057_v61  ;;  %13653 = vmatprep.mubr.msk.f32.mxu1 %vm14327_vm1, %v17057_v61 }
 0x1f1   :  { %13649 = vmatmul.mubr.msk.f32.vlgmr.msra.gmra.mxu0 %vm1389_vm2, %v767_v49  ;;  %13656 = vmatprep.subr.mxu0 %v17057_v61 }
 0x1f2   :  { %13654 = vmatmul.mubr.msk.f32.vlgmr.msra.gmra.mxu1 %vm1389_vm2, %v768_v50  ;;  %13661 = vmatprep.subr.mxu1 %v17057_v61 }
 0x1f3   :  { %1093 = vrot.lane.b32.xlu1 %v14656_v56, %s14326_s15  ;;  %13658 = vmatprep.mubr.msk.f32.mxu0 %vm14327_vm1, %v17057_v61 }
 0x1f4   :  { %13663 = vmatprep.mubr.msk.f32.mxu1 %vm14327_vm1, %v17057_v61 }
 0x253   :  { %v1086_v51 = vpop.permute.xlu0 %1085 }
 0x254   :  { %v1082_v52 = vpop.permute.xlu1 %1081  ;;  %1101 = vrot.lane.b32.xlu1 %v1086_v51, %s14326_s15 }
 0x255   :  { %1097 = vrot.lane.b32.xlu0 %v1082_v52, %s14326_s15 }
 0x258   :  { %v1090_v26 = vpop.permute.xlu1 %1089  ;;  %v14773_v12 = vpop.permute.xlu0 %1087 }
 0x25d   :  { %v1084_v28 = vpop.permute.xlu1 %1083 }
 0x261   :  { %v14771_v63 = vpop.permute.xlu1 %1091 }
 0x265   :  { %v1094_v3 = vpop.permute.xlu1 %1093 }
 0x2a3   :  { %v1462_v53 = vpop.f32.mrf.mxu0 }
 0x2a4   :  { %v1538_v54 = vpop.f32.mrf.mxu1  ;;  %v1998_v55 = vsel %vm1389_vm2, %v1462_v53, -inf }
 0x2a5   :  { %v13620_v62 = vpop.f32.mrf.mxu0  ;;  %v2001_v45 = vsel %vm1389_vm2, %v1538_v54, -inf  ;;  %1999 = vmax.xlane.f32.xlu0 %v1998_v55 }
 0x2a6   :  { %v13625_v56 = vpop.f32.mrf.mxu1  ;;  %2002 = vmax.xlane.f32.xlu1 %v2001_v45 }
 0x2a8   :  { %v1614_v0 = vpop.f32.mrf.mxu0  ;;  %v14746_v2 = vpop.f32.mrf.mxu1 }
 0x2a9   :  { %v2004_v10 = vsel %vm1389_vm2, %v1614_v0, -inf  ;;  %v2007_v16 = vsel %vm1389_vm2, %v14746_v2, -inf }
 0x2aa   :  { %v13630_v11 = vpop.f32.mrf.mxu0  ;;  %v13635_v14 = vpop.f32.mrf.mxu1  ;;  %2005 = vmax.xlane.f32.xlu0 %v2004_v10 }
 0x2ad   :  { %v14749_v15 = vpop.f32.mrf.mxu0 }
 0x2ae   :  { %v14753_v17 = vpop.f32.mrf.mxu1  ;;  %2008 = vmax.xlane.f32.xlu0 %v2007_v16  ;;  %v2010_v27 = vsel %vm1389_vm2, %v14749_v15, -inf }
 0x2af   :  { %v13640_v18 = vpop.f32.mrf.mxu0  ;;  %v2013_v43 = vsel %vm1389_vm2, %v14753_v17, -inf }
 0x2b0   :  { %v13645_v19 = vpop.f32.mrf.mxu1 }
 0x2b1   :  { %v14755_v20 = vpop.f32.mrf.mxu0 }
 0x2b2   :  { %v14759_v22 = vpop.f32.mrf.mxu1  ;;  %2014 = vmax.xlane.f32.xlu0 %v2013_v43  ;;  %v2016_v58 = vsel %vm1389_vm2, %v14755_v20, -inf }
 0x2b3   :  { %v13650_v23 = vpop.f32.mrf.mxu0  ;;  %v2019_v25 = vsel %vm1389_vm2, %v14759_v22, -inf }
 0x2b4   :  { %v13655_v9 = vpop.f32.mrf.mxu1 }
 0x2b6   :  { %2020 = vmax.xlane.f32.xlu0 %v2019_v25 }
 0x2b7   :  { %1105 = vrot.lane.b32.xlu1 %v1090_v26, %s14326_s15 }
 0x2c6   :  { %v1102_v8 = vpop.permute.xlu1 %1101 }
 0x2c7   :  { %v1098_v24 = vpop.permute.xlu0 %1097  ;;  %v1117_v32 = vcombine.low %v1094_v3, %v1102_v8  ;;  %v1118_v5 = vcombine.high %v1094_v3, %v1102_v8 }
 0x2c9   :  { %v1125_v50 = vrot.slane %v1117_v32, %v14574_v13  ;;  %v1132_v51 = vrot.slane %v1118_v5, %v14574_v13 }
 0x2cc   :  { %1095 = vrot.lane.b32.xlu0 %v14684_v31, %s14326_s15 }
 0x2db   :  { %2011 = vmax.xlane.f32.xlu1 %v2010_v27 }
 0x2df   :  { %2017 = vmax.xlane.f32.xlu1 %v2016_v58 }
 0x2f0   :  { %1099 = vrot.lane.b32.xlu1 %v1084_v28, %s14326_s15 }
 0x32e   :  { %v2000_v29 = vpop.xlane.xlu0 %1999 }
 0x32f   :  { %v2022_v31 = vsub.f32 %v1462_v53, %v2000_v29  ;;  %v2003_v30 = vpop.xlane.xlu1 %2002 }
 0x330   :  { %v2023_v1 = vsub.f32 %v1538_v54, %v2003_v30 }
 0x331   :  { %v2030_v33 = vmul.f32 1.442695, %v2022_v31 }
 0x332   :  { %v2032_v6 = vmul.f32 1.442695, %v2023_v1 }
 0x333   :  { %14150 = vpow2.f32 %v2030_v33  ;;  %v2006_v34 = vpop.xlane.xlu0 %2005  ;;  %v1106_v44 = vpop.permute.xlu1 %1105 }
 0x334   :  { %14152 = vpow2.f32 %v2032_v6  ;;  %v2024_v46 = vsub.f32 %v1614_v0, %v2006_v34  ;;  %v1133_v47 = vcombine.low %v1098_v24, %v1106_v44  ;;  %v1134_v49 = vcombine.high %v1098_v24, %v1106_v44 }
 0x336   :  { %v2034_v52 = vmul.f32 1.442695, %v2024_v46  ;;  %v1141_v53 = vrot.slane %v1133_v47, %v14574_v13  ;;  %v1148_v54 = vrot.slane %v1134_v49, %v14574_v13 }
 0x337   :  { %v2009_v55 = vpop.xlane.xlu0 %2008 }
 0x338   :  { %14154 = vpow2.f32 %v2034_v52  ;;  %v1149_v62 = vcombine.low %v1125_v50, %v1141_v53  ;;  %v1150_v45 = vcombine.high %v1125_v50, %v1141_v53  ;;  %v1165_v56 = vcombine.low %v1132_v51, %v1148_v54 }
 0x339   :  { %v1166_v10 = vcombine.high %v1132_v51, %v1148_v54  ;;  %v2025_v11 = vsub.f32 %v14746_v2, %v2009_v55 }
 0x33a   :  { %v1157_v0 = vrot.slane %v1149_v62, %v14581_v21  ;;  %v1164_v14 = vrot.slane %v1150_v45, %v14581_v21  ;;  %v1173_v16 = vrot.slane %v1165_v56, %v14581_v21 }
 0x33b   :  { %v1180_v18 = vrot.slane %v1166_v10, %v14581_v21  ;;  %v2036_v19 = vmul.f32 1.442695, %v2025_v11  ;;  %v2015_v43 = vpop.xlane.xlu0 %2014 }
 0x33c   :  { %v1253_v23 = vcombine.low %v1157_v0, %v1164_v14  ;;  %v13065_v9 = vcombine.high %v1157_v0, %v1164_v14  ;;  %v2027_v25 = vsub.f32 %v14753_v17, %v2015_v43 }
 0x33d   :  { %v1269_v26 = vcombine.low %v1173_v16, %v1180_v18  ;;  %v13066_v27 = vcombine.high %v1173_v16, %v1180_v18  ;;  %14156 = vpow2.f32 %v2036_v19 }
 0x33e   :  { %v2040_v58 = vmul.f32 1.442695, %v2027_v25  ;;  %v1260_v2 = vrot.slane %v1253_v23, %v14574_v13  ;;  %v1268_v28 = vrot.slane %v13065_v9, %v14574_v13 }
 0x33f   :  { %v1276_v3 = vrot.slane %v1269_v26, %v14574_v13  ;;  %v1284_v24 = vrot.slane %v13066_v27, %v14574_v13  ;;  %v2021_v45 = vpop.xlane.xlu0 %2020 }
 0x340   :  { %v14789_v8 = vpop.eup %14150  ;;  %14158 = vpow2.f32 %v2040_v58  ;;  %v1285_v29 = vcombine.low %v1260_v2, %v1268_v28  ;;  %v1286_v31 = vcombine.high %v1260_v2, %v1268_v28  ;;  %v2029_v56 = vsub.f32 %v14759_v22, %v2021_v45 }
 0x341   :  { %v14791_v30 = vpop.eup %14152  ;;  %v2046_v17 = vsel %vm1389_vm2, %v14789_v8, 0.0  ;;  %v1301_v1 = vcombine.low %v1276_v3, %v1284_v24  ;;  %v1302_v32 = vcombine.high %v1276_v3, %v1284_v24 }
 0x342   :  { %2047 = vadd.xlane.f32.xlu0 %v2046_v17  ;;  %v2049_v33 = vsel %vm1389_vm2, %v14791_v30, 0.0  ;;  %v1293_v5 = vrot.slane %v1285_v29, %v14581_v21  ;;  %v1300_v6 = vrot.slane %v1286_v31, %v14581_v21  ;;  %v2044_v0 = vmul.f32 1.442695, %v2029_v56 }
 0x343   :  { %2050 = vadd.xlane.f32.xlu1 %v2049_v33  ;;  %v1309_v34 = vrot.slane %v1301_v1, %v14581_v21  ;;  %v1316_v44 = vrot.slane %v1302_v32, %v14581_v21 }
 0x345   :  { %v14155_v46 = vpop.eup %14154  ;;  %v1317_v47 = vcombine.low %v1293_v5, %v1309_v34  ;;  %v1318_v49 = vcombine.high %v1293_v5, %v1309_v34  ;;  %v1319_v50 = vcombine.low %v1300_v6, %v1316_v44  ;;  %v1320_v51 = vcombine.high %v1300_v6, %v1316_v44 }
 0x346   :  { %v2052_v52 = vsel %vm1389_vm2, %v14155_v46, 0.0 }
 0x347   :  { %13657 = vmatpush3.msra.mxu0 %v1317_v47  ;;  %13662 = vmatpush3.msra.mxu1 %v1318_v49 }
 0x348   :  { %2053 = vadd.xlane.f32.xlu0 %v2052_v52  ;;  %13666 = vmatprep.subr.mxu0 %v17057_v61 }
 0x349   :  { %13671 = vmatprep.subr.mxu1 %v17057_v61 }
 0x34a   :  { %v14157_v53 = vpop.eup %14156 }
 0x34b   :  { %v2055_v54 = vsel %vm1389_vm2, %v14157_v53, 0.0 }
 0x34c   :  { %2056 = vadd.xlane.f32.xlu0 %v2055_v54 }
 0x34d   :  { %v14805_v55 = vpop.eup %14158 }
 0x34e   :  { %v2061_v62 = vsel %vm1389_vm2, %v14805_v55, 0.0 }
 0x350   :  { %2062 = vadd.xlane.f32.xlu0 %v2061_v62 }
 0x364   :  { %v2012_v10 = vpop.xlane.xlu1 %2011 }
 0x365   :  { %v2026_v11 = vsub.f32 %v14749_v15, %v2012_v10 }
 0x367   :  { %v2038_v14 = vmul.f32 1.442695, %v2026_v11 }
 0x368   :  { %v2018_v16 = vpop.xlane.xlu1 %2017 }
 0x369   :  { %14160 = vpow2.f32 %v2038_v14  ;;  %v2028_v18 = vsub.f32 %v14755_v20, %v2018_v16  ;;  %v1096_v20 = vpop.permute.xlu0 %1095 }
 0x36a   :  { %14162 = vpow2.f32 %v2044_v0 }
 0x36b   :  { %v2042_v19 = vmul.f32 1.442695, %v2028_v18 }
 0x36c   :  { %v1100_v26 = vpop.permute.xlu1 %1099 }
 0x36d   :  { %14164 = vpow2.f32 %v2042_v19 }
 0x376   :  { %v14812_v43 = vpop.eup %14160 }
 0x377   :  { %v2058_v23 = vsel %vm1389_vm2, %v14812_v43, 0.0  ;;  %v14816_v9 = vpop.eup %14162 }
 0x378   :  { %2059 = vadd.xlane.f32.xlu1 %v2058_v23  ;;  %v2067_v15 = vsel %vm1389_vm2, %v14816_v9, 0.0 }
 0x37a   :  { %v14818_v22 = vpop.eup %14164 }
 0x37b   :  { %v2064_v25 = vsel %vm1389_vm2, %v14818_v22, 0.0 }
 0x37c   :  { %2068 = vadd.xlane.f32.xlu1 %v2067_v15  ;;  %2065 = vadd.xlane.f32.xlu0 %v2064_v25 }
 0x38d   :  { %1107 = vrot.lane.b32.xlu1 %v14771_v63, %s14326_s15 }
 0x392   :  { %1103 = vrot.lane.b32.xlu0 %v14773_v12, %s14326_s15 }
 0x3cb   :  { %v2048_v27 = vpop.xlane.xlu0 %2047 }
 0x3cc   :  { %14166 = vrcp.f32 %v2048_v27  ;;  %v2051_v58 = vpop.xlane.xlu1 %2050 }
 0x3cd   :  { %14168 = vrcp.f32 %v2051_v58 }
 0x3d1   :  { %v2054_v2 = vpop.xlane.xlu0 %2053 }
 0x3d2   :  { %14170 = vrcp.f32 %v2054_v2 }
 0x3d5   :  { %v2057_v28 = vpop.xlane.xlu0 %2056 }
 0x3d6   :  { %14172 = vrcp.f32 %v2057_v28 }
 0x3d9   :  { %v14167_v3 = vpop.eup %14166  ;;  %v2063_v17 = vpop.xlane.xlu0 %2062 }
 0x3da   :  { %v14169_v24 = vpop.eup %14168  ;;  %v2078_v29 = vmul.f32 %v14167_v3, %v14789_v8  ;;  %14174 = vrcp.f32 %v2063_v17 }
 0x3db   :  { %v2079_v31 = vmul.f32 %v14169_v24, %v14791_v30 }
 0x3dc   :  { %13659 = vmatmul.mubr.msk.f32.vlgmr.msra.gmra.mxu0 %vm1389_vm2, %v2078_v29 }
 0x3dd   :  { %13664 = vmatmul.mubr.msk.f32.vlgmr.msra.gmra.mxu1 %vm1389_vm2, %v2079_v31  ;;  %13667 = vmatpush3.msra.mxu0 %v1319_v50 }
 0x3de   :  { %13672 = vmatpush3.msra.mxu1 %v1320_v51  ;;  %13668 = vmatprep.mubr.msk.f32.mxu0 %vm14327_vm1, %v17057_v61 }
 0x3df   :  { %v14171_v63 = vpop.eup %14170  ;;  %13673 = vmatprep.mubr.msk.f32.mxu1 %vm14327_vm1, %v17057_v61  ;;  %13676 = vmatprep.subr.mxu0 %v17057_v61 }
 0x3e0   :  { %v2080_v12 = vmul.f32 %v14171_v63, %v14155_v46  ;;  %13681 = vmatprep.subr.mxu1 %v17057_v61 }
 0x3e2   :  { %13669 = vmatmul.mubr.msk.f32.vlgmr.msra.gmra.mxu0 %vm1389_vm2, %v2080_v12 }
 0x3e3   :  { %v14173_v8 = vpop.eup %14172  ;;  %13678 = vmatprep.mubr.msk.f32.mxu0 %vm14327_vm1, %v17057_v61 }
 0x3e4   :  { %v2081_v30 = vmul.f32 %v14173_v8, %v14157_v53 }
 0x3e6   :  { %13674 = vmatmul.mubr.msk.f32.vlgmr.msra.gmra.mxu1 %vm1389_vm2, %v2081_v30 }
 0x3e7   :  { %13683 = vmatprep.mubr.msk.f32.mxu1 %vm14327_vm1, %v17057_v61 }
 0x401   :  { %v2060_v1 = vpop.xlane.xlu1 %2059 }
 0x402   :  { %14176 = vrcp.f32 %v2060_v1 }
 0x405   :  { %v2066_v32 = vpop.xlane.xlu0 %2065  ;;  %v2069_v33 = vpop.xlane.xlu1 %2068 }
 0x406   :  { %14178 = vrcp.f32 %v2066_v32 }
 0x407   :  { %14180 = vrcp.f32 %v2069_v33 }
 0x409   :  { %v1104_v5 = vpop.permute.xlu0 %1103  ;;  %v1108_v6 = vpop.permute.xlu1 %1107 }
 0x40a   :  { %v1185_v34 = vcombine.low %v1096_v20, %v1104_v5  ;;  %v1186_v44 = vcombine.high %v1096_v20, %v1104_v5  ;;  %v1201_v46 = vcombine.low %v1100_v26, %v1108_v6  ;;  %v1202_v47 = vcombine.high %v1100_v26, %v1108_v6  ;;  %v14175_v26 = vpop.eup %14174 }
 0x40b   :  { %v2083_v1 = vmul.f32 %v14175_v26, %v14805_v55 }
 0x40c   :  { %v1193_v49 = vrot.slane %v1185_v34, %v14574_v13  ;;  %v1200_v50 = vrot.slane %v1186_v44, %v14574_v13  ;;  %v1209_v51 = vrot.slane %v1201_v46, %v14574_v13  ;;  %v1216_v52 = vrot.slane %v1202_v47, %v14574_v13 }
 0x40e   :  { %v1217_v53 = vcombine.low %v1193_v49, %v1209_v51  ;;  %v1218_v54 = vcombine.high %v1193_v49, %v1209_v51  ;;  %v1233_v62 = vcombine.low %v1200_v50, %v1216_v52  ;;  %v1234_v45 = vcombine.high %v1200_v50, %v1216_v52 }
 0x40f   :  { %v14177_v3 = vpop.eup %14176 }
 0x410   :  { %v1225_v56 = vrot.slane %v1217_v53, %v14581_v21  ;;  %v1232_v10 = vrot.slane %v1218_v54, %v14581_v21  ;;  %v1241_v11 = vrot.slane %v1233_v62, %v14581_v21  ;;  %v1248_v0 = vrot.slane %v1234_v45, %v14581_v21 }
 0x411   :  { %v2082_v17 = vmul.f32 %v14177_v3, %v14812_v43 }
 0x412   :  { %v1321_v14 = vcombine.low %v1225_v56, %v1232_v10  ;;  %v13067_v16 = vcombine.high %v1225_v56, %v1232_v10  ;;  %v1337_v18 = vcombine.low %v1241_v11, %v1248_v0  ;;  %v13068_v19 = vcombine.high %v1241_v11, %v1248_v0 }
 0x413   :  { %v14179_v12 = vpop.eup %14178 }
 0x414   :  { %v1328_v23 = vrot.slane %v1321_v14, %v14574_v13  ;;  %v1336_v15 = vrot.slane %v13067_v16, %v14574_v13  ;;  %v1344_v25 = vrot.slane %v1337_v18, %v14574_v13  ;;  %v1352_v20 = vrot.slane %v13068_v19, %v14574_v13  ;;  %v14181_v32 = vpop.eup %14180 }
 0x415   :  { %v2084_v6 = vmul.f32 %v14179_v12, %v14818_v22  ;;  %v2085_v43 = vmul.f32 %v14181_v32, %v14816_v9 }
 0x416   :  { %v1353_v27 = vcombine.low %v1328_v23, %v1336_v15  ;;  %v1369_v58 = vcombine.low %v1344_v25, %v1352_v20  ;;  %v1354_v2 = vcombine.high %v1328_v23, %v1336_v15  ;;  %v1370_v28 = vcombine.high %v1344_v25, %v1352_v20 }
 0x418   :  { %v1361_v24 = vrot.slane %v1353_v27, %v14581_v21  ;;  %v1377_v29 = vrot.slane %v1369_v58, %v14581_v21  ;;  %v1368_v31 = vrot.slane %v1354_v2, %v14581_v21  ;;  %v1384_v63 = vrot.slane %v1370_v28, %v14581_v21 }
 0x41a   :  { %v1385_v8 = vcombine.low %v1361_v24, %v1377_v29  ;;  %v1386_v30 = vcombine.high %v1361_v24, %v1377_v29  ;;  %v1387_v33 = vcombine.low %v1368_v31, %v1384_v63  ;;  %v1388_v5 = vcombine.high %v1368_v31, %v1384_v63 }
 0x41c   :  { %13677 = vmatpush3.msra.mxu0 %v1385_v8  ;;  %13682 = vmatpush3.msra.mxu1 %v1386_v30 }
 0x41d   :  { %13679 = vmatmul.mubr.msk.f32.vlgmr.msra.gmra.mxu0 %vm1389_vm2, %v2082_v17  ;;  %13684 = vmatmul.mubr.msk.f32.vlgmr.msra.gmra.mxu1 %vm1389_vm2, %v2083_v1 }
 0x41e   :  { %13686 = vmatprep.subr.mxu0 %v17057_v61  ;;  %13691 = vmatprep.subr.mxu1 %v17057_v61 }
 0x41f   :  { %13687 = vmatpush3.msra.mxu0 %v1387_v33  ;;  %13692 = vmatpush3.msra.mxu1 %v1388_v5 }
 0x420   :  { %13688 = vmatprep.mubr.msk.f32.mxu0 %vm14327_vm1, %v17057_v61  ;;  %13693 = vmatprep.mubr.msk.f32.mxu1 %vm14327_vm1, %v17057_v61 }
 0x421   :  { %13689 = vmatmul.mubr.msk.f32.vlgmr.msra.gmra.mxu0 %vm1389_vm2, %v2084_v6  ;;  %13694 = vmatmul.mubr.msk.f32.vlgmr.msra.gmra.mxu1 %vm1389_vm2, %v2085_v43 }
 0x49c   :  { %v2155_v55 = vpop.f32.mrf.mxu0 }
 0x49d   :  { %v2228_v34 = vpop.f32.mrf.mxu1 }
 0x49e   :  { %v13660_v44 = vpop.f32.mrf.mxu0 }
 0x49f   :  { %v13665_v46 = vpop.f32.mrf.mxu1 }
 0x4a2   :  { %v2301_v47 = vpop.f32.mrf.mxu0 }
 0x4a3   :  { %v2670_v50 = vcombine.low %v2155_v55, %v2301_v47  ;;  %v2671_v22 = vcombine.high %v2155_v55, %v2301_v47 }
 0x4a4   :  { %v13670_v49 = vpop.f32.mrf.mxu0 }
 0x4a5   :  { %v2678_v54 = vrot.slane %v2670_v50, %v14574_v13  ;;  %v2685_v62 = vrot.slane %v2671_v22, %v14574_v13 }
 0x4a6   :  { %v2374_v51 = vpop.f32.mrf.mxu1 }
 0x4a7   :  { %v2686_v9 = vcombine.low %v2228_v34, %v2374_v51  ;;  %v2687_v52 = vcombine.high %v2228_v34, %v2374_v51 }
 0x4a8   :  { %v13675_v53 = vpop.f32.mrf.mxu1 }
 0x4a9   :  { %v2694_v45 = vrot.slane %v2686_v9, %v14574_v13  ;;  %v2701_v56 = vrot.slane %v2687_v52, %v14574_v13 }
 0x4ab   :  { %v2702_v10 = vcombine.low %v2678_v54, %v2694_v45  ;;  %v2703_v11 = vcombine.high %v2678_v54, %v2694_v45  ;;  %v2718_v0 = vcombine.low %v2685_v62, %v2701_v56  ;;  %v2719_v14 = vcombine.high %v2685_v62, %v2701_v56 }
 0x4ad   :  { %v2710_v16 = vrot.slane %v2702_v10, %v14581_v21  ;;  %v2717_v18 = vrot.slane %v2703_v11, %v14581_v21  ;;  %v2726_v19 = vrot.slane %v2718_v0, %v14581_v21  ;;  %v2733_v23 = vrot.slane %v2719_v14, %v14581_v21 }
 0x4af   :  { %v2806_v15 = vcombine.low %v2710_v16, %v2717_v18  ;;  %v13093_v25 = vcombine.high %v2710_v16, %v2717_v18  ;;  %v2822_v20 = vcombine.low %v2726_v19, %v2733_v23  ;;  %v13094_v26 = vcombine.high %v2726_v19, %v2733_v23  ;;  %v343_v18 = vld [vmem:[%s17051_s3 + $0x18] sm:$0xff]  ;;  %v342_v19 = vld [vmem:[%s17051_s3 + $0x10] sm:$0xff] }
 0x4b0   :  { %13696 = vmatprep.subr.mxu0 %v343_v18 }
 0x4b1   :  { %v2813_v27 = vrot.slane %v2806_v15, %v14574_v13  ;;  %v2821_v58 = vrot.slane %v13093_v25, %v14574_v13  ;;  %v2829_v2 = vrot.slane %v2822_v20, %v14574_v13  ;;  %v2837_v28 = vrot.slane %v13094_v26, %v14574_v13  ;;  %13697 = vmatpush3.msra.mxu0 %v343_v18  ;;  %v341_v26 = vld [vmem:[%s17051_s3 + $0x8] sm:$0xff] }
 0x4b2   :  { %13698 = vmatprep.subr.mxu0 %v342_v19 }
 0x4b3   :  { %v2838_v3 = vcombine.low %v2813_v27, %v2821_v58  ;;  %v2854_v24 = vcombine.low %v2829_v2, %v2837_v28  ;;  %v2839_v29 = vcombine.high %v2813_v27, %v2821_v58  ;;  %v2855_v31 = vcombine.high %v2829_v2, %v2837_v28  ;;  %13699 = vmatpush3.msra.mxu0 %v342_v19 }
 0x4b4   :  { %13700 = vmatprep.subr.mxu0 %v341_v26 }
 0x4b5   :  { %v14887_v63 = vrot.slane %v2838_v3, %v14581_v21  ;;  %v14890_v12 = vrot.slane %v2854_v24, %v14581_v21  ;;  %v2853_v30 = vrot.slane %v2839_v29, %v14581_v21  ;;  %v2869_v17 = vrot.slane %v2855_v31, %v14581_v21  ;;  %v340_v3 = vld [vmem:[%s17051_s3] sm:$0xff]  ;;  %13701 = vmatpush3.msra.mxu0 %v341_v26 }
 0x4b6   :  { %13702 = vmatprep.subr.mxu0 %v340_v3 }
 0x4b7   :  { %v2871_v8 = vcombine.high %v14887_v63, %v14890_v12  ;;  %v2870_v1 = vcombine.low %v14887_v63, %v14890_v12  ;;  %v2872_v32 = vcombine.low %v2853_v30, %v2869_v17  ;;  %v2873_v33 = vcombine.high %v2853_v30, %v2869_v17  ;;  %13703 = vmatpush3.msra.mxu0 %v340_v3  ;;  %v14952_v12 = vld [vmem:[%s17049_s7] sm:$0xff] }
 0x4b8   :  { %13718 = vmatprep.subr.mxu0 %v17057_v61  ;;  %v14947_v63 = vsub.s32 3, %v14397_v4 }
 0x4b9   :  { %2944 = vrot.lane.b32.xlu0 %v2871_v8, %s14330_s16 }
 0x4bd   :  { %2952 = vrot.lane.b32.xlu0 %v2872_v32, %s14331_s17 }
 0x4c1   :  { %2960 = vrot.lane.b32.xlu0 %v2873_v33, %s14332_s18 }
 0x4dd   :  { %v2447_v5 = vpop.f32.mrf.mxu0  ;;  %v2520_v6 = vpop.f32.mrf.mxu1 }
 0x4df   :  { %v13680_v43 = vpop.f32.mrf.mxu0  ;;  %v13685_v55 = vpop.f32.mrf.mxu1 }
 0x4e1   :  { %v2593_v34 = vpop.f32.mrf.mxu0  ;;  %v2666_v44 = vpop.f32.mrf.mxu1 }
 0x4e2   :  { %v2738_v46 = vcombine.low %v2447_v5, %v2593_v34  ;;  %v2739_v47 = vcombine.high %v2447_v5, %v2593_v34  ;;  %v2754_v49 = vcombine.low %v2520_v6, %v2666_v44  ;;  %v2755_v50 = vcombine.high %v2520_v6, %v2666_v44 }
 0x4e3   :  { %v13690_v22 = vpop.f32.mrf.mxu0  ;;  %v13695_v51 = vpop.f32.mrf.mxu1 }
 0x4e4   :  { %v2746_v9 = vrot.slane %v2738_v46, %v14574_v13  ;;  %v2753_v52 = vrot.slane %v2739_v47, %v14574_v13  ;;  %v2762_v53 = vrot.slane %v2754_v49, %v14574_v13  ;;  %v2769_v54 = vrot.slane %v2755_v50, %v14574_v13 }
 0x4e6   :  { %v2770_v62 = vcombine.low %v2746_v9, %v2762_v53  ;;  %v2771_v45 = vcombine.high %v2746_v9, %v2762_v53  ;;  %v2786_v56 = vcombine.low %v2753_v52, %v2769_v54  ;;  %v2787_v10 = vcombine.high %v2753_v52, %v2769_v54 }
 0x4e8   :  { %v2778_v11 = vrot.slane %v2770_v62, %v14581_v21  ;;  %v2785_v0 = vrot.slane %v2771_v45, %v14581_v21  ;;  %v2794_v14 = vrot.slane %v2786_v56, %v14581_v21  ;;  %v2801_v16 = vrot.slane %v2787_v10, %v14581_v21 }
 0x4ea   :  { %v2874_v23 = vcombine.low %v2778_v11, %v2785_v0  ;;  %v13095_v15 = vcombine.high %v2778_v11, %v2785_v0  ;;  %v2890_v25 = vcombine.low %v2794_v14, %v2801_v16  ;;  %v13096_v20 = vcombine.high %v2794_v14, %v2801_v16  ;;  %v14307_v11 = vld [vmem:[%s17048_s0 + $0x8] sm:$0xff]  ;;  %v14308_v16 = vld [vmem:[%s17048_s0] sm:$0xff] }
 0x4ec   :  { %v2881_v27 = vrot.slane %v2874_v23, %v14574_v13  ;;  %v2889_v58 = vrot.slane %v13095_v15, %v14574_v13  ;;  %v2897_v2 = vrot.slane %v2890_v25, %v14574_v13  ;;  %v2905_v28 = vrot.slane %v13096_v20, %v14574_v13 }
 0x4ed   :  { %v14965_v23 = vsub.s32 5, %v14397_v4 }
 0x4ee   :  { %v2906_v24 = vcombine.low %v2881_v27, %v2889_v58  ;;  %v2922_v29 = vcombine.low %v2897_v2, %v2905_v28  ;;  %v2907_v31 = vcombine.high %v2881_v27, %v2889_v58  ;;  %v2923_v8 = vcombine.high %v2897_v2, %v2905_v28 }
 0x4ef   :  { %v14969_v15 = vrot.slane %v14952_v12, %v14965_v23 }
 0x4f0   :  { %v2914_v30 = vrot.slane %v2906_v24, %v14581_v21  ;;  %v2930_v17 = vrot.slane %v2922_v29, %v14581_v21  ;;  %v2921_v33 = vrot.slane %v2907_v31, %v14581_v21  ;;  %v2937_v5 = vrot.slane %v2923_v8, %v14581_v21 }
 0x4f1   :  { %v3192_v25 = vadd.f32 %v14497_v35, %v14969_v15  ;;  %v14977_v20 = vadd.f32 %v14969_v15, %v14499_v36  ;;  %v14985_v26 = vadd.f32 %v14501_v37, %v14969_v15 }
 0x4f2   :  { %v2939_v32 = vcombine.high %v2914_v30, %v2930_v17  ;;  %v2938_v6 = vcombine.low %v2914_v30, %v2930_v17  ;;  %v2940_v43 = vcombine.low %v2921_v33, %v2937_v5  ;;  %v2941_v55 = vcombine.high %v2921_v33, %v2937_v5  ;;  %v13050_v17 = vld [vmem:[%s17051_s3 + $0x38] sm:$0xff]  ;;  %v13048_v33 = vld [vmem:[%s17051_s3 + $0x28] sm:$0xff]  ;;  %v13047_v5 = vld [vmem:[%s17051_s3 + $0x20] sm:$0xff] }
 0x4f3   :  { %13707 = vmatprep.subr.mxu1 %v13050_v17 }
 0x4f4   :  { %2946 = vrot.lane.b32.xlu1 %v2939_v32, %s14330_s16  ;;  %v13049_v32 = vld [vmem:[%s17051_s3 + $0x30] sm:$0xff]  ;;  %13708 = vmatpush3.msra.mxu1 %v13050_v17 }
 0x4f5   :  { %13709 = vmatprep.subr.mxu1 %v13049_v32 }
 0x4f6   :  { %13710 = vmatpush3.msra.mxu1 %v13049_v32 }
 0x4f7   :  { %13711 = vmatprep.subr.mxu1 %v13048_v33 }
 0x4f8   :  { %2954 = vrot.lane.b32.xlu1 %v2940_v43, %s14331_s17  ;;  %13712 = vmatpush3.msra.mxu1 %v13048_v33 }
 0x4f9   :  { %13713 = vmatprep.subr.mxu1 %v13047_v5 }
 0x4fa   :  { %13714 = vmatpush3.msra.mxu1 %v13047_v5 }
 0x4fb   :  { %13725 = vmatprep.subr.mxu1 %v17057_v61 }
 0x4fc   :  { %2962 = vrot.lane.b32.xlu1 %v2941_v55, %s14332_s18 }
 0x52b   :  { %v2945_v34 = vpop.permute.xlu0 %2944 }
 0x52c   :  { %v2966_v46 = vsel %vm1389_vm2, %v2870_v1, %v2945_v34  ;;  %v2977_v1 = vrot.slane %v14952_v12, %v14947_v63 }
 0x52f   :  { %v2953_v44 = vpop.permute.xlu0 %2952 }
 0x530   :  { %v2969_v47 = vsel %vm2968_vm3, %v2966_v46, %v2953_v44 }
 0x533   :  { %v2961_v49 = vpop.permute.xlu0 %2960 }
 0x534   :  { %v2972_v50 = vsel %vm2971_vm4, %v2969_v47, %v2961_v49 }
 0x535   :  { %13704 = vmatprep.mubr.msk.f32.mxu0 %vm51_vm0, %v2972_v50 }
 0x566   :  { %v2947_v22 = vpop.permute.xlu1 %2946 }
 0x567   :  { %v2967_v9 = vsel %vm1389_vm2, %v2938_v6, %v2947_v22 }
 0x56a   :  { %v2955_v51 = vpop.permute.xlu1 %2954 }
 0x56b   :  { %v2970_v52 = vsel %vm2968_vm3, %v2967_v9, %v2955_v51 }
 0x56e   :  { %v2963_v53 = vpop.permute.xlu1 %2962 }
 0x56f   :  { %v2973_v54 = vsel %vm2971_vm4, %v2970_v52, %v2963_v53 }
 0x570   :  { %13705 = vmatmul.mubr.msk.f32.vlgmr.msra.gmra.mxu0 %vm51_vm0, %v2973_v54 }
 0x571   :  { %13722 = vmatprep.mubr.msk.f32.mxu0 %vm14327_vm1, %v17057_v61 }
 0x630   :  { %v13706_v62 = vpop.f32.mrf.mxu0 }
 0x631   :  { %v3056_v45 = vadd.f32 %v13706_v62, %v2977_v1 }
 0x632   :  { %v3050_v56 = vpop.f32.mrf.mxu0 }
 0x633   :  { %v3051_v10 = vadd.f32 %v3050_v56, %v2977_v1  ;;  %v3060_v0 = vadd.f32 %v14307_v11, %v3056_v45 }
 0x635   :  { %v3064_v14 = vsel %vm51_vm0, %v3060_v0, 0.0  ;;  %v3059_v18 = vadd.f32 %v14308_v16, %v3051_v10 }
 0x636   :  { %3065 = vadd.xlane.f32.xlu1 %v3064_v14 }
 0x637   :  { %v3061_v19 = vsel %vm51_vm0, %v3059_v18, 0.0 }
 0x638   :  { %3062 = vadd.xlane.f32.xlu0 %v3061_v19 }
 0x647   :  { %3501 = vrot.lane.b32.xlu1 %v3192_v25, %s14322_s12 }
 0x64b   :  { %3525 = vrot.lane.b32.xlu1 %v3192_v25, %s14323_s13 }
 0x64f   :  { %3499 = vrot.lane.b32.xlu1 %v14977_v20, %s14322_s12 }
 0x653   :  { %3523 = vrot.lane.b32.xlu1 %v14977_v20, %s14323_s13 }
 0x657   :  { %3505 = vrot.lane.b32.xlu1 %v14985_v26, %s14322_s12 }
 0x6bf   :  { %v3066_v27 = vpop.xlane.xlu1 %3065 }
 0x6c0   :  { %v3069_v58 = vmul.f32 0.03125, %v3066_v27  ;;  %v338_v27 = vld [vmem:[%s17049_s7 + $0x8] sm:$0xff] }
 0x6c1   :  { %v3063_v2 = vpop.xlane.xlu0 %3062  ;;  %v3091_v33 = vrot.slane %v338_v27, %v14524_v48  ;;  %v3097_v5 = vrot.slane %v338_v27, %v14407_v7 }
 0x6c2   :  { %v3068_v28 = vmul.f32 0.03125, %v3063_v2  ;;  %v14989_v3 = vsub.f32 %v3060_v0, %v3069_v58 }
 0x6c3   :  { %v3502_v6 = vpop.permute.xlu1 %3501 }
 0x6c4   :  { %v14991_v24 = vsub.f32 %v3059_v18, %v3068_v28  ;;  %v3073_v8 = vmul.f32 %v14989_v3, %v14989_v3 }
 0x6c6   :  { %v3072_v29 = vmul.f32 %v14991_v24, %v14991_v24  ;;  %v3077_v30 = vsel %vm51_vm0, %v3073_v8, 0.0 }
 0x6c7   :  { %v3526_v43 = vpop.permute.xlu1 %3525 }
 0x6c8   :  { %v3074_v31 = vsel %vm51_vm0, %v3072_v29, 0.0  ;;  %v3619_v50 = vcombine.low %v3502_v6, %v3526_v43  ;;  %v3620_v22 = vcombine.high %v3502_v6, %v3526_v43 }
 0x6c9   :  { %3075 = vadd.xlane.f32.xlu0 %v3074_v31 }
 0x6ca   :  { %v3627_v45 = vrot.slane %v3619_v50, %v14574_v13  ;;  %v3634_v56 = vrot.slane %v3620_v22, %v14574_v13 }
 0x6cb   :  { %v3500_v34 = vpop.permute.xlu1 %3499 }
 0x6cd   :  { %3078 = vadd.xlane.f32.xlu0 %v3077_v30 }
 0x6cf   :  { %v3524_v51 = vpop.permute.xlu1 %3523 }
 0x6d0   :  { %v3551_v1 = vcombine.low %v3500_v34, %v3524_v51  ;;  %v3552_v62 = vcombine.high %v3500_v34, %v3524_v51 }
 0x6d2   :  { %v3566_v58 = vrot.slane %v3552_v62, %v14574_v13 }
 0x6e3   :  { %3513 = vrot.lane.b32.xlu0 %v3192_v25, %s14321_s4 }
 0x6e7   :  { %3511 = vrot.lane.b32.xlu0 %v14977_v20, %s14321_s4 }
 0x752   :  { %v3076_v55 = vpop.xlane.xlu0 %3075 }
 0x753   :  { %v3080_v44 = vmul.f32 0.03125, %v3076_v55 }
 0x755   :  { %v3082_v46 = vadd.f32 1e-05, %v3080_v44 }
 0x756   :  { %v3079_v47 = vpop.xlane.xlu0 %3078 }
 0x757   :  { %v3081_v49 = vmul.f32 0.03125, %v3079_v47  ;;  %14182 = vrsqrt.f32 %v3082_v46 }
 0x759   :  { %v3083_v9 = vadd.f32 1e-05, %v3081_v49 }
 0x75a   :  { %v3514_v52 = vpop.permute.xlu0 %3513 }
 0x75b   :  { %14184 = vrsqrt.f32 %v3083_v9  ;;  %v3603_v53 = vcombine.low %v3192_v25, %v3514_v52  ;;  %v3604_v54 = vcombine.high %v3192_v25, %v3514_v52  ;;  %v3559_v25 = vrot.slane %v3551_v1, %v14574_v13 }
 0x75d   :  { %v3611_v10 = vrot.slane %v3603_v53, %v14574_v13  ;;  %v3618_v11 = vrot.slane %v3604_v54, %v14574_v13 }
 0x75e   :  { %v3512_v0 = vpop.permute.xlu0 %3511 }
 0x75f   :  { %v3635_v14 = vcombine.low %v3611_v10, %v3627_v45  ;;  %v3636_v16 = vcombine.high %v3611_v10, %v3627_v45  ;;  %v3651_v18 = vcombine.low %v3618_v11, %v3634_v56  ;;  %v3652_v19 = vcombine.high %v3618_v11, %v3634_v56 }
 0x760   :  { %v3535_v2 = vcombine.low %v14977_v20, %v3512_v0  ;;  %v3536_v28 = vcombine.high %v14977_v20, %v3512_v0 }
 0x761   :  { %v3643_v29 = vrot.slane %v3635_v14, %v14581_v21  ;;  %v3650_v31 = vrot.slane %v3636_v16, %v14581_v21  ;;  %v3659_v8 = vrot.slane %v3651_v18, %v14581_v21  ;;  %v3666_v30 = vrot.slane %v3652_v19, %v14581_v21 }
 0x762   :  { %v3543_v17 = vrot.slane %v3535_v2, %v14574_v13  ;;  %v3550_v32 = vrot.slane %v3536_v28, %v14574_v13 }
 0x763   :  { %v3875_v6 = vcombine.low %v3643_v29, %v3650_v31  ;;  %v13107_v43 = vcombine.high %v3643_v29, %v3650_v31  ;;  %v3891_v55 = vcombine.low %v3659_v8, %v3666_v30  ;;  %v13108_v20 = vcombine.high %v3659_v8, %v3666_v30 }
 0x764   :  { %v3567_v34 = vcombine.low %v3543_v17, %v3559_v25  ;;  %v3568_v44 = vcombine.high %v3543_v17, %v3559_v25  ;;  %v3583_v46 = vcombine.low %v3550_v32, %v3566_v58  ;;  %v3584_v47 = vcombine.high %v3550_v32, %v3566_v58  ;;  %v14183_v9 = vpop.eup %14182 }
 0x765   :  { %v3882_v49 = vrot.slane %v3875_v6, %v14574_v13  ;;  %v3890_v50 = vrot.slane %v13107_v43, %v14574_v13  ;;  %v3898_v22 = vrot.slane %v3891_v55, %v14574_v13  ;;  %v3906_v51 = vrot.slane %v13108_v20, %v14574_v13 }
 0x766   :  { %v3575_v52 = vrot.slane %v3567_v34, %v14581_v21  ;;  %v3582_v53 = vrot.slane %v3568_v44, %v14581_v21  ;;  %v3591_v54 = vrot.slane %v3583_v46, %v14581_v21  ;;  %v3598_v1 = vrot.slane %v3584_v47, %v14581_v21  ;;  %v14309_v47 = vld [vmem:[%s17048_s0 + $0x10] sm:$0xff] }
 0x767   :  { %v3907_v62 = vcombine.low %v3882_v49, %v3890_v50  ;;  %v3908_v45 = vcombine.high %v3882_v49, %v3890_v50  ;;  %v3923_v56 = vcombine.low %v3898_v22, %v3906_v51  ;;  %v3924_v10 = vcombine.high %v3898_v22, %v3906_v51  ;;  %v14310_v50 = vld [vmem:[%s17048_s0 + $0x18] sm:$0xff] }
 0x768   :  { %v14185_v11 = vpop.eup %14184  ;;  %v3807_v0 = vcombine.low %v3575_v52, %v3582_v53  ;;  %v13105_v14 = vcombine.high %v3575_v52, %v3582_v53  ;;  %v3823_v16 = vcombine.low %v3591_v54, %v3598_v1  ;;  %v13106_v18 = vcombine.high %v3591_v54, %v3598_v1 }
 0x769   :  { %v3087_v19 = vmul.f32 %v14185_v11, %v14989_v3  ;;  %v3086_v27 = vmul.f32 %v14183_v9, %v14991_v24  ;;  %v3915_v25 = vrot.slane %v3907_v62, %v14581_v21  ;;  %v3931_v58 = vrot.slane %v3923_v56, %v14581_v21 }
 0x76a   :  { %v3814_v2 = vrot.slane %v3807_v0, %v14574_v13  ;;  %v3822_v28 = vrot.slane %v13105_v14, %v14574_v13  ;;  %v3830_v29 = vrot.slane %v3823_v16, %v14574_v13  ;;  %v3838_v31 = vrot.slane %v13106_v18, %v14574_v13 }
 0x76b   :  { %v3092_v8 = vmul.f32 %v3091_v33, %v3086_v27  ;;  %v3093_v30 = vmul.f32 %v3091_v33, %v3087_v19  ;;  %v3939_v17 = vcombine.low %v3915_v25, %v3931_v58  ;;  %v15056_v20 = vrot.slane %v3908_v45, %v14581_v21 }
 0x76c   :  { %v3839_v32 = vcombine.low %v3814_v2, %v3822_v28  ;;  %v3840_v6 = vcombine.high %v3814_v2, %v3822_v28  ;;  %v3855_v3 = vcombine.low %v3830_v29, %v3838_v31  ;;  %v3856_v43 = vcombine.high %v3830_v29, %v3838_v31 }
 0x76d   :  { %v15050_v24 = vadd.f32 %v3097_v5, %v3092_v8  ;;  %v15052_v55 = vadd.f32 %v3097_v5, %v3093_v30  ;;  %13719 = vmatpush3.xpose.msk.msra.mxu0 %vm1389_vm2, %v3939_v17  ;;  %v15059_v34 = vrot.slane %v3924_v10, %v14581_v21  ;;  %v3940_v1 = vcombine.high %v3915_v25, %v3931_v58  ;;  %v3506_v25 = vpop.permute.xlu1 %3505 }
 0x76e   :  { %13720 = vmatprep.subr.mxu0 %v17057_v61  ;;  %v3847_v33 = vrot.slane %v3839_v32, %v14581_v21  ;;  %v3863_v44 = vrot.slane %v3855_v3, %v14581_v21  ;;  %v15065_v46 = vrot.slane %v3840_v6, %v14581_v21  ;;  %v15068_v5 = vrot.slane %v3856_v43, %v14581_v21 }
 0x76f   :  { %v3100_v49 = vadd.f32 %v14309_v47, %v15050_v24  ;;  %v3101_v22 = vadd.f32 %v14310_v50, %v15052_v55  ;;  %v15097_v45 = vsub.s32 4, %v14397_v4  ;;  %v15108_v14 = vadd.f32 %v14969_v15, %v14503_v38 }
 0x770   :  { %v3871_v52 = vcombine.low %v3847_v33, %v3863_v44  ;;  %v3872_v62 = vcombine.high %v3847_v33, %v3863_v44  ;;  %v15115_v16 = vsub.s32 6, %v14397_v4 }
 0x771   :  { %13715 = vmatprep.mubr.msk.f32.mxu1 %vm51_vm0, %v3100_v49  ;;  %v3105_v10 = vrot.slane %v14952_v12, %v15097_v45 }
 0x772   :  { %13716 = vmatmul.mubr.msk.f32.vlgmr.msra.gmra.mxu1 %vm51_vm0, %v3101_v22  ;;  %13721 = vmatpush3.xpose.msk.msra.mxu0 %vm1389_vm2, %v3871_v52  ;;  %v15125_v15 = vrot.slane %v14952_v12, %v15115_v16 }
 0x773   :  { %13726 = vmatpush3.xpose.msk.msra.mxu1 %vm1389_vm2, %v3940_v1  ;;  %13729 = vmatprep.mubr.msk.f32.mxu1 %vm14327_vm1, %v17057_v61 }
 0x774   :  { %13727 = vmatprep.subr.mxu1 %v17057_v61  ;;  %13732 = vmatprep.subr.mxu0 %v17057_v61  ;;  %v15133_v19 = vadd.f32 %v14505_v39, %v15125_v15  ;;  %v15145_v12 = vadd.f32 %v15125_v15, %v14507_v40  ;;  %v15153_v27 = vadd.f32 %v14509_v41, %v15125_v15 }
 0x777   :  { %13728 = vmatpush3.xpose.msk.msra.mxu1 %vm1389_vm2, %v3872_v62 }
 0x778   :  { %13739 = vmatprep.subr.mxu1 %v17057_v61 }
 0x832   :  { %v13717_v56 = vpop.f32.mrf.mxu1 }
 0x833   :  { %v15117_v18 = vadd.f32 %v13717_v56, %v3105_v10 }
 0x834   :  { %v3178_v11 = vpop.f32.mrf.mxu1 }
 0x835   :  { %v3179_v0 = vadd.f32 %v3178_v11, %v3105_v10 }
 0x837   :  { %3211 = vrot.lane.b32.xlu1 %v3179_v0, %s14321_s4  ;;  %3205 = vrot.lane.b32.xlu0 %v3179_v0, %s14322_s12 }
 0x83b   :  { %3529 = vrot.lane.b32.xlu1 %v14985_v26, %s14323_s13  ;;  %3217 = vrot.lane.b32.xlu0 %v3179_v0, %s14323_s13 }
 0x83f   :  { %3515 = vrot.lane.b32.xlu1 %v15108_v14, %s14321_s4  ;;  %3517 = vrot.lane.b32.xlu0 %v14985_v26, %s14321_s4 }
 0x843   :  { %3207 = vrot.lane.b32.xlu1 %v15117_v18, %s14322_s12  ;;  %3503 = vrot.lane.b32.xlu0 %v15108_v14, %s14322_s12 }
 0x847   :  { %3219 = vrot.lane.b32.xlu1 %v15117_v18, %s14323_s13  ;;  %3527 = vrot.lane.b32.xlu0 %v15108_v14, %s14323_s13 }
 0x84b   :  { %4085 = vrot.lane.b32.xlu1 %v15133_v19, %s14322_s12  ;;  %3213 = vrot.lane.b32.xlu0 %v15117_v18, %s14321_s4 }
 0x84f   :  { %4109 = vrot.lane.b32.xlu1 %v15133_v19, %s14323_s13  ;;  %4097 = vrot.lane.b32.xlu0 %v15133_v19, %s14321_s4 }
 0x853   :  { %4095 = vrot.lane.b32.xlu1 %v15145_v12, %s14321_s4  ;;  %4083 = vrot.lane.b32.xlu0 %v15145_v12, %s14322_s12 }
 0x857   :  { %4107 = vrot.lane.b32.xlu1 %v15145_v12, %s14323_s13  ;;  %4089 = vrot.lane.b32.xlu0 %v15153_v27, %s14322_s12 }
 0x85b   :  { %4101 = vrot.lane.b32.xlu1 %v15153_v27, %s14321_s4 }
 0x8a9   :  { %v3212_v58 = vpop.permute.xlu1 %3211  ;;  %v3206_v2 = vpop.permute.xlu0 %3205 }
 0x8aa   :  { %v3223_v28 = vcombine.low %v3179_v0, %v3212_v58  ;;  %v3224_v29 = vcombine.high %v3179_v0, %v3212_v58 }
 0x8ac   :  { %v3231_v3 = vrot.slane %v3223_v28, %v14574_v13  ;;  %v3238_v43 = vrot.slane %v3224_v29, %v14574_v13 }
 0x8ad   :  { %v3530_v31 = vpop.permute.xlu1 %3529  ;;  %v3218_v8 = vpop.permute.xlu0 %3217 }
 0x8ae   :  { %v3239_v30 = vcombine.low %v3206_v2, %v3218_v8  ;;  %v3240_v17 = vcombine.high %v3206_v2, %v3218_v8  ;;  %v3755_v32 = vcombine.low %v3506_v25, %v3530_v31  ;;  %v3756_v6 = vcombine.high %v3506_v25, %v3530_v31 }
 0x8b0   :  { %v3247_v33 = vrot.slane %v3239_v30, %v14574_v13  ;;  %v3254_v44 = vrot.slane %v3240_v17, %v14574_v13  ;;  %v3763_v62 = vrot.slane %v3755_v32, %v14574_v13  ;;  %v3770_v56 = vrot.slane %v3756_v6, %v14574_v13 }
 0x8b1   :  { %v3516_v47 = vpop.permute.xlu1 %3515  ;;  %v3518_v49 = vpop.permute.xlu0 %3517 }
 0x8b2   :  { %v3255_v50 = vcombine.low %v3231_v3, %v3247_v33  ;;  %v3256_v22 = vcombine.high %v3231_v3, %v3247_v33  ;;  %v3271_v52 = vcombine.low %v3238_v43, %v3254_v44  ;;  %v3272_v1 = vcombine.high %v3238_v43, %v3254_v44 }
 0x8b3   :  { %v3739_v10 = vcombine.low %v14985_v26, %v3518_v49  ;;  %v3740_v11 = vcombine.high %v14985_v26, %v3518_v49  ;;  %v3671_v28 = vcombine.low %v15108_v14, %v3516_v47  ;;  %v3672_v29 = vcombine.high %v15108_v14, %v3516_v47 }
 0x8b4   :  { %v3263_v0 = vrot.slane %v3255_v50, %v14581_v21  ;;  %v3270_v25 = vrot.slane %v3256_v22, %v14581_v21  ;;  %v3279_v58 = vrot.slane %v3271_v52, %v14581_v21  ;;  %v3286_v2 = vrot.slane %v3272_v1, %v14581_v21 }
 0x8b5   :  { %v3747_v31 = vrot.slane %v3739_v10, %v14574_v13  ;;  %v3754_v8 = vrot.slane %v3740_v11, %v14574_v13  ;;  %v3208_v30 = vpop.permute.xlu1 %3207  ;;  %v3504_v17 = vpop.permute.xlu0 %3503 }
 0x8b6   :  { %v3359_v32 = vcombine.low %v3263_v0, %v3270_v25  ;;  %v13101_v26 = vcombine.high %v3263_v0, %v3270_v25  ;;  %v3375_v6 = vcombine.low %v3279_v58, %v3286_v2  ;;  %v13102_v3 = vcombine.high %v3279_v58, %v3286_v2 }
 0x8b7   :  { %v3771_v43 = vcombine.low %v3747_v31, %v3763_v62  ;;  %v3772_v33 = vcombine.high %v3747_v31, %v3763_v62  ;;  %v3787_v44 = vcombine.low %v3754_v8, %v3770_v56  ;;  %v3788_v49 = vcombine.high %v3754_v8, %v3770_v56 }
 0x8b8   :  { %v15178_v50 = vrot.slane %v3359_v32, %v14574_v13  ;;  %v15181_v22 = vrot.slane %v13101_v26, %v14574_v13  ;;  %v15184_v14 = vrot.slane %v3375_v6, %v14574_v13  ;;  %v15187_v47 = vrot.slane %v13102_v3, %v14574_v13 }
 0x8b9   :  { %v3779_v52 = vrot.slane %v3771_v43, %v14581_v21  ;;  %v3786_v1 = vrot.slane %v3772_v33, %v14581_v21  ;;  %v3795_v62 = vrot.slane %v3787_v44, %v14581_v21  ;;  %v3802_v56 = vrot.slane %v3788_v49, %v14581_v21  ;;  %v3220_v10 = vpop.permute.xlu1 %3219  ;;  %v3528_v11 = vpop.permute.xlu0 %3527 }
 0x8ba   :  { %v3679_v0 = vrot.slane %v3671_v28, %v14574_v13  ;;  %v3686_v25 = vrot.slane %v3672_v29, %v14574_v13  ;;  %v3307_v32 = vcombine.low %v3208_v30, %v3220_v10  ;;  %v3308_v26 = vcombine.high %v3208_v30, %v3220_v10 }
 0x8bb   :  { %v4011_v58 = vcombine.low %v3779_v52, %v3786_v1  ;;  %v13111_v2 = vcombine.high %v3779_v52, %v3786_v1  ;;  %v4027_v31 = vcombine.low %v3795_v62, %v3802_v56  ;;  %v13112_v8 = vcombine.high %v3795_v62, %v3802_v56 }
 0x8bc   :  { %v3687_v6 = vcombine.low %v3504_v17, %v3528_v11  ;;  %v3688_v3 = vcombine.high %v3504_v17, %v3528_v11  ;;  %v3391_v43 = vcombine.low %v15178_v50, %v15181_v22  ;;  %v3407_v44 = vcombine.low %v15184_v14, %v15187_v47 }
 0x8bd   :  { %v15204_v29 = vrot.slane %v4011_v58, %v14574_v13  ;;  %v15207_v49 = vrot.slane %v13111_v2, %v14574_v13  ;;  %v15211_v52 = vpop.permute.xlu1 %4085  ;;  %v3214_v1 = vpop.permute.xlu0 %3213  ;;  %v15214_v62 = vrot.slane %v4027_v31, %v14574_v13  ;;  %v15217_v56 = vrot.slane %v13112_v8, %v14574_v13 }
 0x8be   :  { %v3695_v30 = vrot.slane %v3687_v6, %v14574_v13  ;;  %v3702_v17 = vrot.slane %v3688_v3, %v14574_v13  ;;  %v3315_v10 = vrot.slane %v3307_v32, %v14574_v13  ;;  %v3322_v11 = vrot.slane %v3308_v26, %v14574_v13 }
 0x8bf   :  { %v3291_v6 = vcombine.low %v15117_v18, %v3214_v1  ;;  %v3292_v3 = vcombine.high %v15117_v18, %v3214_v1  ;;  %v3399_v54 = vrot.slane %v3391_v43, %v14581_v21  ;;  %v3415_v31 = vrot.slane %v3407_v44, %v14581_v21 }
 0x8c0   :  { %v3703_v58 = vcombine.low %v3679_v0, %v3695_v30  ;;  %v3704_v2 = vcombine.high %v3679_v0, %v3695_v30  ;;  %v3719_v28 = vcombine.low %v3686_v25, %v3702_v17  ;;  %v3720_v33 = vcombine.high %v3686_v25, %v3702_v17 }
 0x8c1   :  { %v3299_v0 = vrot.slane %v3291_v6, %v14574_v13  ;;  %v3306_v25 = vrot.slane %v3292_v3, %v14574_v13  ;;  %v3423_v30 = vcombine.low %v3399_v54, %v3415_v31  ;;  %v3424_v17 = vcombine.high %v3399_v54, %v3415_v31  ;;  %v4110_v9 = vpop.permute.xlu1 %4109 }
 0x8c2   :  { %v3711_v53 = vrot.slane %v3703_v58, %v14581_v21  ;;  %v3718_v8 = vrot.slane %v3704_v2, %v14581_v21  ;;  %v3727_v32 = vrot.slane %v3719_v28, %v14581_v21  ;;  %v3734_v26 = vrot.slane %v3720_v33, %v14581_v21 }
 0x8c3   :  { %v3323_v44 = vcombine.low %v3299_v0, %v3315_v10  ;;  %v3324_v51 = vcombine.high %v3299_v0, %v3315_v10  ;;  %v3339_v58 = vcombine.low %v3306_v25, %v3322_v11  ;;  %v3340_v41 = vcombine.high %v3306_v25, %v3322_v11  ;;  %13723 = vmatmul.mubr.msk.f32.vlgmr.msra.gmra.mxu0 %vm1389_vm2, %v3423_v30 }
 0x8c4   :  { %v3943_v61 = vcombine.low %v3711_v53, %v3718_v8  ;;  %v13109_v18 = vcombine.high %v3711_v53, %v3718_v8  ;;  %v3959_v1 = vcombine.low %v3727_v32, %v3734_v26  ;;  %v13110_v43 = vcombine.high %v3727_v32, %v3734_v26  ;;  %13730 = vmatmul.mubr.msk.f32.vlgmr.msra.gmra.mxu1 %vm1389_vm2, %v3424_v17 }
 0x8c5   :  { %v4043_v33 = vcombine.low %v15204_v29, %v15207_v49  ;;  %v4044_v28 = vcombine.high %v15204_v29, %v15207_v49  ;;  %v3331_v54 = vrot.slane %v3323_v44, %v14581_v21  ;;  %v3338_v10 = vrot.slane %v3324_v51, %v14581_v21 }
 0x8c6   :  { %v15237_v2 = vrot.slane %v3943_v61, %v14574_v13  ;;  %v15240_v53 = vrot.slane %v13109_v18, %v14574_v13  ;;  %v3347_v11 = vrot.slane %v3339_v58, %v14581_v21  ;;  %v3354_v6 = vrot.slane %v3340_v41, %v14581_v21  ;;  %v4098_v61 = vpop.permute.xlu0 %4097  ;;  %v4096_v58 = vpop.permute.xlu1 %4095 }
 0x8c7   :  { %v17061_v3 = vcombine.low %v15056_v20, %v15059_v34  ;;  %v4059_v31 = vcombine.low %v15214_v62, %v15217_v56  ;;  %v4060_v8 = vcombine.high %v15214_v62, %v15217_v56  ;;  %v15256_v32 = vrot.slane %v3959_v1, %v14574_v13 }
 0x8c8   :  { %v15259_v51 = vrot.slane %v13110_v43, %v14574_v13  ;;  %v17062_v41 = vcombine.high %v15056_v20, %v15059_v34  ;;  %v3427_v26 = vcombine.low %v3331_v54, %v3338_v10  ;;  %v13103_v0 = vcombine.high %v3331_v54, %v3338_v10 }
 0x8c9   :  { %13733 = vmatpush3.xpose.msk.msra.mxu0 %vm1389_vm2, %v17061_v3  ;;  %v3443_v25 = vcombine.low %v3347_v11, %v3354_v6  ;;  %v13104_v30 = vcombine.high %v3347_v11, %v3354_v6  ;;  %v17063_v17 = vmov 0.0   ;;  %v4203_v18 = vcombine.low %v15211_v52, %v4110_v9 }
 0x8ca   :  { %13740 = vmatpush3.xpose.msk.msra.mxu1 %vm1389_vm2, %v17062_v41  ;;  %13734 = vmatprep.subr.mxu0 %v17063_v17  ;;  %v4204_v44 = vcombine.high %v15211_v52, %v4110_v9  ;;  %v4187_v1 = vcombine.low %v15133_v19, %v4098_v61  ;;  %v4188_v43 = vcombine.high %v15133_v19, %v4098_v61 }
 0x8cb   :  { %13741 = vmatprep.subr.mxu1 %v17063_v17  ;;  %v3975_v20 = vcombine.low %v15237_v2, %v15240_v53  ;;  %v3976_v34 = vcombine.high %v15237_v2, %v15240_v53  ;;  %v15276_v54 = vrot.slane %v3427_v26, %v14574_v13  ;;  %v15279_v10 = vrot.slane %v13103_v0, %v14574_v13 }
 0x8cc   :  { %v17064_v9 = vcombine.low %v15065_v46, %v15068_v5  ;;  %v4211_v19 = vrot.slane %v4203_v18, %v14574_v13  ;;  %v4218_v52 = vrot.slane %v4204_v44, %v14574_v13  ;;  %v4195_v11 = vrot.slane %v4187_v1, %v14574_v13  ;;  %13736 = vmatprep.mubr.msk.f32.mxu0 %vm14327_vm1, %v17063_v17 }
 0x8cd   :  { %v4202_v6 = vrot.slane %v4188_v43, %v14574_v13  ;;  %v17065_v3 = vcombine.high %v15065_v46, %v15068_v5  ;;  %v3991_v61 = vcombine.low %v15256_v32, %v15259_v51  ;;  %v3992_v41 = vcombine.high %v15256_v32, %v15259_v51  ;;  %13743 = vmatprep.mubr.msk.f32.mxu1 %vm14327_vm1, %v17063_v17 }
 0x8ce   :  { %13735 = vmatpush3.xpose.msk.msra.mxu0 %vm1389_vm2, %v17064_v9  ;;  %v15298_v26 = vrot.slane %v3443_v25, %v14574_v13  ;;  %v15301_v0 = vrot.slane %v13104_v30, %v14574_v13  ;;  %v4219_v18 = vcombine.low %v4195_v11, %v4211_v19  ;;  %v4220_v44 = vcombine.high %v4195_v11, %v4211_v19 }
 0x8cf   :  { %13742 = vmatpush3.xpose.msk.msra.mxu1 %vm1389_vm2, %v17065_v3  ;;  %v4235_v46 = vcombine.low %v4202_v6, %v4218_v52  ;;  %v4236_v5 = vcombine.high %v4202_v6, %v4218_v52  ;;  %v4119_v1 = vcombine.low %v15145_v12, %v4096_v58  ;;  %v4120_v43 = vcombine.high %v15145_v12, %v4096_v58 }
 0x8d0   :  { %v17066_v25 = vcombine.high %v15178_v50, %v15181_v22  ;;  %v17067_v9 = vcombine.high %v15184_v14, %v15187_v47  ;;  %13746 = vmatprep.subr.mxu0 %v17063_v17  ;;  %v3459_v19 = vcombine.low %v15276_v54, %v15279_v10  ;;  %v3460_v52 = vcombine.high %v15276_v54, %v15279_v10  ;;  %v4108_v50 = vpop.permute.xlu1 %4107 }
 0x8d1   :  { %v15323_v12 = vrot.slane %v4219_v18, %v14581_v21  ;;  %v15326_v58 = vrot.slane %v4220_v44, %v14581_v21  ;;  %13753 = vmatprep.subr.mxu1 %v17063_v17  ;;  %v3475_v22 = vcombine.low %v15298_v26, %v15301_v0  ;;  %v3476_v14 = vcombine.high %v15298_v26, %v15301_v0 }
 0x8d2   :  { %v3406_v30 = vrot.slane %v17066_v25, %v14581_v21  ;;  %v3422_v3 = vrot.slane %v17067_v9, %v14581_v21  ;;  %v15334_v6 = vrot.slane %v4235_v46, %v14581_v21  ;;  %v15337_v18 = vrot.slane %v4236_v5, %v14581_v21  ;;  %v4084_v9 = vpop.permute.xlu0 %4083 }
 0x8d3   :  { %v4127_v44 = vrot.slane %v4119_v1, %v14574_v13  ;;  %v4134_v25 = vrot.slane %v4120_v43, %v14574_v13  ;;  %v4051_v26 = vrot.slane %v4043_v33, %v14581_v21  ;;  %v4067_v0 = vrot.slane %v4059_v31, %v14581_v21 }
 0x8d4   :  { %v3425_v47 = vcombine.low %v3406_v30, %v3422_v3  ;;  %v3426_v11 = vcombine.high %v3406_v30, %v3422_v3  ;;  %v4135_v46 = vcombine.low %v4084_v9, %v4108_v50  ;;  %v4459_v5 = vcombine.low %v15323_v12, %v15326_v58 }
 0x8d5   :  { %v4136_v30 = vcombine.high %v4084_v9, %v4108_v50  ;;  %v3983_v1 = vrot.slane %v3975_v20, %v14581_v21  ;;  %v3999_v43 = vrot.slane %v3991_v61, %v14581_v21  ;;  %v13115_v3 = vcombine.high %v15323_v12, %v15326_v58 }
 0x8d6   :  { %13737 = vmatmul.mubr.msk.f32.vlgmr.msra.gmra.mxu0 %vm1389_vm2, %v3425_v47  ;;  %13744 = vmatmul.mubr.msk.f32.vlgmr.msra.gmra.mxu1 %vm1389_vm2, %v3426_v11  ;;  %v4075_v47 = vcombine.low %v4051_v26, %v4067_v0  ;;  %v4076_v11 = vcombine.high %v4051_v26, %v4067_v0  ;;  %v4143_v33 = vrot.slane %v4135_v46, %v14574_v13 }
 0x8d7   :  { %13750 = vmatprep.mubr.msk.f32.mxu0 %vm14327_vm1, %v17063_v17  ;;  %13757 = vmatprep.mubr.msk.f32.mxu1 %vm14327_vm1, %v17063_v17  ;;  %v4475_v31 = vcombine.low %v15334_v6, %v15337_v18  ;;  %v13116_v20 = vcombine.high %v15334_v6, %v15337_v18  ;;  %v4150_v61 = vrot.slane %v4136_v30, %v14574_v13 }
 0x8d8   :  { %v4007_v50 = vcombine.low %v3983_v1, %v3999_v43  ;;  %13747 = vmatpush3.xpose.msk.msra.mxu0 %vm1389_vm2, %v4075_v47  ;;  %13754 = vmatpush3.xpose.msk.msra.mxu1 %vm1389_vm2, %v4076_v11  ;;  %v4151_v12 = vcombine.low %v4127_v44, %v4143_v33  ;;  %v4152_v58 = vcombine.high %v4127_v44, %v4143_v33 }
 0x8d9   :  { %v4008_v9 = vcombine.high %v3983_v1, %v3999_v43  ;;  %v4167_v26 = vcombine.low %v4134_v25, %v4150_v61  ;;  %v4168_v0 = vcombine.high %v4134_v25, %v4150_v61  ;;  %13748 = vmatprep.subr.mxu0 %v17063_v17  ;;  %13755 = vmatprep.subr.mxu1 %v17063_v17 }
 0x8da   :  { %v3467_v46 = vrot.slane %v3459_v19, %v14581_v21  ;;  %v4159_v6 = vrot.slane %v4151_v12, %v14581_v21  ;;  %v4166_v18 = vrot.slane %v4152_v58, %v14581_v21  ;;  %v3483_v30 = vrot.slane %v3475_v22, %v14581_v21 }
 0x8db   :  { %v4058_v44 = vrot.slane %v4044_v28, %v14581_v21  ;;  %v4175_v1 = vrot.slane %v4167_v26, %v14581_v21  ;;  %v4182_v25 = vrot.slane %v4168_v0, %v14581_v21  ;;  %v4074_v19 = vrot.slane %v4060_v8, %v14581_v21 }
 0x8dc   :  { %v3990_v43 = vrot.slane %v3976_v34, %v14581_v21  ;;  %v4391_v22 = vcombine.low %v4159_v6, %v4166_v18  ;;  %v13113_v47 = vcombine.high %v4159_v6, %v4166_v18  ;;  %13749 = vmatpush3.xpose.msk.msra.mxu0 %vm1389_vm2, %v4007_v50  ;;  %13756 = vmatpush3.xpose.msk.msra.mxu1 %vm1389_vm2, %v4008_v9 }
 0x8dd   :  { %v3491_v29 = vcombine.low %v3467_v46, %v3483_v30  ;;  %v4407_v49 = vcombine.low %v4175_v1, %v4182_v25  ;;  %v13114_v28 = vcombine.high %v4175_v1, %v4182_v25  ;;  %13760 = vmatprep.subr.mxu0 %v17063_v17  ;;  %13767 = vmatprep.subr.mxu1 %v17063_v17 }
 0x8de   :  { %v3492_v62 = vcombine.high %v3467_v46, %v3483_v30  ;;  %v4077_v56 = vcombine.low %v4058_v44, %v4074_v19  ;;  %v4078_v8 = vcombine.high %v4058_v44, %v4074_v19  ;;  %v4006_v2 = vrot.slane %v3992_v41, %v14581_v21 }
 0x8df   :  { %v3474_v53 = vrot.slane %v3460_v52, %v14581_v21  ;;  %13751 = vmatmul.mubr.msk.f32.vlgmr.msra.gmra.mxu0 %vm1389_vm2, %v3491_v29  ;;  %v3490_v34 = vrot.slane %v3476_v14, %v14581_v21  ;;  %v4466_v11 = vrot.slane %v4459_v5, %v14574_v13  ;;  %v4474_v33 = vrot.slane %v13115_v3, %v14574_v13 }
 0x8e0   :  { %13758 = vmatmul.mubr.msk.f32.vlgmr.msra.gmra.mxu1 %vm1389_vm2, %v3492_v62  ;;  %13761 = vmatpush3.xpose.msk.msra.mxu0 %vm1389_vm2, %v4077_v56  ;;  %v4009_v32 = vcombine.low %v3990_v43, %v4006_v2  ;;  %v4010_v51 = vcombine.high %v3990_v43, %v4006_v2  ;;  %v4482_v41 = vrot.slane %v4475_v31, %v14574_v13 }
 0x8e1   :  { %13768 = vmatpush3.xpose.msk.msra.mxu1 %vm1389_vm2, %v4078_v8  ;;  %13762 = vmatprep.subr.mxu0 %v17063_v17  ;;  %v3493_v54 = vcombine.low %v3474_v53, %v3490_v34  ;;  %v3494_v10 = vcombine.high %v3474_v53, %v3490_v34  ;;  %v4490_v52 = vrot.slane %v13116_v20, %v14574_v13 }
 0x8e2   :  { %13769 = vmatprep.subr.mxu1 %v17063_v17  ;;  %13764 = vmatprep.mubr.msk.f32.mxu0 %vm14327_vm1, %v17063_v17  ;;  %v4491_v14 = vcombine.low %v4466_v11, %v4474_v33  ;;  %v4398_v5 = vrot.slane %v4391_v22, %v14574_v13  ;;  %v4406_v3 = vrot.slane %v13113_v47, %v14574_v13 }
 0x8e3   :  { %13771 = vmatprep.mubr.msk.f32.mxu1 %vm14327_vm1, %v17063_v17  ;;  %v4507_v31 = vcombine.low %v4482_v41, %v4490_v52  ;;  %v4414_v61 = vrot.slane %v4407_v49, %v14574_v13  ;;  %v4422_v50 = vrot.slane %v13114_v28, %v14574_v13  ;;  %v4492_v12 = vcombine.high %v4466_v11, %v4474_v33 }
 0x8e4   :  { %13763 = vmatpush3.xpose.msk.msra.mxu0 %vm1389_vm2, %v4009_v32  ;;  %v4499_v20 = vrot.slane %v4491_v14, %v14581_v21  ;;  %v4423_v58 = vcombine.low %v4398_v5, %v4406_v3  ;;  %v4508_v9 = vcombine.high %v4482_v41, %v4490_v52  ;;  %v4424_v30 = vcombine.high %v4398_v5, %v4406_v3 }
 0x8e5   :  { %13770 = vmatpush3.xpose.msk.msra.mxu1 %vm1389_vm2, %v4010_v51  ;;  %13774 = vmatprep.subr.mxu0 %v17063_v17  ;;  %v4515_v26 = vrot.slane %v4507_v31, %v14581_v21  ;;  %v4439_v0 = vcombine.low %v4414_v61, %v4422_v50  ;;  %v15424_v46 = vrot.slane %v4492_v12, %v14581_v21 }
 0x8e6   :  { %13781 = vmatprep.subr.mxu1 %v17063_v17  ;;  %v4431_v6 = vrot.slane %v4423_v58, %v14581_v21  ;;  %v15428_v18 = vrot.slane %v4508_v9, %v14581_v21  ;;  %v4440_v44 = vcombine.high %v4414_v61, %v4422_v50  ;;  %v15442_v47 = vrot.slane %v4424_v30, %v14581_v21  ;;  %v15471_v30 = vpop.permute.xlu0 %4089 }
 0x8e7   :  { %13765 = vmatmul.mubr.msk.f32.vlgmr.msra.gmra.mxu0 %vm1389_vm2, %v3493_v54  ;;  %v4523_v1 = vcombine.low %v4499_v20, %v4515_v26  ;;  %v4524_v25 = vcombine.high %v4499_v20, %v4515_v26  ;;  %v4447_v19 = vrot.slane %v4439_v0, %v14581_v21 }
 0x8e8   :  { %13772 = vmatmul.mubr.msk.f32.vlgmr.msra.gmra.mxu1 %vm1389_vm2, %v3494_v10  ;;  %13778 = vmatprep.mubr.msk.f32.mxu0 %vm14327_vm1, %v17063_v17  ;;  %v4525_v43 = vcombine.low %v15424_v46, %v15428_v18  ;;  %v4526_v22 = vcombine.high %v15424_v46, %v15428_v18  ;;  %v15445_v28 = vrot.slane %v4440_v44, %v14581_v21  ;;  %v15473_v44 = vpop.permute.xlu1 %4101 }
 0x8e9   :  { %13785 = vmatprep.mubr.msk.f32.mxu1 %vm14327_vm1, %v17063_v17  ;;  %13775 = vmatpush3.msra.mxu0 %v4523_v1  ;;  %v4455_v29 = vcombine.low %v4431_v6, %v4447_v19  ;;  %v4456_v49 = vcombine.high %v4431_v6, %v4447_v19  ;;  %v15465_v6 = vadd.f32 %v15125_v15, %v14511_v42 }
 0x8ea   :  { %13782 = vmatpush3.msra.mxu1 %v4524_v25  ;;  %13776 = vmatprep.subr.mxu0 %v17063_v17  ;;  %v4457_v62 = vcombine.low %v15442_v47, %v15445_v28  ;;  %v4458_v56 = vcombine.high %v15442_v47, %v15445_v28 }
 0x8eb   :  { %13783 = vmatprep.subr.mxu1 %v17063_v17  ;;  %13777 = vmatpush3.msra.mxu0 %v4455_v29 }
 0x8ec   :  { %13784 = vmatpush3.msra.mxu1 %v4456_v49  ;;  %13788 = vmatprep.subr.mxu0 %v17063_v17 }
 0x8ed   :  { %13795 = vmatprep.subr.mxu1 %v17063_v17 }
 0x983   :  { %v4738_v8 = vpop.f32.mrf.mxu0 }
 0x984   :  { %v4817_v2 = vpop.f32.mrf.mxu1  ;;  %v5295_v53 = vsel %vm2968_vm3, %v4738_v8, -inf }
 0x985   :  { %v5298_v34 = vsel %vm2968_vm3, %v4817_v2, -inf  ;;  %5296 = vmax.xlane.f32.xlu0 %v5295_v53  ;;  %v13724_v11 = vpop.f32.mrf.mxu0 }
 0x986   :  { %5299 = vmax.xlane.f32.xlu1 %v5298_v34  ;;  %v13731_v33 = vpop.f32.mrf.mxu1 }
 0x996   :  { %v4896_v32 = vpop.f32.mrf.mxu0  ;;  %v4975_v51 = vpop.f32.mrf.mxu1 }
 0x997   :  { %v5301_v41 = vsel %vm2968_vm3, %v4896_v32, -inf  ;;  %v5304_v52 = vsel %vm2968_vm3, %v4975_v51, -inf }
 0x998   :  { %v13745_v54 = vpop.f32.mrf.mxu1  ;;  %5302 = vmax.xlane.f32.xlu0 %v5301_v41  ;;  %v13738_v10 = vpop.f32.mrf.mxu0 }
 0x99c   :  { %5305 = vmax.xlane.f32.xlu0 %v5304_v52 }
 0x99f   :  { %v5054_v14 = vpop.f32.mrf.mxu0 }
 0x9a0   :  { %v5133_v5 = vpop.f32.mrf.mxu1  ;;  %v5307_v31 = vsel %vm2968_vm3, %v5054_v14, -inf }
 0x9a1   :  { %v5310_v3 = vsel %vm2968_vm3, %v5133_v5, -inf  ;;  %5308 = vmax.xlane.f32.xlu1 %v5307_v31  ;;  %v13752_v50 = vpop.f32.mrf.mxu0 }
 0x9a2   :  { %5311 = vmax.xlane.f32.xlu0 %v5310_v3  ;;  %v13759_v61 = vpop.f32.mrf.mxu1 }
 0x9a7   :  { %v5212_v12 = vpop.f32.mrf.mxu0 }
 0x9a8   :  { %v5291_v20 = vpop.f32.mrf.mxu1  ;;  %v5313_v9 = vsel %vm2968_vm3, %v5212_v12, -inf }
 0x9a9   :  { %v5316_v58 = vsel %vm2968_vm3, %v5291_v20, -inf  ;;  %5314 = vmax.xlane.f32.xlu1 %v5313_v9  ;;  %v13766_v0 = vpop.f32.mrf.mxu0 }
 0x9aa   :  { %5317 = vmax.xlane.f32.xlu0 %v5316_v58  ;;  %v13773_v26 = vpop.f32.mrf.mxu1 }
 0x9ba   :  { %4087 = vrot.lane.b32.xlu1 %v15465_v6, %s14322_s12 }
 0x9c0   :  { %4113 = vrot.lane.b32.xlu0 %v15153_v27, %s14323_s13 }
 0xa0e   :  { %v5297_v1 = vpop.xlane.xlu0 %5296 }
 0xa0f   :  { %v5300_v25 = vpop.xlane.xlu1 %5299  ;;  %v5319_v19 = vsub.f32 %v4738_v8, %v5297_v1 }
 0xa10   :  { %v5320_v29 = vsub.f32 %v4817_v2, %v5300_v25 }
 0xa11   :  { %v5327_v49 = vmul.f32 1.442695, %v5319_v19 }
 0xa12   :  { %v5329_v53 = vmul.f32 1.442695, %v5320_v29 }
 0xa13   :  { %14186 = vpow2.f32 %v5327_v49 }
 0xa14   :  { %14188 = vpow2.f32 %v5329_v53 }
 0xa20   :  { %v15475_v33 = vpop.eup %14186 }
 0xa21   :  { %v5303_v15 = vpop.xlane.xlu0 %5302  ;;  %v15477_v54 = vpop.eup %14188  ;;  %v5343_v52 = vsel %vm2968_vm3, %v15475_v33, 0.0 }
 0xa22   :  { %v5321_v34 = vsub.f32 %v4896_v32, %v5303_v15  ;;  %v5346_v8 = vsel %vm2968_vm3, %v15477_v54, 0.0  ;;  %5344 = vadd.xlane.f32.xlu1 %v5343_v52 }
 0xa23   :  { %5347 = vadd.xlane.f32.xlu0 %v5346_v8 }
 0xa24   :  { %v5331_v11 = vmul.f32 1.442695, %v5321_v34 }
 0xa25   :  { %v5306_v41 = vpop.xlane.xlu0 %5305 }
 0xa26   :  { %14190 = vpow2.f32 %v5331_v11  ;;  %v5322_v10 = vsub.f32 %v4975_v51, %v5306_v41 }
 0xa28   :  { %v5333_v2 = vmul.f32 1.442695, %v5322_v10 }
 0xa2a   :  { %14192 = vpow2.f32 %v5333_v2  ;;  %v5309_v3 = vpop.xlane.xlu1 %5308 }
 0xa2b   :  { %v5312_v32 = vpop.xlane.xlu0 %5311  ;;  %v5323_v31 = vsub.f32 %v5054_v14, %v5309_v3  ;;  %v4323_v3 = vcombine.low %v15153_v27, %v15473_v44 }
 0xa2c   :  { %v5324_v61 = vsub.f32 %v5133_v5, %v5312_v32  ;;  %v4324_v32 = vcombine.high %v15153_v27, %v15473_v44 }
 0xa2d   :  { %v5335_v50 = vmul.f32 1.442695, %v5323_v31 }
 0xa2e   :  { %v5337_v58 = vmul.f32 1.442695, %v5324_v61 }
 0xa2f   :  { %14194 = vpow2.f32 %v5335_v50 }
 0xa30   :  { %14196 = vpow2.f32 %v5337_v58 }
 0xa32   :  { %v5315_v51 = vpop.xlane.xlu1 %5314 }
 0xa33   :  { %v15483_v9 = vpop.eup %14190  ;;  %v5318_v26 = vpop.xlane.xlu0 %5317  ;;  %v5325_v1 = vsub.f32 %v5212_v12, %v5315_v51  ;;  %v4331_v51 = vrot.slane %v4323_v3, %v14574_v13 }
 0xa34   :  { %v5349_v0 = vsel %vm2968_vm3, %v15483_v9, 0.0  ;;  %v5326_v25 = vsub.f32 %v5291_v20, %v5318_v26  ;;  %v4338_v26 = vrot.slane %v4324_v32, %v14574_v13 }
 0xa35   :  { %5350 = vadd.xlane.f32.xlu1 %v5349_v0  ;;  %v5339_v29 = vmul.f32 1.442695, %v5325_v1 }
 0xa36   :  { %v5341_v49 = vmul.f32 1.442695, %v5326_v25  ;;  %v15511_v52 = vpop.permute.xlu1 %4087 }
 0xa37   :  { %v15487_v19 = vpop.eup %14192  ;;  %14198 = vpow2.f32 %v5339_v29  ;;  %v4114_v10 = vpop.permute.xlu0 %4113 }
 0xa38   :  { %v5352_v14 = vsel %vm2968_vm3, %v15487_v19, 0.0  ;;  %14200 = vpow2.f32 %v5341_v49  ;;  %v4339_v8 = vcombine.low %v15471_v30, %v4114_v10  ;;  %v4340_v2 = vcombine.high %v15471_v30, %v4114_v10 }
 0xa39   :  { %5353 = vadd.xlane.f32.xlu0 %v5352_v14 }
 0xa3a   :  { %v4347_v61 = vrot.slane %v4339_v8, %v14574_v13  ;;  %v4354_v58 = vrot.slane %v4340_v2, %v14574_v13 }
 0xa3c   :  { %v15491_v5 = vpop.eup %14194  ;;  %v4355_v0 = vcombine.low %v4331_v51, %v4347_v61  ;;  %v4356_v30 = vcombine.high %v4331_v51, %v4347_v61  ;;  %v4371_v1 = vcombine.low %v4338_v26, %v4354_v58  ;;  %v4372_v25 = vcombine.high %v4338_v26, %v4354_v58 }
 0xa3d   :  { %v15493_v53 = vpop.eup %14196  ;;  %v5355_v15 = vsel %vm2968_vm3, %v15491_v5, 0.0 }
 0xa3e   :  { %v5358_v12 = vsel %vm2968_vm3, %v15493_v53, 0.0  ;;  %5356 = vadd.xlane.f32.xlu1 %v5355_v15  ;;  %v4363_v29 = vrot.slane %v4355_v0, %v14581_v21  ;;  %v4370_v27 = vrot.slane %v4356_v30, %v14581_v21  ;;  %v4379_v44 = vrot.slane %v4371_v1, %v14581_v21 }
 0xa3f   :  { %5359 = vadd.xlane.f32.xlu0 %v5358_v12  ;;  %v4386_v49 = vrot.slane %v4372_v25, %v14581_v21 }
 0xa40   :  { %v4595_v14 = vcombine.low %v4363_v29, %v4370_v27  ;;  %v13119_v12 = vcombine.high %v4363_v29, %v4370_v27 }
 0xa42   :  { %v15531_v32 = vrot.slane %v4595_v14, %v14574_v13  ;;  %v15538_v61 = vrot.slane %v13119_v12, %v14574_v13 }
 0xa44   :  { %v15499_v20 = vpop.eup %14198  ;;  %v4627_v46 = vcombine.low %v15531_v32, %v15538_v61 }
 0xa45   :  { %v15501_v34 = vpop.eup %14200  ;;  %v5361_v11 = vsel %vm2968_vm3, %v15499_v20, 0.0 }
 0xa46   :  { %5362 = vadd.xlane.f32.xlu0 %v5361_v11  ;;  %v5364_v41 = vsel %vm2968_vm3, %v15501_v34, 0.0  ;;  %v4611_v11 = vcombine.low %v4379_v44, %v4386_v49 }
 0xa47   :  { %5365 = vadd.xlane.f32.xlu1 %v5364_v41  ;;  %v13120_v41 = vcombine.high %v4379_v44, %v4386_v49 }
 0xa58   :  { %4111 = vrot.lane.b32.xlu1 %v15465_v6, %s14323_s13 }
 0xa5c   :  { %4099 = vrot.lane.b32.xlu0 %v15465_v6, %s14321_s4 }
 0xaab   :  { %v5345_v31 = vpop.xlane.xlu1 %5344 }
 0xaac   :  { %14202 = vrcp.f32 %v5345_v31  ;;  %v5348_v50 = vpop.xlane.xlu0 %5347 }
 0xaad   :  { %14204 = vrcp.f32 %v5348_v50  ;;  %v15541_v50 = vrot.slane %v4611_v11, %v14574_v13 }
 0xab9   :  { %v14203_v15 = vpop.eup %14202 }
 0xaba   :  { %v14205_v8 = vpop.eup %14204  ;;  %v5375_v2 = vmul.f32 %v14203_v15, %v15475_v33  ;;  %v15544_v33 = vrot.slane %v13120_v41, %v14574_v13 }
 0xabb   :  { %v5376_v3 = vmul.f32 %v14205_v8, %v15477_v54 }
 0xabc   :  { %13779 = vmatmul.mubr.msk.f32.vlgmr.msra.gmra.mxu0 %vm2968_vm3, %v5375_v2  ;;  %v4643_v18 = vcombine.low %v15541_v50, %v15544_v33 }
 0xabd   :  { %13786 = vmatmul.mubr.msk.f32.vlgmr.msra.gmra.mxu1 %vm2968_vm3, %v5376_v3  ;;  %13789 = vmatpush3.msra.mxu0 %v4525_v43  ;;  %v4635_v43 = vrot.slane %v4627_v46, %v14581_v21 }
 0xabe   :  { %v5351_v10 = vpop.xlane.xlu1 %5350  ;;  %13796 = vmatpush3.msra.mxu1 %v4526_v22  ;;  %13790 = vmatprep.subr.mxu0 %v17063_v17  ;;  %v4651_v22 = vrot.slane %v4643_v18, %v14581_v21 }
 0xabf   :  { %14206 = vrcp.f32 %v5351_v10  ;;  %13797 = vmatprep.subr.mxu1 %v17063_v17  ;;  %13791 = vmatpush3.msra.mxu0 %v4457_v62 }
 0xac0   :  { %13798 = vmatpush3.msra.mxu1 %v4458_v56  ;;  %13792 = vmatprep.mubr.msk.f32.mxu0 %vm14327_vm1, %v17063_v17  ;;  %v4659_v54 = vcombine.low %v4635_v43, %v4651_v22  ;;  %v4660_v30 = vcombine.high %v4635_v43, %v4651_v22 }
 0xac1   :  { %13802 = vmatprep.subr.mxu0 %v17063_v17  ;;  %13799 = vmatprep.mubr.msk.f32.mxu1 %vm14327_vm1, %v17063_v17 }
 0xac2   :  { %v5354_v31 = vpop.xlane.xlu0 %5353  ;;  %13809 = vmatprep.subr.mxu1 %v17063_v17 }
 0xac3   :  { %14208 = vrcp.f32 %v5354_v31 }
 0xac7   :  { %v5357_v56 = vpop.xlane.xlu1 %5356 }
 0xac8   :  { %v5360_v28 = vpop.xlane.xlu0 %5359  ;;  %14210 = vrcp.f32 %v5357_v56  ;;  %v4644_v56 = vcombine.high %v15541_v50, %v15544_v33 }
 0xac9   :  { %14212 = vrcp.f32 %v5360_v28 }
 0xacc   :  { %v14207_v47 = vpop.eup %14206 }
 0xacd   :  { %v5377_v62 = vmul.f32 %v14207_v47, %v15483_v9 }
 0xacf   :  { %13793 = vmatmul.mubr.msk.f32.vlgmr.msra.gmra.mxu0 %vm2968_vm3, %v5377_v62  ;;  %v5363_v51 = vpop.xlane.xlu0 %5362  ;;  %v4628_v62 = vcombine.high %v15531_v32, %v15538_v61 }
 0xad0   :  { %v14209_v58 = vpop.eup %14208  ;;  %13803 = vmatpush3.msra.mxu0 %v4659_v54  ;;  %13806 = vmatprep.mubr.msk.f32.mxu0 %vm14327_vm1, %v17063_v17  ;;  %v5366_v0 = vpop.xlane.xlu1 %5365  ;;  %14214 = vrcp.f32 %v5363_v51 }
 0xad1   :  { %v5378_v26 = vmul.f32 %v14209_v58, %v15487_v19  ;;  %13804 = vmatprep.subr.mxu0 %v17063_v17  ;;  %14216 = vrcp.f32 %v5366_v0 }
 0xad3   :  { %13800 = vmatmul.mubr.msk.f32.vlgmr.msra.gmra.mxu1 %vm2968_vm3, %v5378_v26  ;;  %v4100_v9 = vpop.permute.xlu0 %4099 }
 0xad4   :  { %13810 = vmatpush3.msra.mxu1 %v4660_v30  ;;  %13813 = vmatprep.mubr.msk.f32.mxu1 %vm14327_vm1, %v17063_v17  ;;  %v4112_v1 = vpop.permute.xlu1 %4111  ;;  %v4255_v25 = vcombine.low %v15465_v6, %v4100_v9  ;;  %v4256_v29 = vcombine.high %v15465_v6, %v4100_v9 }
 0xad5   :  { %13811 = vmatprep.subr.mxu1 %v17063_v17  ;;  %v4271_v19 = vcombine.low %v15511_v52, %v4112_v1  ;;  %v4272_v27 = vcombine.high %v15511_v52, %v4112_v1  ;;  %v14211_v51 = vpop.eup %14210 }
 0xad6   :  { %v4263_v44 = vrot.slane %v4255_v25, %v14574_v13  ;;  %v4270_v49 = vrot.slane %v4256_v29, %v14574_v13  ;;  %v14213_v30 = vpop.eup %14212  ;;  %v4642_v25 = vrot.slane %v4628_v62, %v14581_v21  ;;  %v4658_v29 = vrot.slane %v4644_v56, %v14581_v21 }
 0xad7   :  { %v4279_v14 = vrot.slane %v4271_v19, %v14574_v13  ;;  %v4286_v15 = vrot.slane %v4272_v27, %v14574_v13  ;;  %v5379_v32 = vmul.f32 %v14211_v51, %v15491_v5  ;;  %v5380_v61 = vmul.f32 %v14213_v30, %v15493_v53 }
 0xad9   :  { %v4287_v12 = vcombine.low %v4263_v44, %v4279_v14  ;;  %v4288_v11 = vcombine.high %v4263_v44, %v4279_v14  ;;  %v4303_v41 = vcombine.low %v4270_v49, %v4286_v15  ;;  %v4304_v10 = vcombine.high %v4270_v49, %v4286_v15 }
 0xada   :  { %v4661_v49 = vcombine.low %v4642_v25, %v4658_v29  ;;  %v4662_v14 = vcombine.high %v4642_v25, %v4658_v29 }
 0xadb   :  { %v4295_v6 = vrot.slane %v4287_v12, %v14581_v21  ;;  %v4302_v8 = vrot.slane %v4288_v11, %v14581_v21  ;;  %v4311_v52 = vrot.slane %v4303_v41, %v14581_v21  ;;  %v4318_v2 = vrot.slane %v4304_v10, %v14581_v21 }
 0xadd   :  { %v4527_v3 = vcombine.low %v4295_v6, %v4302_v8  ;;  %v13117_v31 = vcombine.high %v4295_v6, %v4302_v8  ;;  %v4543_v46 = vcombine.low %v4311_v52, %v4318_v2  ;;  %v13118_v18 = vcombine.high %v4311_v52, %v4318_v2  ;;  %v14215_v44 = vpop.eup %14214 }
 0xade   :  { %v14217_v15 = vpop.eup %14216  ;;  %v5381_v12 = vmul.f32 %v14215_v44, %v15499_v20 }
 0xadf   :  { %v4534_v43 = vrot.slane %v4527_v3, %v14574_v13  ;;  %v4542_v22 = vrot.slane %v13117_v31, %v14574_v13  ;;  %v4550_v47 = vrot.slane %v4543_v46, %v14574_v13  ;;  %v4558_v28 = vrot.slane %v13118_v18, %v14574_v13 }
 0xae0   :  { %v5382_v11 = vmul.f32 %v14217_v15, %v15501_v34 }
 0xae1   :  { %v4559_v54 = vcombine.low %v4534_v43, %v4542_v22  ;;  %v4575_v58 = vcombine.low %v4550_v47, %v4558_v28  ;;  %v4560_v26 = vcombine.high %v4534_v43, %v4542_v22  ;;  %v4576_v0 = vcombine.high %v4550_v47, %v4558_v28 }
 0xae3   :  { %v4567_v9 = vrot.slane %v4559_v54, %v14581_v21  ;;  %v4583_v1 = vrot.slane %v4575_v58, %v14581_v21  ;;  %v4574_v50 = vrot.slane %v4560_v26, %v14581_v21  ;;  %v4590_v33 = vrot.slane %v4576_v0, %v14581_v21 }
 0xae5   :  { %v4591_v19 = vcombine.low %v4567_v9, %v4583_v1  ;;  %v4592_v27 = vcombine.high %v4567_v9, %v4583_v1  ;;  %v4593_v5 = vcombine.low %v4574_v50, %v4590_v33  ;;  %v4594_v53 = vcombine.high %v4574_v50, %v4590_v33 }
 0xae7   :  { %13805 = vmatpush3.msra.mxu0 %v4591_v19  ;;  %13812 = vmatpush3.msra.mxu1 %v4592_v27 }
 0xae8   :  { %13807 = vmatmul.mubr.msk.f32.vlgmr.msra.gmra.mxu0 %vm2968_vm3, %v5379_v32  ;;  %13814 = vmatmul.mubr.msk.f32.vlgmr.msra.gmra.mxu1 %vm2968_vm3, %v5380_v61 }
 0xae9   :  { %13816 = vmatprep.subr.mxu0 %v17063_v17  ;;  %13823 = vmatprep.subr.mxu1 %v17063_v17 }
 0xaea   :  { %13817 = vmatpush3.msra.mxu0 %v4661_v49  ;;  %13824 = vmatpush3.msra.mxu1 %v4662_v14 }
 0xaeb   :  { %13818 = vmatprep.subr.mxu0 %v17063_v17  ;;  %13825 = vmatprep.subr.mxu1 %v17063_v17 }
 0xaec   :  { %13819 = vmatpush3.msra.mxu0 %v4593_v5  ;;  %13820 = vmatprep.mubr.msk.f32.mxu0 %vm14327_vm1, %v17063_v17 }
 0xaed   :  { %13826 = vmatpush3.msra.mxu1 %v4594_v53  ;;  %13827 = vmatprep.mubr.msk.f32.mxu1 %vm14327_vm1, %v17063_v17 }
 0xaee   :  { %13821 = vmatmul.mubr.msk.f32.vlgmr.msra.gmra.mxu0 %vm2968_vm3, %v5381_v12  ;;  %13828 = vmatmul.mubr.msk.f32.vlgmr.msra.gmra.mxu1 %vm2968_vm3, %v5382_v11 }
 0xb7c   :  { %v5452_v41 = vpop.f32.mrf.mxu0 }
 0xb7d   :  { %v5525_v10 = vpop.f32.mrf.mxu1 }
 0xb7e   :  { %v13780_v6 = vpop.f32.mrf.mxu0 }
 0xb7f   :  { %v13787_v8 = vpop.f32.mrf.mxu1 }
 0xb8f   :  { %v5598_v52 = vpop.f32.mrf.mxu0 }
 0xb90   :  { %v5967_v3 = vcombine.low %v5452_v41, %v5598_v52  ;;  %v5968_v31 = vcombine.high %v5452_v41, %v5598_v52 }
 0xb91   :  { %v13794_v2 = vpop.f32.mrf.mxu0 }
 0xb92   :  { %v5975_v43 = vrot.slane %v5967_v3, %v14574_v13  ;;  %v5982_v22 = vrot.slane %v5968_v31, %v14574_v13 }
 0xb93   :  { %v5671_v46 = vpop.f32.mrf.mxu1 }
 0xb94   :  { %v5983_v20 = vcombine.low %v5525_v10, %v5671_v46  ;;  %v5984_v18 = vcombine.high %v5525_v10, %v5671_v46 }
 0xb95   :  { %v13801_v34 = vpop.f32.mrf.mxu1 }
 0xb96   :  { %v5991_v47 = vrot.slane %v5983_v20, %v14574_v13  ;;  %v5998_v28 = vrot.slane %v5984_v18, %v14574_v13 }
 0xb98   :  { %v5999_v62 = vcombine.low %v5975_v43, %v5991_v47  ;;  %v6000_v56 = vcombine.high %v5975_v43, %v5991_v47  ;;  %v6015_v54 = vcombine.low %v5982_v22, %v5998_v28  ;;  %v6016_v58 = vcombine.high %v5982_v22, %v5998_v28 }
 0xb9a   :  { %v6007_v51 = vrot.slane %v5999_v62, %v14581_v21  ;;  %v6014_v26 = vrot.slane %v6000_v56, %v14581_v21  ;;  %v6023_v0 = vrot.slane %v6015_v54, %v14581_v21  ;;  %v6030_v30 = vrot.slane %v6016_v58, %v14581_v21 }
 0xb9c   :  { %v6103_v9 = vcombine.low %v6007_v51, %v6014_v26  ;;  %v13153_v1 = vcombine.high %v6007_v51, %v6014_v26  ;;  %v6119_v25 = vcombine.low %v6023_v0, %v6030_v30  ;;  %v13154_v29 = vcombine.high %v6023_v0, %v6030_v30  ;;  %v13054_v0 = vld [vmem:[%s17051_s3 + $0x58] sm:$0xff]  ;;  %v13053_v30 = vld [vmem:[%s17051_s3 + $0x50] sm:$0xff] }
 0xb9d   :  { %13830 = vmatprep.subr.mxu0 %v13054_v0 }
 0xb9e   :  { %v6110_v19 = vrot.slane %v6103_v9, %v14574_v13  ;;  %v6118_v27 = vrot.slane %v13153_v1, %v14574_v13  ;;  %v6126_v32 = vrot.slane %v6119_v25, %v14574_v13  ;;  %v6134_v61 = vrot.slane %v13154_v29, %v14574_v13  ;;  %13831 = vmatpush3.msra.mxu0 %v13054_v0 }
 0xb9f   :  { %13832 = vmatprep.subr.mxu0 %v13053_v30 }
 0xba0   :  { %v6135_v50 = vcombine.low %v6110_v19, %v6118_v27  ;;  %v6151_v33 = vcombine.low %v6126_v32, %v6134_v61  ;;  %v6136_v44 = vcombine.high %v6110_v19, %v6118_v27  ;;  %v6152_v49 = vcombine.high %v6126_v32, %v6134_v61  ;;  %13833 = vmatpush3.msra.mxu0 %v13053_v30 }
 0xba2   :  { %v15634_v14 = vrot.slane %v6135_v50, %v14581_v21  ;;  %v15637_v15 = vrot.slane %v6151_v33, %v14581_v21  ;;  %v6150_v53 = vrot.slane %v6136_v44, %v14581_v21  ;;  %v6166_v12 = vrot.slane %v6152_v49, %v14581_v21  ;;  %v13052_v50 = vld [vmem:[%s17051_s3 + $0x48] sm:$0xff]  ;;  %v13051_v33 = vld [vmem:[%s17051_s3 + $0x40] sm:$0xff] }
 0xba3   :  { %13834 = vmatprep.subr.mxu0 %v13052_v50 }
 0xba4   :  { %v6168_v5 = vcombine.high %v15634_v14, %v15637_v15  ;;  %v6167_v11 = vcombine.low %v15634_v14, %v15637_v15  ;;  %v6169_v41 = vcombine.low %v6150_v53, %v6166_v12  ;;  %v6170_v2 = vcombine.high %v6150_v53, %v6166_v12  ;;  %13835 = vmatpush3.msra.mxu0 %v13052_v50  ;;  %v14311_v15 = vld [vmem:[%s17049_s7] sm:$0xff] }
 0xba5   :  { %13836 = vmatprep.subr.mxu0 %v13051_v33  ;;  %v6271_v14 = vsub.s32 7, %v14397_v4 }
 0xba6   :  { %6241 = vrot.lane.b32.xlu0 %v6168_v5, %s14330_s16  ;;  %13837 = vmatpush3.msra.mxu0 %v13051_v33 }
 0xba8   :  { %v5744_v10 = vpop.f32.mrf.mxu0  ;;  %v5817_v6 = vpop.f32.mrf.mxu1 }
 0xbaa   :  { %6249 = vrot.lane.b32.xlu0 %v6169_v41, %s14331_s17  ;;  %v13808_v8 = vpop.f32.mrf.mxu0  ;;  %v13815_v52 = vpop.f32.mrf.mxu1 }
 0xbae   :  { %6257 = vrot.lane.b32.xlu0 %v6170_v2, %s14332_s18  ;;  %v5890_v3 = vpop.f32.mrf.mxu0  ;;  %v5963_v31 = vpop.f32.mrf.mxu1 }
 0xbaf   :  { %v6035_v46 = vcombine.low %v5744_v10, %v5890_v3  ;;  %v6036_v20 = vcombine.high %v5744_v10, %v5890_v3  ;;  %v6051_v18 = vcombine.low %v5817_v6, %v5963_v31  ;;  %v6052_v34 = vcombine.high %v5817_v6, %v5963_v31 }
 0xbb0   :  { %v13822_v43 = vpop.f32.mrf.mxu0  ;;  %v13829_v22 = vpop.f32.mrf.mxu1 }
 0xbb1   :  { %v6043_v47 = vrot.slane %v6035_v46, %v14574_v13  ;;  %v6050_v28 = vrot.slane %v6036_v20, %v14574_v13  ;;  %v6059_v62 = vrot.slane %v6051_v18, %v14574_v13  ;;  %v6066_v56 = vrot.slane %v6052_v34, %v14574_v13 }
 0xbb3   :  { %v6067_v54 = vcombine.low %v6043_v47, %v6059_v62  ;;  %v6068_v58 = vcombine.high %v6043_v47, %v6059_v62  ;;  %v6083_v51 = vcombine.low %v6050_v28, %v6066_v56  ;;  %v6084_v26 = vcombine.high %v6050_v28, %v6066_v56 }
 0xbb5   :  { %v6075_v9 = vrot.slane %v6067_v54, %v14581_v21  ;;  %v6082_v1 = vrot.slane %v6068_v58, %v14581_v21  ;;  %v6091_v25 = vrot.slane %v6083_v51, %v14581_v21  ;;  %v6098_v29 = vrot.slane %v6084_v26, %v14581_v21 }
 0xbb7   :  { %v6171_v19 = vcombine.low %v6075_v9, %v6082_v1  ;;  %v13155_v27 = vcombine.high %v6075_v9, %v6082_v1  ;;  %v6187_v32 = vcombine.low %v6091_v25, %v6098_v29  ;;  %v13156_v61 = vcombine.high %v6091_v25, %v6098_v29 }
 0xbb9   :  { %v6178_v44 = vrot.slane %v6171_v19, %v14574_v13  ;;  %v6186_v49 = vrot.slane %v13155_v27, %v14574_v13  ;;  %v6194_v5 = vrot.slane %v6187_v32, %v14574_v13  ;;  %v6202_v53 = vrot.slane %v13156_v61, %v14574_v13 }
 0xbbb   :  { %v6203_v12 = vcombine.low %v6178_v44, %v6186_v49  ;;  %v6219_v41 = vcombine.low %v6194_v5, %v6202_v53  ;;  %v6204_v10 = vcombine.high %v6178_v44, %v6186_v49  ;;  %v6220_v6 = vcombine.high %v6194_v5, %v6202_v53 }
 0xbbd   :  { %v6211_v8 = vrot.slane %v6203_v12, %v14581_v21  ;;  %v6227_v52 = vrot.slane %v6219_v41, %v14581_v21  ;;  %v6218_v3 = vrot.slane %v6204_v10, %v14581_v21  ;;  %v6234_v31 = vrot.slane %v6220_v6, %v14581_v21  ;;  %v6396_v10 = vld [vmem:[%s17052_s5 + $0x10] sm:$0xff]  ;;  %v6395_v6 = vld [vmem:[%s17052_s5 + $0x8] sm:$0xff] }
 0xbbf   :  { %v6236_v2 = vcombine.high %v6211_v8, %v6227_v52  ;;  %v6235_v46 = vcombine.low %v6211_v8, %v6227_v52  ;;  %v6237_v20 = vcombine.low %v6218_v3, %v6234_v31  ;;  %v6238_v18 = vcombine.high %v6218_v3, %v6234_v31  ;;  %v6394_v8 = vld [vmem:[%s17052_s5] sm:$0xff]  ;;  %v6494_v52 = vld [vmem:[%s17053_s6 + $0x38] sm:$0xff]  ;;  %v6492_v3 = vld [vmem:[%s17053_s6 + $0x28] sm:$0xff] }
 0xbc0   :  { %13852 = vmatprep.subr.mxu0 %v6494_v52  ;;  %v6491_v31 = vld [vmem:[%s17053_s6 + $0x20] sm:$0xff] }
 0xbc1   :  { %6243 = vrot.lane.b32.xlu1 %v6236_v2, %s14330_s16  ;;  %v6493_v2 = vld [vmem:[%s17053_s6 + $0x30] sm:$0xff] }
 0xbc5   :  { %6251 = vrot.lane.b32.xlu1 %v6237_v20, %s14331_s17 }
 0xbc9   :  { %6259 = vrot.lane.b32.xlu1 %v6238_v18, %s14332_s18 }
 0xc18   :  { %v6242_v34 = vpop.permute.xlu0 %6241 }
 0xc19   :  { %v6263_v22 = vsel %vm1389_vm2, %v6167_v11, %v6242_v34  ;;  %v6272_v11 = vrot.slane %v14311_v15, %v6271_v14 }
 0xc1c   :  { %v6250_v43 = vpop.permute.xlu0 %6249 }
 0xc1d   :  { %v6265_v47 = vsel %vm2968_vm3, %v6263_v22, %v6250_v43 }
 0xc20   :  { %v6258_v28 = vpop.permute.xlu0 %6257 }
 0xc21   :  { %v6267_v62 = vsel %vm2971_vm4, %v6265_v47, %v6258_v28  ;;  %v15729_v47 = vld [vmem:[%s17049_s7 + $0x8] sm:$0xff] }
 0xc22   :  { %13838 = vmatprep.mubr.msk.f32.mxu0 %vm51_vm0, %v6267_v62  ;;  %v6385_v28 = vrot.slane %v15729_v47, %v14552_v59 }
 0xc33   :  { %v6244_v56 = vpop.permute.xlu1 %6243 }
 0xc34   :  { %v6264_v58 = vsel %vm1389_vm2, %v6235_v46, %v6244_v56 }
 0xc37   :  { %v6252_v54 = vpop.permute.xlu1 %6251 }
 0xc38   :  { %v6266_v51 = vsel %vm2968_vm3, %v6264_v58, %v6252_v54  ;;  %v6391_v54 = vrot.slane %v15729_v47, %v14947_v63 }
 0xc3b   :  { %v6260_v26 = vpop.permute.xlu1 %6259 }
 0xc3c   :  { %v6268_v0 = vsel %vm2971_vm4, %v6266_v51, %v6260_v26 }
 0xc3d   :  { %13839 = vmatmul.mubr.msk.f32.vlgmr.msra.gmra.mxu0 %vm51_vm0, %v6268_v0 }
 0xc3e   :  { %13853 = vmatpush3.msra.mxu0 %v6494_v52 }
 0xc3f   :  { %13854 = vmatprep.subr.mxu0 %v6493_v2 }
 0xc40   :  { %13855 = vmatpush3.msra.mxu0 %v6493_v2 }
 0xc41   :  { %13856 = vmatprep.subr.mxu0 %v6492_v3 }
 0xc42   :  { %13857 = vmatpush3.msra.mxu0 %v6492_v3 }
 0xc43   :  { %13858 = vmatprep.subr.mxu0 %v6491_v31 }
 0xc44   :  { %13859 = vmatpush3.msra.mxu0 %v6491_v31 }
 0xcfd   :  { %v13840_v30 = vpop.f32.mrf.mxu0 }
 0xcfe   :  { %v6351_v9 = vadd.f32 %v13840_v30, %v6272_v11  ;;  %v6490_v30 = vld [vmem:[%s17053_s6 + $0x18] sm:$0xff] }
 0xcff   :  { %v6345_v1 = vpop.f32.mrf.mxu0  ;;  %13860 = vmatprep.subr.mxu0 %v6490_v30 }
 0xd00   :  { %v6355_v25 = vadd.f32 %v6351_v9, %v15052_v55  ;;  %v6346_v29 = vadd.f32 %v6345_v1, %v6272_v11  ;;  %13861 = vmatpush3.msra.mxu0 %v6490_v30  ;;  %v6489_v9 = vld [vmem:[%s17053_s6 + $0x10] sm:$0xff]  ;;  %v6488_v1 = vld [vmem:[%s17053_s6 + $0x8] sm:$0xff]  ;;  %v6612_v30 = vrot.slane %v15729_v47, %v15097_v45 }
 0xd01   :  { %13862 = vmatprep.subr.mxu0 %v6489_v9 }
 0xd02   :  { %v6354_v19 = vadd.f32 %v6346_v29, %v15050_v24  ;;  %v6359_v27 = vsel %vm51_vm0, %v6355_v25, 0.0  ;;  %v6397_v24 = vld [vmem:[%s17052_s5 + $0x18] sm:$0xff]  ;;  %13863 = vmatpush3.msra.mxu0 %v6489_v9  ;;  %v13159_v29 = vld [vmem:[%s17054_s8] ss:$0 sm:$0xff] }
 0xd03   :  { %6360 = vadd.xlane.f32.xlu1 %v6359_v27  ;;  %13841 = vmatprep.subr.mxu1 %v6397_v24 }
 0xd04   :  { %v6356_v32 = vsel %vm51_vm0, %v6354_v19, 0.0  ;;  %13842 = vmatpush3.msra.mxu1 %v6397_v24  ;;  %13864 = vmatprep.subr.mxu0 %v6488_v1 }
 0xd05   :  { %6357 = vadd.xlane.f32.xlu0 %v6356_v32  ;;  %13843 = vmatprep.subr.mxu1 %v6396_v10 }
 0xd06   :  { %13844 = vmatpush3.msra.mxu1 %v6396_v10  ;;  %13865 = vmatpush3.msra.mxu0 %v6488_v1 }
 0xd07   :  { %13845 = vmatprep.subr.mxu1 %v6395_v6 }
 0xd08   :  { %13846 = vmatpush3.msra.mxu1 %v6395_v6 }
 0xd09   :  { %13847 = vmatprep.subr.mxu1 %v6394_v8 }
 0xd0a   :  { %13848 = vmatpush3.msra.mxu1 %v6394_v8 }
 0xd8c   :  { %v6361_v61 = vpop.xlane.xlu1 %6360 }
 0xd8d   :  { %v6363_v50 = vmul.f32 0.03125, %v6361_v61 }
 0xd8e   :  { %v6358_v33 = vpop.xlane.xlu0 %6357 }
 0xd8f   :  { %v6362_v44 = vmul.f32 0.03125, %v6358_v33  ;;  %v6365_v49 = vsub.f32 %v6355_v25, %v6363_v50  ;;  %v6487_v25 = vld [vmem:[%s17053_s6] sm:$0xff] }
 0xd90   :  { %13866 = vmatprep.subr.mxu0 %v6487_v25 }
 0xd91   :  { %v6364_v5 = vsub.f32 %v6354_v19, %v6362_v44  ;;  %v6367_v41 = vmul.f32 %v6365_v49, %v6365_v49  ;;  %13867 = vmatpush3.msra.mxu0 %v6487_v25  ;;  %v6498_v44 = vrot.slane %v15729_v47, %v15115_v16 }
 0xd92   :  { %13892 = vmatprep.subr.mxu0 %v17063_v17 }
 0xd93   :  { %v6366_v53 = vmul.f32 %v6364_v5, %v6364_v5  ;;  %v6371_v55 = vsel %vm51_vm0, %v6367_v41, 0.0 }
 0xd95   :  { %v6368_v12 = vsel %vm51_vm0, %v6366_v53, 0.0 }
 0xd96   :  { %6369 = vadd.xlane.f32.xlu0 %v6368_v12 }
 0xd9a   :  { %6372 = vadd.xlane.f32.xlu0 %v6371_v55 }
 0xe1f   :  { %v6370_v46 = vpop.xlane.xlu0 %6369 }
 0xe20   :  { %v6374_v20 = vmul.f32 0.03125, %v6370_v46 }
 0xe22   :  { %v6376_v18 = vadd.f32 1e-05, %v6374_v20 }
 0xe23   :  { %v6373_v34 = vpop.xlane.xlu0 %6372 }
 0xe24   :  { %14218 = vrsqrt.f32 %v6376_v18  ;;  %v6375_v43 = vmul.f32 0.03125, %v6373_v34 }
 0xe26   :  { %v6377_v22 = vadd.f32 1e-05, %v6375_v43  ;;  %v13182_v43 = vld [vmem:[%s17050_s2 + $0x38] sm:$0xff] }
 0xe27   :  { %13871 = vmatprep.subr.mxu1 %v13182_v43 }
 0xe28   :  { %14220 = vrsqrt.f32 %v6377_v22  ;;  %v13181_v22 = vld [vmem:[%s17050_s2 + $0x30] sm:$0xff] }
 0xe31   :  { %v14219_v62 = vpop.eup %14218 }
 0xe32   :  { %v6380_v56 = vmul.f32 %v14219_v62, %v6364_v5  ;;  %v13179_v62 = vld [vmem:[%s17050_s2 + $0x20] sm:$0xff] }
 0xe34   :  { %v6386_v58 = vmul.f32 %v6385_v28, %v6380_v56  ;;  %v15779_v56 = vld [vmem:[%s17049_s7 + $0x10] sm:$0xff] }
 0xe35   :  { %v14221_v51 = vpop.eup %14220 }
 0xe36   :  { %v6381_v26 = vmul.f32 %v14221_v51, %v6365_v49  ;;  %v6392_v0 = vadd.f32 %v6391_v54, %v6386_v58 }
 0xe38   :  { %v6387_v15 = vmul.f32 %v6385_v28, %v6381_v26  ;;  %13849 = vmatprep.mubr.msk.f32.mxu1 %vm51_vm0, %v6392_v0  ;;  %v13180_v28 = vld [vmem:[%s17050_s2 + $0x28] sm:$0xff] }
 0xe3a   :  { %v6393_v11 = vadd.f32 %v6391_v54, %v6387_v15  ;;  %v6738_v54 = vrot.slane %v15779_v56, %v14407_v7 }
 0xe3c   :  { %13850 = vmatmul.mubr.msk.f32.vlgmr.msra.gmra.mxu1 %vm51_vm0, %v6393_v11 }
 0xe3d   :  { %13872 = vmatpush3.msra.mxu1 %v13182_v43 }
 0xe3e   :  { %13873 = vmatprep.subr.mxu1 %v13181_v22 }
 0xe3f   :  { %13874 = vmatpush3.msra.mxu1 %v13181_v22 }
 0xe40   :  { %13875 = vmatprep.subr.mxu1 %v13180_v28 }
 0xe41   :  { %13876 = vmatpush3.msra.mxu1 %v13180_v28 }
 0xe42   :  { %13877 = vmatprep.subr.mxu1 %v13179_v62 }
 0xe43   :  { %13878 = vmatpush3.msra.mxu1 %v13179_v62 }
 0xe44   :  { %13882 = vmatprep.subr.mxu1 %v17063_v17 }
 0xefc   :  { %v13851_v19 = vpop.f32.mrf.mxu1 }
 0xefd   :  { %v6482_v27 = vadd.f32 %v13851_v19, %v13159_v29 }
 0xefe   :  { %v6476_v32 = vpop.f32.mrf.mxu1 }
 0xeff   :  { %v6477_v61 = vadd.f32 %v13159_v29, %v6476_v32  ;;  %v6486_v33 = vmax.f32 %v6482_v27, 0.0  ;;  %v6618_v29 = vrot.slane %v15729_v47, %v14965_v23 }
 0xf01   :  { %v6485_v50 = vmax.f32 %v6477_v61, 0.0 }
 0xf03   :  { %13868 = vmatprep.mubr.msk.f32.mxu0 %vm6499_vm5, %v6485_v50 }
 0xf04   :  { %13869 = vmatmul.mubr.msk.f32.vlgmr.msra.gmra.mxu0 %vm6499_vm5, %v6486_v33  ;;  %v14313_v33 = vld [vmem:[%s17048_s0 + $0x10] sm:$0xff] }
 0xf05   :  { %13894 = vmatprep.mubr.msk.f32.mxu0 %vm14327_vm1, %v17063_v17 }
 0xfc4   :  { %v13870_v49 = vpop.f32.mrf.mxu0 }
 0xfc5   :  { %v6578_v5 = vadd.f32 %v13870_v49, %v6498_v44  ;;  %v14314_v49 = vld [vmem:[%s17048_s0 + $0x18] sm:$0xff] }
 0xfc6   :  { %v6572_v53 = vpop.f32.mrf.mxu0 }
 0xfc7   :  { %v6582_v12 = vadd.f32 %v6578_v5, %v6393_v11  ;;  %v6573_v41 = vadd.f32 %v6572_v53, %v6498_v44 }
 0xfc9   :  { %v6581_v55 = vadd.f32 %v6573_v41, %v6392_v0  ;;  %v6586_v24 = vsel %vm51_vm0, %v6582_v12, 0.0 }
 0xfca   :  { %6587 = vadd.xlane.f32.xlu0 %v6586_v24  ;;  %v6732_v24 = vrot.slane %v15779_v56, %v14524_v48 }
 0xfcb   :  { %v6583_v10 = vsel %vm51_vm0, %v6581_v55, 0.0 }
 0xfcc   :  { %6584 = vadd.xlane.f32.xlu1 %v6583_v10 }
0x1053   :  { %v6588_v6 = vpop.xlane.xlu0 %6587 }
0x1054   :  { %v6590_v8 = vmul.f32 0.03125, %v6588_v6 }
0x1055   :  { %v6585_v52 = vpop.xlane.xlu1 %6584 }
0x1056   :  { %v6592_v2 = vsub.f32 %v6582_v12, %v6590_v8  ;;  %v6589_v3 = vmul.f32 0.03125, %v6585_v52 }
0x1058   :  { %v6591_v31 = vsub.f32 %v6581_v55, %v6589_v3  ;;  %v6594_v46 = vmul.f32 %v6592_v2, %v6592_v2 }
0x105a   :  { %v6598_v20 = vsel %vm51_vm0, %v6594_v46, 0.0  ;;  %v6593_v18 = vmul.f32 %v6591_v31, %v6591_v31 }
0x105b   :  { %6599 = vadd.xlane.f32.xlu0 %v6598_v20  ;;  %v6756_v20 = vrot.slane %v15779_v56, %v14552_v59 }
0x105c   :  { %v6595_v34 = vsel %vm51_vm0, %v6593_v18, 0.0 }
0x105d   :  { %6596 = vadd.xlane.f32.xlu1 %v6595_v34 }
0x106e   :  { %6740 = vrot.lane.b32.xlu1 %v6738_v54, %s14320_s23 }
0x10e4   :  { %v6600_v58 = vpop.xlane.xlu0 %6599 }
0x10e5   :  { %v6602_v51 = vmul.f32 0.03125, %v6600_v58 }
0x10e6   :  { %v6597_v26 = vpop.xlane.xlu1 %6596 }
0x10e7   :  { %v6604_v0 = vadd.f32 1e-05, %v6602_v51  ;;  %v6601_v15 = vmul.f32 0.03125, %v6597_v26 }
0x10e9   :  { %14222 = vrsqrt.f32 %v6604_v0  ;;  %v6603_v11 = vadd.f32 1e-05, %v6601_v15 }
0x10ea   :  { %v6741_v53 = vpop.permute.xlu1 %6740 }
0x10eb   :  { %14224 = vrsqrt.f32 %v6603_v11 }
0x10f6   :  { %v14223_v9 = vpop.eup %14222 }
0x10f7   :  { %v6608_v1 = vmul.f32 %v14223_v9, %v6592_v2 }
0x10f8   :  { %v14225_v25 = vpop.eup %14224 }
0x10f9   :  { %v6607_v19 = vmul.f32 %v14225_v25, %v6591_v31  ;;  %v6614_v27 = vmul.f32 %v6612_v30, %v6608_v1 }
0x10fb   :  { %v6613_v32 = vmul.f32 %v6612_v30, %v6607_v19  ;;  %v15788_v61 = vadd.f32 %v6618_v29, %v6614_v27 }
0x10fd   :  { %v15790_v50 = vadd.f32 %v6618_v29, %v6613_v32  ;;  %v6642_v5 = vadd.f32 %v14314_v49, %v15788_v61 }
0x10ff   :  { %v6641_v44 = vadd.f32 %v14313_v33, %v15790_v50 }
0x1101   :  { %13879 = vmatprep.mubr.msk.f32.mxu1 %vm51_vm0, %v6641_v44 }
0x1102   :  { %13880 = vmatmul.mubr.msk.f32.vlgmr.msra.gmra.mxu1 %vm51_vm0, %v6642_v5 }
0x1103   :  { %13884 = vmatprep.mubr.msk.f32.mxu1 %vm14327_vm1, %v17063_v17 }
0x11c2   :  { %v15804_v47 = vpop.f32.mrf.mxu1 }
0x11c3   :  { %v6744_v55 = vadd.f32 %v15804_v47, %v6741_v53  ;;  %v15831_v46 = vadd.f32 %v15804_v47, %v6732_v24 }
0x11c4   :  { %v15806_v12 = vpop.f32.mrf.mxu1 }
0x11c5   :  { %v6743_v41 = vadd.f32 %v6741_v53, %v15806_v12  ;;  %v6733_v10 = vadd.f32 %v6732_v24, %v15806_v12 }
0x11c7   :  { %7061 = vrot.lane.b32.xlu1 %v6743_v41, %s14321_s4  ;;  %7057 = vrot.lane.b32.xlu0 %v6743_v41, %s14322_s12 }
0x11cb   :  { %7065 = vrot.lane.b32.xlu1 %v6743_v41, %s14323_s13  ;;  %7059 = vrot.lane.b32.xlu0 %v6744_v55, %s14322_s12 }
0x11cf   :  { %7063 = vrot.lane.b32.xlu1 %v6744_v55, %s14321_s4  ;;  %7067 = vrot.lane.b32.xlu0 %v6744_v55, %s14323_s13 }
0x11d3   :  { %7069 = vrot.lane.b32.xlu1 %v6743_v41, %s14324_s14  ;;  %6771 = vrot.lane.b32.xlu0 %v6733_v10, %s14321_s4 }
0x11d7   :  { %6765 = vrot.lane.b32.xlu1 %v6733_v10, %s14322_s12 }
0x1239   :  { %v7062_v6 = vpop.permute.xlu1 %7061  ;;  %v7058_v8 = vpop.permute.xlu0 %7057 }
0x123a   :  { %7077 = vrot.lane.b32.xlu1 %v7062_v6, %s14324_s14  ;;  %7073 = vrot.lane.b32.xlu0 %v7058_v8, %s14324_s14 }
0x123d   :  { %v7066_v52 = vpop.permute.xlu1 %7065  ;;  %v7060_v2 = vpop.permute.xlu0 %7059 }
0x123e   :  { %6777 = vrot.lane.b32.xlu1 %v6733_v10, %s14323_s13  ;;  %7081 = vrot.lane.b32.xlu0 %v7066_v52, %s14324_s14 }
0x1241   :  { %v7064_v3 = vpop.permute.xlu1 %7063  ;;  %v7068_v31 = vpop.permute.xlu0 %7067 }
0x1242   :  { %7071 = vrot.lane.b32.xlu0 %v6744_v55, %s14324_s14  ;;  %7075 = vrot.lane.b32.xlu1 %v7060_v2, %s14324_s14 }
0x1245   :  { %v7070_v18 = vpop.permute.xlu1 %7069  ;;  %v6772_v34 = vpop.permute.xlu0 %6771 }
0x1246   :  { %7079 = vrot.lane.b32.xlu0 %v7064_v3, %s14324_s14  ;;  %7083 = vrot.lane.b32.xlu1 %v7068_v31, %s14324_s14  ;;  %v6783_v62 = vcombine.low %v6733_v10, %v6772_v34  ;;  %v6784_v54 = vcombine.high %v6733_v10, %v6772_v34 }
0x1248   :  { %v6791_v30 = vrot.slane %v6783_v62, %v14574_v13  ;;  %v6798_v9 = vrot.slane %v6784_v54, %v14574_v13 }
0x1249   :  { %v6766_v43 = vpop.permute.xlu1 %6765 }
0x124a   :  { %6767 = vrot.lane.b32.xlu0 %v15831_v46, %s14322_s12  ;;  %6773 = vrot.lane.b32.xlu1 %v15831_v46, %s14321_s4 }
0x124e   :  { %6779 = vrot.lane.b32.xlu0 %v15831_v46, %s14323_s13  ;;  %6745 = vrot.lane.b32.xlu1 %v14554_v60, %s14320_s23 }
0x1252   :  { %6758 = vrot.lane.b32.xlu0 %v6756_v20, %s14326_s15  ;;  %6747 = vrot.lane.b32.xlu1 %v14542_v57, %s14320_s23 }
0x12ac   :  { %v7078_v22 = vpop.permute.xlu1 %7077  ;;  %v7074_v28 = vpop.permute.xlu0 %7073 }
0x12ad   :  { %v7093_v58 = vcombine.low %v7070_v18, %v7078_v22  ;;  %v7094_v51 = vcombine.high %v7070_v18, %v7078_v22 }
0x12af   :  { %v7101_v19 = vrot.slane %v7093_v58, %v14574_v13  ;;  %v7108_v27 = vrot.slane %v7094_v51, %v14574_v13 }
0x12b0   :  { %v6778_v26 = vpop.permute.xlu1 %6777  ;;  %v7082_v0 = vpop.permute.xlu0 %7081 }
0x12b1   :  { %v6799_v60 = vcombine.low %v6766_v43, %v6778_v26  ;;  %v6800_v15 = vcombine.high %v6766_v43, %v6778_v26  ;;  %v7109_v11 = vcombine.low %v7074_v28, %v7082_v0  ;;  %v7110_v56 = vcombine.high %v7074_v28, %v7082_v0 }
0x12b3   :  { %v6807_v57 = vrot.slane %v6799_v60, %v14574_v13  ;;  %v6814_v1 = vrot.slane %v6800_v15, %v14574_v13  ;;  %v7117_v25 = vrot.slane %v7109_v11, %v14574_v13  ;;  %v7124_v29 = vrot.slane %v7110_v56, %v14574_v13 }
0x12b4   :  { %v7076_v32 = vpop.permute.xlu1 %7075  ;;  %v7072_v33 = vpop.permute.xlu0 %7071 }
0x12b5   :  { %v6815_v44 = vcombine.low %v6791_v30, %v6807_v57  ;;  %v6816_v49 = vcombine.high %v6791_v30, %v6807_v57  ;;  %v6831_v5 = vcombine.low %v6798_v9, %v6814_v1  ;;  %v6832_v53 = vcombine.high %v6798_v9, %v6814_v1 }
0x12b6   :  { %v7125_v41 = vcombine.low %v7101_v19, %v7117_v25  ;;  %v7126_v55 = vcombine.high %v7101_v19, %v7117_v25  ;;  %v7141_v24 = vcombine.low %v7108_v27, %v7124_v29  ;;  %v7142_v10 = vcombine.high %v7108_v27, %v7124_v29 }
0x12b7   :  { %v6823_v6 = vrot.slane %v6815_v44, %v14581_v21  ;;  %v6830_v8 = vrot.slane %v6816_v49, %v14581_v21  ;;  %v6839_v52 = vrot.slane %v6831_v5, %v14581_v21  ;;  %v6846_v2 = vrot.slane %v6832_v53, %v14581_v21 }
0x12b8   :  { %v7133_v3 = vrot.slane %v7125_v41, %v14581_v21  ;;  %v7140_v31 = vrot.slane %v7126_v55, %v14581_v21  ;;  %v7149_v20 = vrot.slane %v7141_v24, %v14581_v21  ;;  %v7156_v18 = vrot.slane %v7142_v10, %v14581_v21  ;;  %v7084_v34 = vpop.permute.xlu1 %7083  ;;  %v7080_v43 = vpop.permute.xlu0 %7079 }
0x12b9   :  { %v6919_v22 = vcombine.low %v6823_v6, %v6830_v8  ;;  %v13185_v28 = vcombine.high %v6823_v6, %v6830_v8  ;;  %v6935_v62 = vcombine.low %v6839_v52, %v6846_v2  ;;  %v13186_v54 = vcombine.high %v6839_v52, %v6846_v2 }
0x12ba   :  { %v7229_v58 = vcombine.low %v7133_v3, %v7140_v31  ;;  %v13189_v51 = vcombine.high %v7133_v3, %v7140_v31  ;;  %v7245_v26 = vcombine.low %v7149_v20, %v7156_v18  ;;  %v13190_v0 = vcombine.high %v7149_v20, %v7156_v18 }
0x12bb   :  { %v15863_v60 = vrot.slane %v6919_v22, %v14574_v13  ;;  %v15866_v15 = vrot.slane %v13185_v28, %v14574_v13  ;;  %v15873_v1 = vrot.slane %v6935_v62, %v14574_v13  ;;  %v15876_v25 = vrot.slane %v13186_v54, %v14574_v13 }
0x12bc   :  { %v7236_v11 = vrot.slane %v7229_v58, %v14574_v13  ;;  %v7244_v56 = vrot.slane %v13189_v51, %v14574_v13  ;;  %v7252_v30 = vrot.slane %v7245_v26, %v14574_v13  ;;  %v7260_v9 = vrot.slane %v13190_v0, %v14574_v13  ;;  %v6768_v57 = vpop.permute.xlu0 %6767  ;;  %v6774_v29 = vpop.permute.xlu1 %6773 }
0x12bd   :  { %v6951_v19 = vcombine.low %v15863_v60, %v15866_v15  ;;  %v7177_v5 = vcombine.low %v7076_v32, %v7084_v34  ;;  %v7178_v53 = vcombine.high %v7076_v32, %v7084_v34  ;;  %v7161_v41 = vcombine.low %v7072_v33, %v7080_v43 }
0x12be   :  { %v7261_v27 = vcombine.low %v7236_v11, %v7244_v56  ;;  %v7262_v44 = vcombine.high %v7236_v11, %v7244_v56  ;;  %v7277_v49 = vcombine.low %v7252_v30, %v7260_v9  ;;  %v7162_v55 = vcombine.high %v7072_v33, %v7080_v43 }
0x12bf   :  { %v6851_v24 = vcombine.low %v15831_v46, %v6774_v29  ;;  %v6852_v10 = vcombine.high %v15831_v46, %v6774_v29  ;;  %v7185_v2 = vrot.slane %v7177_v5, %v14574_v13  ;;  %v7192_v3 = vrot.slane %v7178_v53, %v14574_v13 }
0x12c0   :  { %v6780_v6 = vpop.permute.xlu0 %6779  ;;  %v15883_v8 = vrot.slane %v7261_v27, %v14581_v21  ;;  %v15886_v52 = vrot.slane %v7277_v49, %v14581_v21  ;;  %v7169_v31 = vrot.slane %v7161_v41, %v14574_v13  ;;  %v7176_v32 = vrot.slane %v7162_v55, %v14574_v13 }
0x12c1   :  { %v7278_v33 = vcombine.high %v7252_v30, %v7260_v9  ;;  %v6859_v20 = vrot.slane %v6851_v24, %v14574_v13  ;;  %v6866_v46 = vrot.slane %v6852_v10, %v14574_v13  ;;  %v6867_v18 = vcombine.low %v6768_v57, %v6780_v6  ;;  %v6746_v30 = vpop.permute.xlu1 %6745 }
0x12c2   :  { %v7193_v34 = vcombine.low %v7169_v31, %v7185_v2  ;;  %v7194_v43 = vcombine.high %v7169_v31, %v7185_v2  ;;  %v7209_v22 = vcombine.low %v7176_v32, %v7192_v3  ;;  %v7210_v28 = vcombine.high %v7176_v32, %v7192_v3 }
0x12c3   :  { %v6868_v62 = vcombine.high %v6768_v57, %v6780_v6  ;;  %v6875_v54 = vrot.slane %v6867_v18, %v14574_v13  ;;  %v7293_v58 = vcombine.low %v15883_v8, %v15886_v52  ;;  %v15898_v51 = vrot.slane %v7262_v44, %v14581_v21 }
0x12c4   :  { %v7201_v26 = vrot.slane %v7193_v34, %v14581_v21  ;;  %v7208_v0 = vrot.slane %v7194_v43, %v14581_v21  ;;  %v7217_v11 = vrot.slane %v7209_v22, %v14581_v21  ;;  %v7224_v56 = vrot.slane %v7210_v28, %v14581_v21  ;;  %v6759_v34 = vpop.permute.xlu0 %6758 }
0x12c5   :  { %v6882_v9 = vrot.slane %v6868_v62, %v14574_v13  ;;  %v6883_v57 = vcombine.low %v6859_v20, %v6875_v54  ;;  %v6884_v29 = vcombine.high %v6859_v20, %v6875_v54  ;;  %13883 = vmatpush3.xpose.msk.msra.mxu1 %vm1389_vm2, %v7293_v58  ;;  %v15907_v27 = vrot.slane %v7278_v33, %v14581_v21 }
0x12c6   :  { %v7297_v44 = vcombine.low %v7201_v26, %v7208_v0  ;;  %v13191_v49 = vcombine.high %v7201_v26, %v7208_v0  ;;  %v7313_v5 = vcombine.low %v7217_v11, %v7224_v56  ;;  %v13192_v53 = vcombine.high %v7217_v11, %v7224_v56  ;;  %13887 = vmatprep.subr.mxu1 %v17063_v17  ;;  %v6748_v0 = vpop.permute.xlu1 %6747 }
0x12c7   :  { %v6891_v41 = vrot.slane %v6883_v57, %v14581_v21  ;;  %v6898_v55 = vrot.slane %v6884_v29, %v14581_v21  ;;  %v6899_v24 = vcombine.low %v6866_v46, %v6882_v9  ;;  %v6900_v10 = vcombine.high %v6866_v46, %v6882_v9 }
0x12c8   :  { %v7304_v6 = vrot.slane %v7297_v44, %v14574_v13  ;;  %v7312_v2 = vrot.slane %v13191_v49, %v14574_v13  ;;  %v7320_v3 = vrot.slane %v7313_v5, %v14574_v13  ;;  %v7328_v31 = vrot.slane %v13192_v53, %v14574_v13 }
0x12c9   :  { %v6907_v32 = vrot.slane %v6899_v24, %v14581_v21  ;;  %v6914_v33 = vrot.slane %v6900_v10, %v14581_v21  ;;  %v6987_v20 = vcombine.low %v6891_v41, %v6898_v55  ;;  %v13187_v18 = vcombine.high %v6891_v41, %v6898_v55 }
0x12ca   :  { %v6952_v43 = vcombine.high %v15863_v60, %v15866_v15  ;;  %v6967_v46 = vcombine.low %v15873_v1, %v15876_v25  ;;  %v6968_v22 = vcombine.high %v15873_v1, %v15876_v25  ;;  %v6751_v28 = vsub.f32 %v15806_v12, %v6746_v30 }
0x12cb   :  { %v6994_v62 = vrot.slane %v6987_v20, %v14574_v13  ;;  %v7002_v54 = vrot.slane %v13187_v18, %v14574_v13  ;;  %v7003_v58 = vcombine.low %v6907_v32, %v6914_v33  ;;  %v13188_v26 = vcombine.high %v6907_v32, %v6914_v33 }
0x12cc   :  { %v7329_v11 = vcombine.low %v7304_v6, %v7312_v2  ;;  %v7295_v56 = vcombine.low %v15898_v51, %v15907_v27  ;;  %v15929_v9 = vadd.f32 %v6759_v34, %v6751_v28  ;;  %v6959_v1 = vrot.slane %v6951_v19, %v14581_v21 }
0x12cd   :  { %v7345_v25 = vcombine.low %v7320_v3, %v7328_v31  ;;  %v7010_v12 = vrot.slane %v7003_v58, %v14574_v13  ;;  %v7018_v30 = vrot.slane %v13188_v26, %v14574_v13  ;;  %v7019_v57 = vcombine.low %v6994_v62, %v7002_v54 }
0x12ce   :  { %13893 = vmatpush3.xpose.msk.msra.mxu0 %vm1389_vm2, %v7295_v56  ;;  %v6752_v29 = vsub.f32 %v15804_v47, %v6748_v0  ;;  %v6975_v44 = vrot.slane %v6967_v46, %v14581_v21  ;;  %v6966_v49 = vrot.slane %v6952_v43, %v14581_v21  ;;  %v6982_v5 = vrot.slane %v6968_v22, %v14581_v21 }
0x12cf   :  { %v7035_v53 = vcombine.low %v7010_v12, %v7018_v30  ;;  %7371 = vrot.lane.b32.xlu0 %v15929_v9, %s14321_s4  ;;  %7367 = vrot.lane.b32.xlu1 %v15929_v9, %s14322_s12  ;;  %v7330_v60 = vcombine.high %v7304_v6, %v7312_v2  ;;  %v7346_v15 = vcombine.high %v7320_v3, %v7328_v31 }
0x12d0   :  { %v6983_v19 = vcombine.low %v6959_v1, %v6975_v44  ;;  %v6985_v41 = vcombine.low %v6966_v49, %v6982_v5  ;;  %13902 = vmatprep.subr.mxu0 %v17063_v17  ;;  %v7294_v47 = vcombine.high %v15883_v8, %v15886_v52  ;;  %v7337_v55 = vrot.slane %v7329_v11, %v14581_v21 }
0x12d1   :  { %v7353_v24 = vrot.slane %v7345_v25, %v14581_v21  ;;  %v7027_v10 = vrot.slane %v7019_v57, %v14581_v21  ;;  %v15952_v32 = vadd.f32 %v6759_v34, %v6752_v29  ;;  %v7043_v6 = vrot.slane %v7035_v53, %v14581_v21 }
0x12d2   :  { %13885 = vmatmul.mubr.msk.f32.vlgmr.msra.gmra.mxu1 %vm1389_vm2, %v6983_v19  ;;  %13895 = vmatmul.mubr.msk.f32.vlgmr.msra.gmra.mxu0 %vm1389_vm2, %v6985_v41  ;;  %v7020_v2 = vcombine.high %v6994_v62, %v7002_v54  ;;  %v7036_v3 = vcombine.high %v7010_v12, %v7018_v30  ;;  %v6984_v52 = vcombine.high %v6959_v1, %v6975_v44 }
0x12d3   :  { %13888 = vmatpush3.xpose.msk.msra.mxu1 %vm1389_vm2, %v7294_v47  ;;  %13889 = vmatprep.mubr.msk.f32.mxu1 %vm14327_vm1, %v17063_v17  ;;  %v7361_v8 = vcombine.low %v7337_v55, %v7353_v24  ;;  %v7344_v31 = vrot.slane %v7330_v60, %v14581_v21  ;;  %v7360_v33 = vrot.slane %v7346_v15, %v14581_v21 }
0x12d4   :  { %13897 = vmatprep.subr.mxu1 %v17063_v17  ;;  %7373 = vrot.lane.b32.xlu0 %v15952_v32, %s14321_s4  ;;  %v7296_v20 = vcombine.high %v15898_v51, %v15907_v27  ;;  %v7051_v18 = vcombine.low %v7027_v10, %v7043_v6  ;;  %v7034_v34 = vrot.slane %v7020_v2, %v14581_v21 }
0x12d5   :  { %13903 = vmatpush3.xpose.msk.msra.mxu0 %vm1389_vm2, %v7361_v8  ;;  %7375 = vrot.lane.b32.xlu1 %v15929_v9, %s14323_s13  ;;  %v7050_v51 = vrot.slane %v7036_v3, %v14581_v21  ;;  %v6986_v27 = vcombine.high %v6966_v49, %v6982_v5  ;;  %v7363_v43 = vcombine.low %v7344_v31, %v7360_v33 }
0x12d6   :  { %13890 = vmatmul.mubr.msk.f32.vlgmr.msra.gmra.mxu1 %vm1389_vm2, %v6984_v52  ;;  %13904 = vmatprep.mubr.msk.f32.mxu0 %vm14327_vm1, %v17063_v17  ;;  %v7362_v46 = vcombine.high %v7337_v55, %v7353_v24  ;;  %v7052_v22 = vcombine.high %v7027_v10, %v7043_v6  ;;  %v7364_v62 = vcombine.high %v7344_v31, %v7360_v33 }
0x12d7   :  { %13898 = vmatpush3.xpose.msk.msra.mxu1 %vm1389_vm2, %v7296_v20  ;;  %13899 = vmatprep.mubr.msk.f32.mxu1 %vm14327_vm1, %v17063_v17  ;;  %v7053_v28 = vcombine.low %v7034_v34, %v7050_v51  ;;  %v7054_v54 = vcombine.high %v7034_v34, %v7050_v51 }
0x12d8   :  { %13907 = vmatprep.subr.mxu1 %v17063_v17  ;;  %13912 = vmatprep.subr.mxu0 %v17063_v17 }
0x12d9   :  { %7369 = vrot.lane.b32.xlu1 %v15952_v32, %s14322_s12  ;;  %13905 = vmatmul.mubr.msk.f32.vlgmr.msra.gmra.mxu0 %vm1389_vm2, %v7051_v18 }
0x12da   :  { %13900 = vmatmul.mubr.msk.f32.vlgmr.msra.gmra.mxu1 %vm1389_vm2, %v6986_v27  ;;  %13913 = vmatpush3.xpose.msk.msra.mxu0 %vm1389_vm2, %v7363_v43 }
0x12db   :  { %13908 = vmatpush3.xpose.msk.msra.mxu1 %vm1389_vm2, %v7362_v46  ;;  %13909 = vmatprep.mubr.msk.f32.mxu1 %vm14327_vm1, %v17063_v17 }
0x12dc   :  { %13917 = vmatprep.subr.mxu1 %v17063_v17  ;;  %13914 = vmatprep.mubr.msk.f32.mxu0 %vm14327_vm1, %v17063_v17 }
0x12dd   :  { %7377 = vrot.lane.b32.xlu1 %v15952_v32, %s14323_s13  ;;  %13915 = vmatmul.mubr.msk.f32.vlgmr.msra.gmra.mxu0 %vm1389_vm2, %v7053_v28 }
0x12de   :  { %13910 = vmatmul.mubr.msk.f32.vlgmr.msra.gmra.mxu1 %vm1389_vm2, %v7052_v22  ;;  %13922 = vmatprep.subr.mxu0 %v17063_v17 }
0x12df   :  { %13918 = vmatpush3.xpose.msk.msra.mxu1 %vm1389_vm2, %v7364_v62  ;;  %13919 = vmatprep.mubr.msk.f32.mxu1 %vm14327_vm1, %v17063_v17 }
0x12e0   :  { %13927 = vmatprep.subr.mxu1 %v17063_v17  ;;  %13924 = vmatprep.mubr.msk.f32.mxu0 %vm14327_vm1, %v17063_v17 }
0x12e1   :  { %7379 = vrot.lane.b32.xlu1 %v15929_v9, %s14326_s15 }
0x12e2   :  { %13920 = vmatmul.mubr.msk.f32.vlgmr.msra.gmra.mxu1 %vm1389_vm2, %v7054_v54 }
0x12e3   :  { %13929 = vmatprep.mubr.msk.f32.mxu1 %vm14327_vm1, %v17063_v17 }
0x1341   :  { %v7372_v58 = vpop.permute.xlu0 %7371  ;;  %v7368_v26 = vpop.permute.xlu1 %7367 }
0x1342   :  { %7387 = vrot.lane.b32.xlu1 %v7372_v58, %s14326_s15  ;;  %7383 = vrot.lane.b32.xlu0 %v7368_v26, %s14326_s15 }
0x1346   :  { %v16035_v31 = vpop.permute.xlu0 %7373 }
0x1347   :  { %v7376_v6 = vpop.permute.xlu1 %7375 }
0x134b   :  { %v7370_v8 = vpop.permute.xlu1 %7369 }
0x134f   :  { %v16033_v52 = vpop.permute.xlu1 %7377 }
0x1353   :  { %v7380_v33 = vpop.permute.xlu1 %7379 }
0x1392   :  { %v7747_v0 = vpop.f32.mrf.mxu1  ;;  %v7899_v11 = vpop.f32.mrf.mxu0 }
0x1393   :  { %v8283_v56 = vsel %vm1389_vm2, %v7747_v0, -inf  ;;  %v8289_v30 = vsel %vm1389_vm2, %v7899_v11, -inf }
0x1394   :  { %v13886_v1 = vpop.f32.mrf.mxu1  ;;  %v13896_v25 = vpop.f32.mrf.mxu0  ;;  %8284 = vmax.xlane.f32.xlu0 %v8283_v56 }
0x1396   :  { %v7823_v12 = vpop.f32.mrf.mxu1 }
0x1397   :  { %v8286_v9 = vsel %vm1389_vm2, %v7823_v12, -inf }
0x1398   :  { %v13891_v57 = vpop.f32.mrf.mxu1  ;;  %8287 = vmax.xlane.f32.xlu1 %v8286_v9  ;;  %8290 = vmax.xlane.f32.xlu0 %v8289_v30 }
0x1399   :  { %v16012_v29 = vpop.f32.mrf.mxu0 }
0x139a   :  { %v7975_v44 = vpop.f32.mrf.mxu1  ;;  %v8295_v2 = vsel %vm1389_vm2, %v16012_v29, -inf }
0x139b   :  { %v8292_v49 = vsel %vm1389_vm2, %v7975_v44, -inf  ;;  %v13906_v5 = vpop.f32.mrf.mxu0 }
0x139c   :  { %v13901_v53 = vpop.f32.mrf.mxu1  ;;  %8293 = vmax.xlane.f32.xlu0 %v8292_v49 }
0x139d   :  { %v16015_v60 = vpop.f32.mrf.mxu0 }
0x139e   :  { %v16017_v15 = vpop.f32.mrf.mxu1  ;;  %v8301_v3 = vsel %vm1389_vm2, %v16015_v60, -inf }
0x139f   :  { %v8298_v19 = vsel %vm1389_vm2, %v16017_v15, -inf  ;;  %v13916_v41 = vpop.f32.mrf.mxu0 }
0x13a0   :  { %v13911_v47 = vpop.f32.mrf.mxu1  ;;  %8299 = vmax.xlane.f32.xlu0 %v8298_v19 }
0x13a2   :  { %v16021_v55 = vpop.f32.mrf.mxu1 }
0x13a3   :  { %v8304_v24 = vsel %vm1389_vm2, %v16021_v55, -inf }
0x13a4   :  { %v13921_v10 = vpop.f32.mrf.mxu1  ;;  %8305 = vmax.xlane.f32.xlu0 %v8304_v24 }
0x13a9   :  { %7391 = vrot.lane.b32.xlu1 %v7376_v6, %s14326_s15 }
0x13b4   :  { %v7384_v20 = vpop.permute.xlu0 %7383  ;;  %v7388_v18 = vpop.permute.xlu1 %7387 }
0x13b5   :  { %v7403_v28 = vcombine.low %v7380_v33, %v7388_v18  ;;  %v7404_v62 = vcombine.high %v7380_v33, %v7388_v18 }
0x13b7   :  { %v7411_v30 = vrot.slane %v7403_v28, %v14574_v13 }
0x13ba   :  { %7381 = vrot.lane.b32.xlu0 %v15952_v32, %s14326_s15 }
0x13cd   :  { %8296 = vmax.xlane.f32.xlu1 %v8295_v2 }
0x13d1   :  { %8302 = vmax.xlane.f32.xlu1 %v8301_v3 }
0x13e2   :  { %7385 = vrot.lane.b32.xlu1 %v7370_v8, %s14326_s15 }
0x141d   :  { %v8285_v34 = vpop.xlane.xlu0 %8284 }
0x141e   :  { %v8307_v32 = vsub.f32 %v7747_v0, %v8285_v34  ;;  %v7418_v0 = vrot.slane %v7404_v62, %v14574_v13 }
0x1420   :  { %v8315_v51 = vmul.f32 1.442695, %v8307_v32 }
0x1421   :  { %v8291_v27 = vpop.xlane.xlu0 %8290  ;;  %v8288_v43 = vpop.xlane.xlu1 %8287 }
0x1422   :  { %14226 = vpow2.f32 %v8315_v51  ;;  %v8309_v46 = vsub.f32 %v7899_v11, %v8291_v27  ;;  %v8308_v22 = vsub.f32 %v7823_v12, %v8288_v43 }
0x1424   :  { %v8319_v54 = vmul.f32 1.442695, %v8309_v46  ;;  %v8317_v58 = vmul.f32 1.442695, %v8308_v22 }
0x1425   :  { %v8294_v26 = vpop.xlane.xlu0 %8293  ;;  %v7392_v56 = vpop.permute.xlu1 %7391 }
0x1426   :  { %14228 = vpow2.f32 %v8319_v54  ;;  %v8310_v1 = vsub.f32 %v7975_v44, %v8294_v26  ;;  %v7419_v25 = vcombine.low %v7384_v20, %v7392_v56  ;;  %v7420_v9 = vcombine.high %v7384_v20, %v7392_v56 }
0x1427   :  { %14230 = vpow2.f32 %v8317_v58 }
0x1428   :  { %v8321_v57 = vmul.f32 1.442695, %v8310_v1  ;;  %v7427_v49 = vrot.slane %v7419_v25, %v14574_v13  ;;  %v7434_v11 = vrot.slane %v7420_v9, %v14574_v13 }
0x142a   :  { %14232 = vpow2.f32 %v8321_v57  ;;  %v7435_v12 = vcombine.low %v7411_v30, %v7427_v49  ;;  %v7436_v5 = vcombine.high %v7411_v30, %v7427_v49  ;;  %v7451_v53 = vcombine.low %v7418_v0, %v7434_v11 }
0x142b   :  { %v7452_v19 = vcombine.high %v7418_v0, %v7434_v11  ;;  %v8300_v11 = vpop.xlane.xlu0 %8299 }
0x142c   :  { %v7443_v41 = vrot.slane %v7435_v12, %v14581_v21  ;;  %v7450_v44 = vrot.slane %v7436_v5, %v14581_v21  ;;  %v7459_v47 = vrot.slane %v7451_v53, %v14581_v21 }
0x142d   :  { %v7466_v24 = vrot.slane %v7452_v19, %v14581_v21 }
0x142e   :  { %v7539_v10 = vcombine.low %v7443_v41, %v7450_v44  ;;  %v13193_v6 = vcombine.high %v7443_v41, %v7450_v44  ;;  %v8312_v41 = vsub.f32 %v16017_v15, %v8300_v11 }
0x142f   :  { %v16045_v2 = vpop.eup %14226  ;;  %v7555_v3 = vcombine.low %v7459_v47, %v7466_v24  ;;  %v13194_v8 = vcombine.high %v7459_v47, %v7466_v24  ;;  %v8306_v12 = vpop.xlane.xlu0 %8305 }
0x1430   :  { %v8331_v33 = vsel %vm1389_vm2, %v16045_v2, 0.0  ;;  %v7546_v20 = vrot.slane %v7539_v10, %v14574_v13  ;;  %v7554_v18 = vrot.slane %v13193_v6, %v14574_v13  ;;  %v8314_v5 = vsub.f32 %v16021_v55, %v8306_v12 }
0x1431   :  { %8332 = vadd.xlane.f32.xlu0 %v8331_v33  ;;  %v7562_v34 = vrot.slane %v7555_v3, %v14574_v13  ;;  %v7570_v32 = vrot.slane %v13194_v8, %v14574_v13  ;;  %v8325_v6 = vmul.f32 1.442695, %v8312_v41 }
0x1432   :  { %v7571_v51 = vcombine.low %v7546_v20, %v7554_v18  ;;  %v7572_v27 = vcombine.high %v7546_v20, %v7554_v18  ;;  %v8329_v44 = vmul.f32 1.442695, %v8314_v5 }
0x1433   :  { %v16053_v43 = vpop.eup %14228  ;;  %v7587_v46 = vcombine.low %v7562_v34, %v7570_v32  ;;  %v7588_v22 = vcombine.high %v7562_v34, %v7570_v32  ;;  %v7382_v34 = vpop.permute.xlu0 %7381 }
0x1434   :  { %v16055_v28 = vpop.eup %14230  ;;  %v8337_v62 = vsel %vm1389_vm2, %v16053_v43, 0.0  ;;  %v7579_v54 = vrot.slane %v7571_v51, %v14581_v21  ;;  %v16061_v58 = vrot.slane %v7572_v27, %v14581_v21 }
0x1435   :  { %8338 = vadd.xlane.f32.xlu0 %v8337_v62  ;;  %v8334_v26 = vsel %vm1389_vm2, %v16055_v28, 0.0  ;;  %v7595_v56 = vrot.slane %v7587_v46, %v14581_v21  ;;  %v16067_v1 = vrot.slane %v7588_v22, %v14581_v21 }
0x1436   :  { %8335 = vadd.xlane.f32.xlu1 %v8334_v26 }
0x1437   :  { %v16069_v25 = vpop.eup %14232  ;;  %v7603_v9 = vcombine.low %v7579_v54, %v7595_v56  ;;  %v7604_v30 = vcombine.high %v7579_v54, %v7595_v56  ;;  %v7605_v0 = vcombine.low %v16061_v58, %v16067_v1  ;;  %v7606_v57 = vcombine.high %v16061_v58, %v16067_v1 }
0x1438   :  { %v8340_v49 = vsel %vm1389_vm2, %v16069_v25, 0.0 }
0x1439   :  { %13923 = vmatpush3.msra.mxu0 %v7603_v9  ;;  %13928 = vmatpush3.msra.mxu1 %v7604_v30 }
0x143a   :  { %8341 = vadd.xlane.f32.xlu0 %v8340_v49  ;;  %13932 = vmatprep.subr.mxu0 %v17063_v17 }
0x143b   :  { %13937 = vmatprep.subr.mxu1 %v17063_v17 }
0x1456   :  { %v8297_v53 = vpop.xlane.xlu1 %8296 }
0x1457   :  { %v8311_v19 = vsub.f32 %v16012_v29, %v8297_v53 }
0x1459   :  { %v8323_v47 = vmul.f32 1.442695, %v8311_v19 }
0x145a   :  { %v8303_v24 = vpop.xlane.xlu1 %8302 }
0x145b   :  { %14234 = vpow2.f32 %v8323_v47  ;;  %v8313_v10 = vsub.f32 %v16015_v60, %v8303_v24 }
0x145c   :  { %14236 = vpow2.f32 %v8329_v44 }
0x145d   :  { %v8327_v3 = vmul.f32 1.442695, %v8313_v10 }
0x145e   :  { %v7386_v51 = vpop.permute.xlu1 %7385 }
0x145f   :  { %14238 = vpow2.f32 %v8327_v3 }
0x1460   :  { %14240 = vpow2.f32 %v8325_v6 }
0x1468   :  { %v16083_v8 = vpop.eup %14234 }
0x1469   :  { %v8343_v55 = vsel %vm1389_vm2, %v16083_v8, 0.0  ;;  %v16087_v33 = vpop.eup %14236 }
0x146a   :  { %8344 = vadd.xlane.f32.xlu1 %v8343_v55  ;;  %v8352_v15 = vsel %vm1389_vm2, %v16087_v33, 0.0 }
0x146c   :  { %v16089_v29 = vpop.eup %14238 }
0x146d   :  { %v8349_v60 = vsel %vm1389_vm2, %v16089_v29, 0.0  ;;  %v16095_v20 = vpop.eup %14240 }
0x146e   :  { %8353 = vadd.xlane.f32.xlu1 %v8352_v15  ;;  %8350 = vadd.xlane.f32.xlu0 %v8349_v60  ;;  %v8346_v18 = vsel %vm1389_vm2, %v16095_v20, 0.0 }
0x1472   :  { %8347 = vadd.xlane.f32.xlu0 %v8346_v18 }
0x147f   :  { %7393 = vrot.lane.b32.xlu1 %v16033_v52, %s14326_s15 }
0x1488   :  { %7389 = vrot.lane.b32.xlu0 %v16035_v31, %s14326_s15 }
0x14ba   :  { %v8333_v32 = vpop.xlane.xlu0 %8332 }
0x14bb   :  { %14242 = vrcp.f32 %v8333_v32 }
0x14be   :  { %v8339_v27 = vpop.xlane.xlu0 %8338 }
0x14bf   :  { %14244 = vrcp.f32 %v8339_v27  ;;  %v8336_v46 = vpop.xlane.xlu1 %8335 }
0x14c0   :  { %14246 = vrcp.f32 %v8336_v46 }
0x14c3   :  { %v8342_v22 = vpop.xlane.xlu0 %8341 }
0x14c4   :  { %14248 = vrcp.f32 %v8342_v22 }
0x14c8   :  { %v14243_v62 = vpop.eup %14242 }
0x14c9   :  { %v8363_v54 = vmul.f32 %v14243_v62, %v16045_v2 }
0x14cb   :  { %13925 = vmatmul.mubr.msk.f32.vlgmr.msra.gmra.mxu0 %vm1389_vm2, %v8363_v54 }
0x14cc   :  { %v14245_v58 = vpop.eup %14244  ;;  %13933 = vmatpush3.msra.mxu0 %v7605_v0  ;;  %13934 = vmatprep.mubr.msk.f32.mxu0 %vm14327_vm1, %v17063_v17 }
0x14cd   :  { %v14247_v52 = vpop.eup %14246  ;;  %v8365_v31 = vmul.f32 %v14245_v58, %v16053_v43  ;;  %13942 = vmatprep.subr.mxu0 %v17063_v17 }
0x14ce   :  { %v8364_v26 = vmul.f32 %v14247_v52, %v16055_v28 }
0x14cf   :  { %13935 = vmatmul.mubr.msk.f32.vlgmr.msra.gmra.mxu0 %vm1389_vm2, %v8365_v31 }
0x14d0   :  { %13930 = vmatmul.mubr.msk.f32.vlgmr.msra.gmra.mxu1 %vm1389_vm2, %v8364_v26  ;;  %13944 = vmatprep.mubr.msk.f32.mxu0 %vm14327_vm1, %v17063_v17 }
0x14d1   :  { %v14249_v2 = vpop.eup %14248  ;;  %13938 = vmatpush3.msra.mxu1 %v7606_v57  ;;  %13939 = vmatprep.mubr.msk.f32.mxu1 %vm14327_vm1, %v17063_v17 }
0x14d2   :  { %v8366_v56 = vmul.f32 %v14249_v2, %v16069_v25  ;;  %13947 = vmatprep.subr.mxu1 %v17063_v17 }
0x14d4   :  { %13940 = vmatmul.mubr.msk.f32.vlgmr.msra.gmra.mxu1 %vm1389_vm2, %v8366_v56 }
0x14d5   :  { %13949 = vmatprep.mubr.msk.f32.mxu1 %vm14327_vm1, %v17063_v17 }
0x14f3   :  { %v8345_v43 = vpop.xlane.xlu1 %8344 }
0x14f4   :  { %14250 = vrcp.f32 %v8345_v43 }
0x14f7   :  { %v8351_v28 = vpop.xlane.xlu0 %8350  ;;  %v8354_v1 = vpop.xlane.xlu1 %8353 }
0x14fb   :  { %v8348_v9 = vpop.xlane.xlu0 %8347  ;;  %v7394_v30 = vpop.permute.xlu1 %7393 }
0x14fc   :  { %v7487_v0 = vcombine.low %v7386_v51, %v7394_v30  ;;  %v7488_v49 = vcombine.high %v7386_v51, %v7394_v30  ;;  %14252 = vrcp.f32 %v8348_v9 }
0x14fd   :  { %14254 = vrcp.f32 %v8351_v28 }
0x14fe   :  { %v7495_v25 = vrot.slane %v7487_v0, %v14574_v13  ;;  %v7502_v5 = vrot.slane %v7488_v49, %v14574_v13  ;;  %14256 = vrcp.f32 %v8354_v1 }
0x14ff   :  { %v7390_v57 = vpop.permute.xlu0 %7389 }
0x1500   :  { %v7471_v11 = vcombine.low %v7382_v34, %v7390_v57  ;;  %v7472_v12 = vcombine.high %v7382_v34, %v7390_v57 }
0x1501   :  { %v14251_v52 = vpop.eup %14250 }
0x1502   :  { %v7479_v53 = vrot.slane %v7471_v11, %v14574_v13  ;;  %v7486_v19 = vrot.slane %v7472_v12, %v14574_v13  ;;  %v8367_v30 = vmul.f32 %v14251_v52, %v16083_v8 }
0x1504   :  { %v7503_v41 = vcombine.low %v7479_v53, %v7495_v25  ;;  %v7504_v44 = vcombine.high %v7479_v53, %v7495_v25  ;;  %v7519_v47 = vcombine.low %v7486_v19, %v7502_v5  ;;  %v7520_v24 = vcombine.high %v7486_v19, %v7502_v5 }
0x1506   :  { %v7511_v10 = vrot.slane %v7503_v41, %v14581_v21  ;;  %v7518_v6 = vrot.slane %v7504_v44, %v14581_v21  ;;  %v7527_v3 = vrot.slane %v7519_v47, %v14581_v21  ;;  %v7534_v55 = vrot.slane %v7520_v24, %v14581_v21 }
0x1508   :  { %v7607_v15 = vcombine.low %v7511_v10, %v7518_v6  ;;  %v13195_v60 = vcombine.high %v7511_v10, %v7518_v6  ;;  %v7623_v18 = vcombine.low %v7527_v3, %v7534_v55  ;;  %v13196_v34 = vcombine.high %v7527_v3, %v7534_v55 }
0x1509   :  { %v14253_v31 = vpop.eup %14252 }
0x150a   :  { %v7614_v32 = vrot.slane %v7607_v15, %v14574_v13  ;;  %v7622_v51 = vrot.slane %v13195_v60, %v14574_v13  ;;  %v7630_v27 = vrot.slane %v7623_v18, %v14574_v13  ;;  %v7638_v46 = vrot.slane %v13196_v34, %v14574_v13  ;;  %v14255_v28 = vpop.eup %14254 }
0x150b   :  { %v8368_v0 = vmul.f32 %v14253_v31, %v16095_v20  ;;  %v14257_v49 = vpop.eup %14256  ;;  %v8369_v12 = vmul.f32 %v14255_v28, %v16089_v29 }
0x150c   :  { %v7639_v22 = vcombine.low %v7614_v32, %v7622_v51  ;;  %v7655_v62 = vcombine.low %v7630_v27, %v7638_v46  ;;  %v7640_v54 = vcombine.high %v7614_v32, %v7622_v51  ;;  %v7656_v58 = vcombine.high %v7630_v27, %v7638_v46 }
0x150d   :  { %v8370_v8 = vmul.f32 %v14257_v49, %v16087_v33 }
0x150e   :  { %v7647_v26 = vrot.slane %v7639_v22, %v14581_v21  ;;  %v7663_v2 = vrot.slane %v7655_v62, %v14581_v21  ;;  %v7654_v56 = vrot.slane %v7640_v54, %v14581_v21  ;;  %v7670_v43 = vrot.slane %v7656_v58, %v14581_v21 }
0x1510   :  { %v7671_v1 = vcombine.low %v7647_v26, %v7663_v2  ;;  %v7672_v9 = vcombine.high %v7647_v26, %v7663_v2  ;;  %v7673_v57 = vcombine.low %v7654_v56, %v7670_v43  ;;  %v7674_v11 = vcombine.high %v7654_v56, %v7670_v43 }
0x1512   :  { %13943 = vmatpush3.msra.mxu0 %v7671_v1  ;;  %13948 = vmatpush3.msra.mxu1 %v7672_v9 }
0x1513   :  { %13945 = vmatmul.mubr.msk.f32.vlgmr.msra.gmra.mxu0 %vm1389_vm2, %v8367_v30  ;;  %13950 = vmatmul.mubr.msk.f32.vlgmr.msra.gmra.mxu1 %vm1389_vm2, %v8368_v0 }
0x1514   :  { %13952 = vmatprep.subr.mxu0 %v17063_v17  ;;  %13957 = vmatprep.subr.mxu1 %v17063_v17 }
0x1515   :  { %13953 = vmatpush3.msra.mxu0 %v7673_v57  ;;  %13958 = vmatpush3.msra.mxu1 %v7674_v11 }
0x1516   :  { %13954 = vmatprep.mubr.msk.f32.mxu0 %vm14327_vm1, %v17063_v17  ;;  %13959 = vmatprep.mubr.msk.f32.mxu1 %vm14327_vm1, %v17063_v17 }
0x1517   :  { %13955 = vmatmul.mubr.msk.f32.vlgmr.msra.gmra.mxu0 %vm1389_vm2, %v8369_v12  ;;  %13960 = vmatmul.mubr.msk.f32.vlgmr.msra.gmra.mxu1 %vm1389_vm2, %v8370_v8 }
0x158b   :  { %v8440_v20 = vpop.f32.mrf.mxu0 }
0x158d   :  { %v13926_v25 = vpop.f32.mrf.mxu0 }
0x158f   :  { %v8586_v5 = vpop.f32.mrf.mxu0 }
0x1590   :  { %v8513_v53 = vpop.f32.mrf.mxu1  ;;  %v8955_v44 = vcombine.low %v8440_v20, %v8586_v5  ;;  %v8956_v29 = vcombine.high %v8440_v20, %v8586_v5 }
0x1591   :  { %v13936_v19 = vpop.f32.mrf.mxu0 }
0x1592   :  { %v13931_v41 = vpop.f32.mrf.mxu1  ;;  %v8963_v6 = vrot.slane %v8955_v44, %v14574_v13  ;;  %v8970_v3 = vrot.slane %v8956_v29, %v14574_v13 }
0x1594   :  { %v8659_v47 = vpop.f32.mrf.mxu1 }
0x1595   :  { %v8971_v33 = vcombine.low %v8513_v53, %v8659_v47  ;;  %v8972_v24 = vcombine.high %v8513_v53, %v8659_v47 }
0x1596   :  { %v13941_v10 = vpop.f32.mrf.mxu1 }
0x1597   :  { %v8979_v55 = vrot.slane %v8971_v33, %v14574_v13  ;;  %v8986_v15 = vrot.slane %v8972_v24, %v14574_v13 }
0x1599   :  { %v8987_v60 = vcombine.low %v8963_v6, %v8979_v55  ;;  %v8988_v18 = vcombine.high %v8963_v6, %v8979_v55  ;;  %v9003_v34 = vcombine.low %v8970_v3, %v8986_v15  ;;  %v9004_v32 = vcombine.high %v8970_v3, %v8986_v15 }
0x159b   :  { %v8995_v51 = vrot.slane %v8987_v60, %v14581_v21  ;;  %v9002_v27 = vrot.slane %v8988_v18, %v14581_v21  ;;  %v9011_v46 = vrot.slane %v9003_v34, %v14581_v21  ;;  %v9018_v22 = vrot.slane %v9004_v32, %v14581_v21 }
0x159d   :  { %v9091_v62 = vcombine.low %v8995_v51, %v9002_v27  ;;  %v13221_v54 = vcombine.high %v8995_v51, %v9002_v27  ;;  %v9107_v58 = vcombine.low %v9011_v46, %v9018_v22  ;;  %v13222_v52 = vcombine.high %v9011_v46, %v9018_v22  ;;  %v13170_v27 = vld [vmem:[%s17051_s3 + $0x78] sm:$0xff]  ;;  %v13169_v46 = vld [vmem:[%s17051_s3 + $0x70] sm:$0xff] }
0x159e   :  { %13962 = vmatprep.subr.mxu0 %v13170_v27 }
0x159f   :  { %v9098_v31 = vrot.slane %v9091_v62, %v14574_v13  ;;  %v9106_v26 = vrot.slane %v13221_v54, %v14574_v13  ;;  %v9114_v2 = vrot.slane %v9107_v58, %v14574_v13  ;;  %v9122_v56 = vrot.slane %v13222_v52, %v14574_v13  ;;  %13963 = vmatpush3.msra.mxu0 %v13170_v27 }
0x15a0   :  { %13964 = vmatprep.subr.mxu0 %v13169_v46 }
0x15a1   :  { %v9123_v43 = vcombine.low %v9098_v31, %v9106_v26  ;;  %v9139_v28 = vcombine.low %v9114_v2, %v9122_v56  ;;  %v9124_v1 = vcombine.high %v9098_v31, %v9106_v26  ;;  %v9140_v9 = vcombine.high %v9114_v2, %v9122_v56  ;;  %13965 = vmatpush3.msra.mxu0 %v13169_v46  ;;  %v13168_v56 = vld [vmem:[%s17051_s3 + $0x68] sm:$0xff] }
0x15a2   :  { %13966 = vmatprep.subr.mxu0 %v13168_v56 }
0x15a3   :  { %v16164_v30 = vrot.slane %v9123_v43, %v14581_v21  ;;  %v16167_v0 = vrot.slane %v9139_v28, %v14581_v21  ;;  %v9138_v57 = vrot.slane %v9124_v1, %v14581_v21  ;;  %v9154_v11 = vrot.slane %v9140_v9, %v14581_v21  ;;  %v13167_v43 = vld [vmem:[%s17051_s3 + $0x60] sm:$0xff]  ;;  %13967 = vmatpush3.msra.mxu0 %v13168_v56 }
0x15a4   :  { %13968 = vmatprep.subr.mxu0 %v13167_v43 }
0x15a5   :  { %v9156_v49 = vcombine.high %v16164_v30, %v16167_v0  ;;  %v9155_v12 = vcombine.low %v16164_v30, %v16167_v0  ;;  %v9157_v8 = vcombine.low %v9138_v57, %v9154_v11  ;;  %v9158_v20 = vcombine.high %v9138_v57, %v9154_v11  ;;  %13969 = vmatpush3.msra.mxu0 %v13167_v43  ;;  %v16226_v30 = vld [vmem:[%s17049_s7 + $0x10] sm:$0xff] }
0x15a6   :  { %13984 = vmatprep.subr.mxu0 %v17063_v17  ;;  %v9260_v0 = vrot.slane %v16226_v30, %v14947_v63 }
0x15a7   :  { %9229 = vrot.lane.b32.xlu0 %v9156_v49, %s14330_s16 }
0x15ab   :  { %9237 = vrot.lane.b32.xlu0 %v9157_v8, %s14331_s17 }
0x15af   :  { %9245 = vrot.lane.b32.xlu0 %v9158_v20, %s14332_s18 }
0x15d3   :  { %v8732_v25 = vpop.f32.mrf.mxu0  ;;  %v8805_v5 = vpop.f32.mrf.mxu1 }
0x15d5   :  { %v13946_v53 = vpop.f32.mrf.mxu0  ;;  %v13951_v19 = vpop.f32.mrf.mxu1 }
0x15d7   :  { %v8878_v41 = vpop.f32.mrf.mxu0  ;;  %v8951_v44 = vpop.f32.mrf.mxu1 }
0x15d8   :  { %v9023_v29 = vcombine.low %v8732_v25, %v8878_v41  ;;  %v9024_v47 = vcombine.high %v8732_v25, %v8878_v41  ;;  %v9039_v33 = vcombine.low %v8805_v5, %v8951_v44  ;;  %v9040_v24 = vcombine.high %v8805_v5, %v8951_v44 }
0x15d9   :  { %v13956_v10 = vpop.f32.mrf.mxu0  ;;  %v13961_v6 = vpop.f32.mrf.mxu1 }
0x15da   :  { %v9031_v3 = vrot.slane %v9023_v29, %v14574_v13  ;;  %v9038_v55 = vrot.slane %v9024_v47, %v14574_v13  ;;  %v9047_v15 = vrot.slane %v9039_v33, %v14574_v13  ;;  %v9054_v60 = vrot.slane %v9040_v24, %v14574_v13 }
0x15dc   :  { %v9055_v18 = vcombine.low %v9031_v3, %v9047_v15  ;;  %v9056_v34 = vcombine.high %v9031_v3, %v9047_v15  ;;  %v9071_v32 = vcombine.low %v9038_v55, %v9054_v60  ;;  %v9072_v51 = vcombine.high %v9038_v55, %v9054_v60 }
0x15de   :  { %v9063_v22 = vrot.slane %v9055_v18, %v14581_v21  ;;  %v9070_v62 = vrot.slane %v9056_v34, %v14581_v21  ;;  %v9079_v54 = vrot.slane %v9071_v32, %v14581_v21  ;;  %v9086_v58 = vrot.slane %v9072_v51, %v14581_v21 }
0x15e0   :  { %v9159_v52 = vcombine.low %v9063_v22, %v9070_v62  ;;  %v13223_v31 = vcombine.high %v9063_v22, %v9070_v62  ;;  %v9175_v26 = vcombine.low %v9079_v54, %v9086_v58  ;;  %v13224_v2 = vcombine.high %v9079_v54, %v9086_v58 }
0x15e2   :  { %v9166_v28 = vrot.slane %v9159_v52, %v14574_v13  ;;  %v9174_v1 = vrot.slane %v13223_v31, %v14574_v13  ;;  %v9182_v9 = vrot.slane %v9175_v26, %v14574_v13  ;;  %v9190_v49 = vrot.slane %v13224_v2, %v14574_v13 }
0x15e3   :  { %v9472_v31 = vrot.slane %v16226_v30, %v14965_v23 }
0x15e4   :  { %v9191_v57 = vcombine.low %v9166_v28, %v9174_v1  ;;  %v9207_v11 = vcombine.low %v9182_v9, %v9190_v49  ;;  %v9192_v8 = vcombine.high %v9166_v28, %v9174_v1  ;;  %v9208_v20 = vcombine.high %v9182_v9, %v9190_v49 }
0x15e6   :  { %v9199_v25 = vrot.slane %v9191_v57, %v14581_v21  ;;  %v9215_v5 = vrot.slane %v9207_v11, %v14581_v21  ;;  %v9206_v19 = vrot.slane %v9192_v8, %v14581_v21  ;;  %v9222_v41 = vrot.slane %v9208_v20, %v14581_v21 }
0x15e8   :  { %v9224_v53 = vcombine.high %v9199_v25, %v9215_v5  ;;  %v9223_v44 = vcombine.low %v9199_v25, %v9215_v5  ;;  %v9225_v29 = vcombine.low %v9206_v19, %v9222_v41  ;;  %v9226_v47 = vcombine.high %v9206_v19, %v9222_v41  ;;  %v13171_v25 = vld [vmem:[%s17051_s3 + $0x80] sm:$0xff] }
0x15ea   :  { %9231 = vrot.lane.b32.xlu1 %v9224_v53, %s14330_s16 }
0x15ee   :  { %9239 = vrot.lane.b32.xlu1 %v9225_v29, %s14331_s17 }
0x15f2   :  { %9247 = vrot.lane.b32.xlu1 %v9226_v47, %s14332_s18 }
0x1619   :  { %v9230_v33 = vpop.permute.xlu0 %9229 }
0x161a   :  { %v9251_v10 = vsel %vm1389_vm2, %v9155_v12, %v9230_v33 }
0x161d   :  { %v9238_v24 = vpop.permute.xlu0 %9237 }
0x161e   :  { %v9253_v6 = vsel %vm2968_vm3, %v9251_v10, %v9238_v24 }
0x1621   :  { %v9246_v3 = vpop.permute.xlu0 %9245 }
0x1622   :  { %v9255_v55 = vsel %vm2971_vm4, %v9253_v6, %v9246_v3 }
0x1623   :  { %13970 = vmatprep.mubr.msk.f32.mxu0 %vm51_vm0, %v9255_v55  ;;  %v13165_v55 = vld [vmem:[%s17049_s7 + $0x18] sm:$0xff] }
0x165c   :  { %v9232_v15 = vpop.permute.xlu1 %9231 }
0x165d   :  { %v9252_v18 = vsel %vm1389_vm2, %v9223_v44, %v9232_v15  ;;  %v9373_v15 = vrot.slane %v13165_v55, %v14524_v48 }
0x1660   :  { %v9240_v60 = vpop.permute.xlu1 %9239 }
0x1661   :  { %v9254_v34 = vsel %vm2968_vm3, %v9252_v18, %v9240_v60 }
0x1664   :  { %v9248_v32 = vpop.permute.xlu1 %9247 }
0x1665   :  { %v9256_v51 = vsel %vm2971_vm4, %v9254_v34, %v9248_v32  ;;  %v9379_v34 = vrot.slane %v13165_v55, %v14407_v7 }
0x1666   :  { %13971 = vmatmul.mubr.msk.f32.vlgmr.msra.gmra.mxu0 %vm51_vm0, %v9256_v51 }
0x1667   :  { %13988 = vmatprep.mubr.msk.f32.mxu0 %vm14327_vm1, %v17063_v17 }
0x1726   :  { %v13972_v12 = vpop.f32.mrf.mxu0 }
0x1727   :  { %v9339_v27 = vadd.f32 %v13972_v12, %v9260_v0 }
0x1728   :  { %v9333_v46 = vpop.f32.mrf.mxu0 }
0x1729   :  { %v9343_v22 = vadd.f32 %v9339_v27, %v15788_v61  ;;  %v9334_v62 = vadd.f32 %v9333_v46, %v9260_v0 }
0x172b   :  { %v9342_v54 = vadd.f32 %v9334_v62, %v15790_v50  ;;  %v9347_v58 = vsel %vm51_vm0, %v9343_v22, 0.0 }
0x172c   :  { %9348 = vadd.xlane.f32.xlu1 %v9347_v58 }
0x172d   :  { %v9344_v52 = vsel %vm51_vm0, %v9342_v54, 0.0 }
0x172e   :  { %9345 = vadd.xlane.f32.xlu0 %v9344_v52  ;;  %v14317_v52 = vld [vmem:[%s17048_s0 + $0x18] sm:$0xff] }
0x173d   :  { %9474 = vrot.lane.b32.xlu1 %v9472_v31, %s14320_s23 }
0x17b5   :  { %v9349_v26 = vpop.xlane.xlu1 %9348 }
0x17b6   :  { %v9351_v2 = vmul.f32 0.03125, %v9349_v26 }
0x17b7   :  { %v9346_v56 = vpop.xlane.xlu0 %9345 }
0x17b8   :  { %v9350_v43 = vmul.f32 0.03125, %v9346_v56  ;;  %v16237_v61 = vsub.f32 %v9343_v22, %v9351_v2  ;;  %v14316_v22 = vld [vmem:[%s17048_s0 + $0x10] sm:$0xff] }
0x17b9   :  { %v9475_v28 = vpop.permute.xlu1 %9474 }
0x17ba   :  { %v9352_v1 = vsub.f32 %v9342_v54, %v9350_v43  ;;  %v9478_v50 = vadd.f32 %v14497_v35, %v9475_v28  ;;  %v9355_v57 = vmul.f32 %v16237_v61, %v16237_v61  ;;  %v9477_v11 = vadd.f32 %v9475_v28, %v14499_v36  ;;  %v13174_v36 = vld [vmem:[%s17051_s3 + $0x98] sm:$0xff] }
0x17bb   :  { %v9480_v35 = vadd.f32 %v14501_v37, %v9475_v28  ;;  %v16252_v20 = vadd.f32 %v9475_v28, %v14503_v38  ;;  %13973 = vmatprep.subr.mxu1 %v13174_v36  ;;  %v13173_v37 = vld [vmem:[%s17051_s3 + $0x90] sm:$0xff]  ;;  %v13172_v38 = vld [vmem:[%s17051_s3 + $0x88] sm:$0xff] }
0x17bc   :  { %9799 = vrot.lane.b32.xlu1 %v9478_v50, %s14321_s4  ;;  %v9354_v9 = vmul.f32 %v9352_v1, %v9352_v1  ;;  %v9359_v8 = vsel %vm51_vm0, %v9355_v57, 0.0  ;;  %13974 = vmatpush3.msra.mxu1 %v13174_v36 }
0x17bd   :  { %13975 = vmatprep.subr.mxu1 %v13173_v37 }
0x17be   :  { %v9356_v49 = vsel %vm51_vm0, %v9354_v9, 0.0  ;;  %13976 = vmatpush3.msra.mxu1 %v13173_v37 }
0x17bf   :  { %9357 = vadd.xlane.f32.xlu0 %v9356_v49  ;;  %13977 = vmatprep.subr.mxu1 %v13172_v38 }
0x17c0   :  { %9807 = vrot.lane.b32.xlu1 %v9478_v50, %s14323_s13  ;;  %13978 = vmatpush3.msra.mxu1 %v13172_v38 }
0x17c1   :  { %13979 = vmatprep.subr.mxu1 %v13171_v25 }
0x17c2   :  { %13980 = vmatpush3.msra.mxu1 %v13171_v25 }
0x17c3   :  { %9360 = vadd.xlane.f32.xlu0 %v9359_v8  ;;  %13991 = vmatprep.subr.mxu1 %v17063_v17 }
0x17c4   :  { %9797 = vrot.lane.b32.xlu1 %v9477_v11, %s14321_s4 }
0x17c8   :  { %9795 = vrot.lane.b32.xlu1 %v9480_v35, %s14322_s12 }
0x17cc   :  { %9811 = vrot.lane.b32.xlu1 %v9480_v35, %s14323_s13 }
0x17d0   :  { %9801 = vrot.lane.b32.xlu1 %v16252_v20, %s14321_s4 }
0x17d4   :  { %9815 = vrot.lane.b32.xlu1 %v9478_v50, %s14324_s14 }
0x17d9   :  { %9791 = vrot.lane.b32.xlu0 %v9478_v50, %s14322_s12 }
0x17dd   :  { %9789 = vrot.lane.b32.xlu0 %v9477_v11, %s14322_s12 }
0x17e1   :  { %9805 = vrot.lane.b32.xlu0 %v9477_v11, %s14323_s13 }
0x17e5   :  { %9803 = vrot.lane.b32.xlu0 %v9480_v35, %s14321_s4 }
0x17e9   :  { %9793 = vrot.lane.b32.xlu0 %v16252_v20, %s14322_s12 }
0x17ed   :  { %9809 = vrot.lane.b32.xlu0 %v16252_v20, %s14323_s13 }
0x182e   :  { %v9800_v5 = vpop.permute.xlu1 %9799 }
0x182f   :  { %9831 = vrot.lane.b32.xlu1 %v9800_v5, %s14324_s14 }
0x1832   :  { %v9808_v53 = vpop.permute.xlu1 %9807 }
0x1833   :  { %9813 = vrot.lane.b32.xlu1 %v9477_v11, %s14324_s14 }
0x1836   :  { %v9798_v19 = vpop.permute.xlu1 %9797 }
0x1837   :  { %9829 = vrot.lane.b32.xlu1 %v9798_v19, %s14324_s14 }
0x183a   :  { %v9796_v41 = vpop.permute.xlu1 %9795 }
0x183b   :  { %9827 = vrot.lane.b32.xlu1 %v9796_v41, %s14324_s14 }
0x183e   :  { %v16310_v26 = vpop.permute.xlu1 %9811 }
0x1842   :  { %v16312_v2 = vpop.permute.xlu1 %9801 }
0x1846   :  { %v9816_v43 = vpop.permute.xlu1 %9815 }
0x1848   :  { %v9358_v44 = vpop.xlane.xlu0 %9357 }
0x1849   :  { %v9362_v29 = vmul.f32 0.03125, %v9358_v44 }
0x184b   :  { %v9364_v47 = vadd.f32 1e-05, %v9362_v29 }
0x184c   :  { %v9361_v33 = vpop.xlane.xlu0 %9360 }
0x184d   :  { %14258 = vrsqrt.f32 %v9364_v47  ;;  %v9363_v24 = vmul.f32 0.03125, %v9361_v33 }
0x184f   :  { %v9365_v10 = vadd.f32 1e-05, %v9363_v24 }
0x1850   :  { %v9792_v6 = vpop.permute.xlu0 %9791 }
0x1851   :  { %14260 = vrsqrt.f32 %v9365_v10  ;;  %9823 = vrot.lane.b32.xlu0 %v9792_v6, %s14324_s14 }
0x1854   :  { %v9790_v3 = vpop.permute.xlu0 %9789 }
0x1855   :  { %9839 = vrot.lane.b32.xlu0 %v9808_v53, %s14324_s14 }
0x1858   :  { %v9806_v32 = vpop.permute.xlu0 %9805 }
0x1859   :  { %9821 = vrot.lane.b32.xlu0 %v9790_v3, %s14324_s14 }
0x185a   :  { %v14259_v60 = vpop.eup %14258 }
0x185b   :  { %v9368_v18 = vmul.f32 %v14259_v60, %v9352_v1 }
0x185c   :  { %v9804_v58 = vpop.permute.xlu0 %9803 }
0x185d   :  { %9837 = vrot.lane.b32.xlu0 %v9806_v32, %s14324_s14  ;;  %v9374_v51 = vmul.f32 %v9373_v15, %v9368_v18 }
0x185e   :  { %v14261_v0 = vpop.eup %14260 }
0x185f   :  { %v9369_v12 = vmul.f32 %v14261_v0, %v16237_v61  ;;  %v16292_v27 = vadd.f32 %v9379_v34, %v9374_v51 }
0x1860   :  { %v16314_v56 = vpop.permute.xlu0 %9793 }
0x1861   :  { %9819 = vrot.lane.b32.xlu0 %v9480_v35, %s14324_s14  ;;  %v9375_v46 = vmul.f32 %v9373_v15, %v9369_v12  ;;  %v9382_v62 = vadd.f32 %v14316_v22, %v16292_v27 }
0x1863   :  { %v16299_v54 = vadd.f32 %v9379_v34, %v9375_v46  ;;  %13981 = vmatprep.mubr.msk.f32.mxu1 %vm51_vm0, %v9382_v62 }
0x1864   :  { %v16316_v28 = vpop.permute.xlu0 %9809 }
0x1865   :  { %9835 = vrot.lane.b32.xlu0 %v9804_v58, %s14324_s14  ;;  %v9383_v31 = vadd.f32 %v14317_v52, %v16299_v54 }
0x1867   :  { %13982 = vmatmul.mubr.msk.f32.vlgmr.msra.gmra.mxu1 %vm51_vm0, %v9383_v31 }
0x1868   :  { %13995 = vmatprep.mubr.msk.f32.mxu1 %vm14327_vm1, %v17063_v17 }
0x18a1   :  { %v9832_v61 = vpop.permute.xlu1 %9831 }
0x18a2   :  { %v9929_v50 = vcombine.low %v9816_v43, %v9832_v61  ;;  %v9930_v9 = vcombine.high %v9816_v43, %v9832_v61 }
0x18a4   :  { %v9937_v35 = vrot.slane %v9929_v50, %v14574_v13  ;;  %v9944_v36 = vrot.slane %v9930_v9, %v14574_v13 }
0x18a5   :  { %v9814_v49 = vpop.permute.xlu1 %9813 }
0x18a9   :  { %v9830_v5 = vpop.permute.xlu1 %9829 }
0x18aa   :  { %v9861_v10 = vcombine.low %v9814_v49, %v9830_v5  ;;  %v9862_v6 = vcombine.high %v9814_v49, %v9830_v5 }
0x18ac   :  { %v9869_v22 = vrot.slane %v9861_v10, %v14574_v13  ;;  %v9876_v62 = vrot.slane %v9862_v6, %v14574_v13 }
0x18c3   :  { %v9824_v1 = vpop.permute.xlu0 %9823 }
0x18c7   :  { %v9840_v57 = vpop.permute.xlu0 %9839 }
0x18c8   :  { %v9945_v11 = vcombine.low %v9824_v1, %v9840_v57  ;;  %v9946_v8 = vcombine.high %v9824_v1, %v9840_v57 }
0x18ca   :  { %v9953_v37 = vrot.slane %v9945_v11, %v14574_v13  ;;  %v9960_v38 = vrot.slane %v9946_v8, %v14574_v13 }
0x18cb   :  { %v9822_v25 = vpop.permute.xlu0 %9821 }
0x18cc   :  { %v9961_v53 = vcombine.low %v9937_v35, %v9953_v37  ;;  %v9962_v19 = vcombine.high %v9937_v35, %v9953_v37  ;;  %v9977_v41 = vcombine.low %v9944_v36, %v9960_v38  ;;  %v9978_v44 = vcombine.high %v9944_v36, %v9960_v38 }
0x18ce   :  { %v9969_v29 = vrot.slane %v9961_v53, %v14581_v21  ;;  %v9976_v47 = vrot.slane %v9962_v19, %v14581_v21  ;;  %v9985_v33 = vrot.slane %v9977_v41, %v14581_v21  ;;  %v9992_v24 = vrot.slane %v9978_v44, %v14581_v21 }
0x18cf   :  { %v9838_v3 = vpop.permute.xlu0 %9837 }
0x18d0   :  { %v10201_v55 = vcombine.low %v9969_v29, %v9976_v47  ;;  %v13235_v15 = vcombine.high %v9969_v29, %v9976_v47  ;;  %v10217_v60 = vcombine.low %v9985_v33, %v9992_v24  ;;  %v13236_v18 = vcombine.high %v9985_v33, %v9992_v24 }
0x18d1   :  { %v9877_v34 = vcombine.low %v9822_v25, %v9838_v3  ;;  %v9878_v32 = vcombine.high %v9822_v25, %v9838_v3 }
0x18d2   :  { %v10208_v51 = vrot.slane %v10201_v55, %v14574_v13  ;;  %v10216_v0 = vrot.slane %v13235_v15, %v14574_v13  ;;  %v10224_v12 = vrot.slane %v10217_v60, %v14574_v13  ;;  %v10232_v46 = vrot.slane %v13236_v18, %v14574_v13 }
0x18d3   :  { %v9885_v58 = vrot.slane %v9877_v34, %v14574_v13  ;;  %v9892_v52 = vrot.slane %v9878_v32, %v14574_v13 }
0x18d4   :  { %v10233_v31 = vcombine.low %v10208_v51, %v10216_v0  ;;  %v10234_v43 = vcombine.high %v10208_v51, %v10216_v0  ;;  %v10249_v61 = vcombine.low %v10224_v12, %v10232_v46  ;;  %v10250_v1 = vcombine.high %v10224_v12, %v10232_v46 }
0x18d5   :  { %v9893_v50 = vcombine.low %v9869_v22, %v9885_v58  ;;  %v9894_v9 = vcombine.high %v9869_v22, %v9885_v58  ;;  %v9909_v49 = vcombine.low %v9876_v62, %v9892_v52  ;;  %v9910_v57 = vcombine.high %v9876_v62, %v9892_v52 }
0x18d6   :  { %v10241_v11 = vrot.slane %v10233_v31, %v14581_v21  ;;  %v10257_v8 = vrot.slane %v10249_v61, %v14581_v21  ;;  %v16337_v35 = vrot.slane %v10234_v43, %v14581_v21  ;;  %v16340_v36 = vrot.slane %v10250_v1, %v14581_v21 }
0x18d7   :  { %v9901_v37 = vrot.slane %v9893_v50, %v14581_v21  ;;  %v9908_v38 = vrot.slane %v9894_v9, %v14581_v21  ;;  %v9917_v25 = vrot.slane %v9909_v49, %v14581_v21  ;;  %v9924_v5 = vrot.slane %v9910_v57, %v14581_v21 }
0x18d8   :  { %v10265_v53 = vcombine.low %v10241_v11, %v10257_v8  ;;  %v10266_v19 = vcombine.high %v10241_v11, %v10257_v8  ;;  %v10267_v33 = vcombine.low %v16337_v35, %v16340_v36  ;;  %v10268_v55 = vcombine.high %v16337_v35, %v16340_v36 }
0x18d9   :  { %v10133_v41 = vcombine.low %v9901_v37, %v9908_v38  ;;  %v13233_v44 = vcombine.high %v9901_v37, %v9908_v38  ;;  %v10149_v29 = vcombine.low %v9917_v25, %v9924_v5  ;;  %v13234_v47 = vcombine.high %v9917_v25, %v9924_v5 }
0x18da   :  { %13985 = vmatpush3.xpose.msk.msra.mxu0 %vm1389_vm2, %v10265_v53  ;;  %13992 = vmatpush3.xpose.msk.msra.mxu1 %vm1389_vm2, %v10266_v19  ;;  %v9387_v31 = vrot.slane %v16226_v30, %v15097_v45 }
0x18db   :  { %v10140_v24 = vrot.slane %v10133_v41, %v14574_v13  ;;  %v10148_v10 = vrot.slane %v13233_v44, %v14574_v13  ;;  %v10156_v6 = vrot.slane %v10149_v29, %v14574_v13  ;;  %v10164_v3 = vrot.slane %v13234_v47, %v14574_v13  ;;  %13986 = vmatprep.subr.mxu0 %v17063_v17 }
0x18dc   :  { %13993 = vmatprep.subr.mxu1 %v17063_v17 }
0x18dd   :  { %v10165_v15 = vcombine.low %v10140_v24, %v10148_v10  ;;  %v10166_v60 = vcombine.high %v10140_v24, %v10148_v10  ;;  %v10181_v18 = vcombine.low %v10156_v6, %v10164_v3  ;;  %v10182_v34 = vcombine.high %v10156_v6, %v10164_v3 }
0x18df   :  { %v10173_v32 = vrot.slane %v10165_v15, %v14581_v21  ;;  %v10189_v51 = vrot.slane %v10181_v18, %v14581_v21  ;;  %v16361_v0 = vrot.slane %v10166_v60, %v14581_v21  ;;  %v16364_v12 = vrot.slane %v10182_v34, %v14581_v21 }
0x18e1   :  { %v10197_v46 = vcombine.low %v10173_v32, %v10189_v51  ;;  %v10198_v22 = vcombine.high %v10173_v32, %v10189_v51  ;;  %v10199_v62 = vcombine.low %v16361_v0, %v16364_v12  ;;  %v10200_v58 = vcombine.high %v16361_v0, %v16364_v12 }
0x18e3   :  { %13987 = vmatpush3.xpose.msk.msra.mxu0 %vm1389_vm2, %v10197_v46  ;;  %13994 = vmatpush3.xpose.msk.msra.mxu1 %vm1389_vm2, %v10198_v22 }
0x18e4   :  { %13998 = vmatprep.subr.mxu0 %v17063_v17  ;;  %14005 = vmatprep.subr.mxu1 %v17063_v17 }
0x1927   :  { %v13983_v52 = vpop.f32.mrf.mxu1 }
0x1928   :  { %v16385_v1 = vadd.f32 %v13983_v52, %v9387_v31 }
0x1929   :  { %v9460_v43 = vpop.f32.mrf.mxu1 }
0x192a   :  { %v9461_v61 = vadd.f32 %v9460_v43, %v9387_v31 }
0x192c   :  { %9495 = vrot.lane.b32.xlu1 %v9461_v61, %s14322_s12  ;;  %9501 = vrot.lane.b32.xlu0 %v9461_v61, %s14321_s4 }
0x1930   :  { %9507 = vrot.lane.b32.xlu1 %v9461_v61, %s14323_s13  ;;  %9817 = vrot.lane.b32.xlu0 %v16252_v20, %s14324_s14  ;;  %v9484_v20 = vrot.slane %v16226_v30, %v15115_v16 }
0x1934   :  { %9843 = vrot.lane.b32.xlu1 %v16310_v26, %s14324_s14  ;;  %9833 = vrot.lane.b32.xlu0 %v16312_v2, %s14324_s14  ;;  %v9820_v26 = vpop.permute.xlu0 %9819  ;;  %v9828_v2 = vpop.permute.xlu1 %9827 }
0x1938   :  { %9497 = vrot.lane.b32.xlu0 %v16385_v1, %s14322_s12  ;;  %9825 = vrot.lane.b32.xlu1 %v16314_v56, %s14324_s14  ;;  %v9836_v50 = vpop.permute.xlu0 %9835 }
0x1939   :  { %v10066_v25 = vcombine.high %v9820_v26, %v9836_v50 }
0x193b   :  { %v10080_v3 = vrot.slane %v10066_v25, %v14574_v13 }
0x193c   :  { %9509 = vrot.lane.b32.xlu0 %v16385_v1, %s14323_s13  ;;  %9841 = vrot.lane.b32.xlu1 %v16316_v28, %s14324_s14  ;;  %v10065_v28 = vcombine.low %v9820_v26, %v9836_v50 }
0x193e   :  { %v10073_v6 = vrot.slane %v10065_v28, %v14574_v13 }
0x1940   :  { %9503 = vrot.lane.b32.xlu1 %v16385_v1, %s14321_s4 }
0x1944   :  { %9486 = vrot.lane.b32.xlu1 %v9484_v20, %s14320_s23 }
0x199e   :  { %v9496_v9 = vpop.permute.xlu1 %9495  ;;  %v9502_v49 = vpop.permute.xlu0 %9501 }
0x199f   :  { %v9513_v56 = vcombine.low %v9461_v61, %v9502_v49  ;;  %v9514_v57 = vcombine.high %v9461_v61, %v9502_v49 }
0x19a1   :  { %v9521_v5 = vrot.slane %v9513_v56, %v14574_v13  ;;  %v9528_v53 = vrot.slane %v9514_v57, %v14574_v13 }
0x19a2   :  { %v9508_v11 = vpop.permute.xlu1 %9507  ;;  %v9818_v8 = vpop.permute.xlu0 %9817 }
0x19a3   :  { %v9529_v37 = vcombine.low %v9496_v9, %v9508_v11  ;;  %v9530_v38 = vcombine.high %v9496_v9, %v9508_v11 }
0x19a5   :  { %v9537_v30 = vrot.slane %v9529_v37, %v14574_v13  ;;  %v9544_v19 = vrot.slane %v9530_v38, %v14574_v13 }
0x19a6   :  { %v9844_v41 = vpop.permute.xlu1 %9843  ;;  %v9834_v44 = vpop.permute.xlu0 %9833 }
0x19a7   :  { %v9545_v29 = vcombine.low %v9521_v5, %v9537_v30  ;;  %v9546_v47 = vcombine.high %v9521_v5, %v9537_v30  ;;  %v9561_v24 = vcombine.low %v9528_v53, %v9544_v19  ;;  %v9562_v10 = vcombine.high %v9528_v53, %v9544_v19 }
0x19a8   :  { %v10081_v15 = vcombine.low %v9828_v2, %v9844_v41  ;;  %v10082_v60 = vcombine.high %v9828_v2, %v9844_v41  ;;  %v9997_v52 = vcombine.low %v9818_v8, %v9834_v44  ;;  %v9998_v31 = vcombine.high %v9818_v8, %v9834_v44 }
0x19a9   :  { %v9553_v18 = vrot.slane %v9545_v29, %v14581_v21  ;;  %v9560_v34 = vrot.slane %v9546_v47, %v14581_v21  ;;  %v9569_v32 = vrot.slane %v9561_v24, %v14581_v21  ;;  %v9576_v51 = vrot.slane %v9562_v10, %v14581_v21 }
0x19aa   :  { %v10089_v46 = vrot.slane %v10081_v15, %v14574_v13  ;;  %v10096_v22 = vrot.slane %v10082_v60, %v14574_v13  ;;  %v9826_v43 = vpop.permute.xlu1 %9825  ;;  %v9498_v61 = vpop.permute.xlu0 %9497 }
0x19ab   :  { %v9649_v20 = vcombine.low %v9553_v18, %v9560_v34  ;;  %v13229_v26 = vcombine.high %v9553_v18, %v9560_v34  ;;  %v9665_v50 = vcombine.low %v9569_v32, %v9576_v51  ;;  %v13230_v2 = vcombine.high %v9569_v32, %v9576_v51 }
0x19ac   :  { %v10097_v9 = vcombine.low %v10073_v6, %v10089_v46  ;;  %v10098_v49 = vcombine.high %v10073_v6, %v10089_v46  ;;  %v10113_v56 = vcombine.low %v10080_v3, %v10096_v22  ;;  %v10114_v57 = vcombine.high %v10080_v3, %v10096_v22 }
0x19ad   :  { %v16413_v11 = vrot.slane %v9649_v20, %v14574_v13  ;;  %v16416_v37 = vrot.slane %v13229_v26, %v14574_v13  ;;  %v16419_v38 = vrot.slane %v9665_v50, %v14574_v13  ;;  %v16422_v8 = vrot.slane %v13230_v2, %v14574_v13 }
0x19ae   :  { %v10105_v28 = vrot.slane %v10097_v9, %v14581_v21  ;;  %v10112_v25 = vrot.slane %v10098_v49, %v14581_v21  ;;  %v10121_v5 = vrot.slane %v10113_v56, %v14581_v21  ;;  %v10128_v53 = vrot.slane %v10114_v57, %v14581_v21  ;;  %v9842_v30 = vpop.permute.xlu1 %9841  ;;  %v9510_v19 = vpop.permute.xlu0 %9509 }
0x19af   :  { %v10013_v24 = vcombine.low %v9826_v43, %v9842_v30  ;;  %v10014_v10 = vcombine.high %v9826_v43, %v9842_v30  ;;  %v9597_v6 = vcombine.low %v9498_v61, %v9510_v19  ;;  %v9598_v3 = vcombine.high %v9498_v61, %v9510_v19 }
0x19b0   :  { %v10337_v41 = vcombine.low %v10105_v28, %v10112_v25  ;;  %v13239_v44 = vcombine.high %v10105_v28, %v10112_v25  ;;  %v10353_v29 = vcombine.low %v10121_v5, %v10128_v53  ;;  %v13240_v47 = vcombine.high %v10121_v5, %v10128_v53 }
0x19b1   :  { %v9681_v15 = vcombine.low %v16413_v11, %v16416_v37  ;;  %v9697_v60 = vcombine.low %v16419_v38, %v16422_v8  ;;  %v10005_v18 = vrot.slane %v9997_v52, %v14574_v13  ;;  %v10012_v34 = vrot.slane %v9998_v31, %v14574_v13 }
0x19b2   :  { %v16435_v32 = vrot.slane %v10337_v41, %v14574_v13  ;;  %v16438_v51 = vrot.slane %v13239_v44, %v14574_v13  ;;  %v10021_v46 = vrot.slane %v10013_v24, %v14574_v13  ;;  %v10028_v22 = vrot.slane %v10014_v10, %v14574_v13  ;;  %v9504_v43 = vpop.permute.xlu1 %9503 }
0x19b3   :  { %v16443_v61 = vrot.slane %v10353_v29, %v14574_v13  ;;  %v16446_v20 = vrot.slane %v13240_v47, %v14574_v13  ;;  %v9605_v52 = vrot.slane %v9597_v6, %v14574_v13  ;;  %v9612_v31 = vrot.slane %v9598_v3, %v14574_v13 }
0x19b4   :  { %v10029_v26 = vcombine.low %v10005_v18, %v10021_v46  ;;  %v10030_v50 = vcombine.high %v10005_v18, %v10021_v46  ;;  %v10045_v2 = vcombine.low %v10012_v34, %v10028_v22  ;;  %v10046_v9 = vcombine.high %v10012_v34, %v10028_v22 }
0x19b5   :  { %v9581_v49 = vcombine.low %v16385_v1, %v9504_v43  ;;  %v9582_v56 = vcombine.high %v16385_v1, %v9504_v43  ;;  %v9689_v57 = vrot.slane %v9681_v15, %v14581_v21  ;;  %v9705_v28 = vrot.slane %v9697_v60, %v14581_v21 }
0x19b6   :  { %v10037_v25 = vrot.slane %v10029_v26, %v14581_v21  ;;  %v10044_v5 = vrot.slane %v10030_v50, %v14581_v21  ;;  %v10053_v53 = vrot.slane %v10045_v2, %v14581_v21  ;;  %v10060_v30 = vrot.slane %v10046_v9, %v14581_v21  ;;  %v16482_v50 = vpop.permute.xlu1 %9486 }
0x19b7   :  { %v9589_v19 = vrot.slane %v9581_v49, %v14574_v13  ;;  %v9596_v41 = vrot.slane %v9582_v56, %v14574_v13  ;;  %v9713_v44 = vcombine.low %v9689_v57, %v9705_v28  ;;  %v9714_v29 = vcombine.high %v9689_v57, %v9705_v28 }
0x19b8   :  { %v10269_v47 = vcombine.low %v10037_v25, %v10044_v5  ;;  %v13237_v1 = vcombine.high %v10037_v25, %v10044_v5  ;;  %v10285_v24 = vcombine.low %v10053_v53, %v10060_v30  ;;  %v13238_v10 = vcombine.high %v10053_v53, %v10060_v30 }
0x19b9   :  { %v9613_v6 = vcombine.low %v9589_v19, %v9605_v52  ;;  %v9614_v3 = vcombine.high %v9589_v19, %v9605_v52  ;;  %v9629_v15 = vcombine.low %v9596_v41, %v9612_v31  ;;  %v9630_v60 = vcombine.high %v9596_v41, %v9612_v31  ;;  %13989 = vmatmul.mubr.msk.f32.vlgmr.msra.gmra.mxu0 %vm1389_vm2, %v9713_v44 }
0x19ba   :  { %v16462_v18 = vrot.slane %v10269_v47, %v14574_v13  ;;  %v16465_v34 = vrot.slane %v13237_v1, %v14574_v13  ;;  %v16468_v46 = vrot.slane %v10285_v24, %v14574_v13  ;;  %v16471_v22 = vrot.slane %v13238_v10, %v14574_v13  ;;  %13996 = vmatmul.mubr.msk.f32.vlgmr.msra.gmra.mxu1 %vm1389_vm2, %v9714_v29 }
0x19bb   :  { %v9621_v43 = vrot.slane %v9613_v6, %v14581_v21  ;;  %v9628_v52 = vrot.slane %v9614_v3, %v14581_v21  ;;  %v9637_v31 = vrot.slane %v9629_v15, %v14581_v21  ;;  %v9644_v26 = vrot.slane %v9630_v60, %v14581_v21  ;;  %13999 = vmatpush3.xpose.msk.msra.mxu0 %vm1389_vm2, %v10267_v33 }
0x19bc   :  { %v9682_v2 = vcombine.high %v16413_v11, %v16416_v37  ;;  %v9698_v9 = vcombine.high %v16419_v38, %v16422_v8  ;;  %v10369_v49 = vcombine.low %v16435_v32, %v16438_v51  ;;  %14006 = vmatpush3.xpose.msk.msra.mxu1 %vm1389_vm2, %v10268_v55  ;;  %14000 = vmatprep.subr.mxu0 %v17063_v17 }
0x19bd   :  { %v9717_v56 = vcombine.low %v9621_v43, %v9628_v52  ;;  %v13231_v57 = vcombine.high %v9621_v43, %v9628_v52  ;;  %v9733_v28 = vcombine.low %v9637_v31, %v9644_v26  ;;  %v13232_v33 = vcombine.high %v9637_v31, %v9644_v26  ;;  %14007 = vmatprep.subr.mxu1 %v17063_v17 }
0x19be   :  { %v10385_v11 = vcombine.low %v16443_v61, %v16446_v20  ;;  %v10301_v37 = vcombine.low %v16462_v18, %v16465_v34  ;;  %v10317_v38 = vcombine.low %v16468_v46, %v16471_v22  ;;  %v16503_v35 = vadd.f32 %v14505_v39, %v16482_v50  ;;  %14002 = vmatprep.mubr.msk.f32.mxu0 %vm14327_vm1, %v17063_v17 }
0x19bf   :  { %v16507_v36 = vrot.slane %v9717_v56, %v14574_v13  ;;  %v16510_v55 = vrot.slane %v13231_v57, %v14574_v13  ;;  %v16513_v8 = vrot.slane %v9733_v28, %v14574_v13  ;;  %v16516_v25 = vrot.slane %v13232_v33, %v14574_v13  ;;  %14001 = vmatpush3.xpose.msk.msra.mxu0 %vm1389_vm2, %v10199_v62 }
0x19c0   :  { %10419 = vrot.lane.b32.xlu0 %v16503_v35, %s14321_s4  ;;  %10411 = vrot.lane.b32.xlu1 %v16503_v35, %s14322_s12  ;;  %v9696_v39 = vrot.slane %v9682_v2, %v14581_v21  ;;  %v9712_v5 = vrot.slane %v9698_v9, %v14581_v21  ;;  %v10377_v53 = vrot.slane %v10369_v49, %v14581_v21 }
0x19c1   :  { %v9749_v30 = vcombine.low %v16507_v36, %v16510_v55  ;;  %v9765_v19 = vcombine.low %v16513_v8, %v16516_v25  ;;  %14008 = vmatpush3.xpose.msk.msra.mxu1 %vm1389_vm2, %v10200_v58  ;;  %14009 = vmatprep.mubr.msk.f32.mxu1 %vm14327_vm1, %v17063_v17  ;;  %v10393_v44 = vrot.slane %v10385_v11, %v14581_v21 }
0x19c2   :  { %v9715_v62 = vcombine.low %v9696_v39, %v9712_v5  ;;  %v9716_v41 = vcombine.high %v9696_v39, %v9712_v5  ;;  %v16544_v29 = vadd.f32 %v16482_v50, %v14507_v40  ;;  %14012 = vmatprep.subr.mxu0 %v17063_v17  ;;  %14019 = vmatprep.subr.mxu1 %v17063_v17 }
0x19c3   :  { %v10309_v0 = vrot.slane %v10301_v37, %v14581_v21  ;;  %v10325_v12 = vrot.slane %v10317_v38, %v14581_v21  ;;  %v10401_v58 = vcombine.low %v10377_v53, %v10393_v44  ;;  %v10402_v47 = vcombine.high %v10377_v53, %v10393_v44 }
0x19c4   :  { %14003 = vmatmul.mubr.msk.f32.vlgmr.msra.gmra.mxu0 %vm1389_vm2, %v9715_v62  ;;  %14010 = vmatmul.mubr.msk.f32.vlgmr.msra.gmra.mxu1 %vm1389_vm2, %v9716_v41  ;;  %v10370_v1 = vcombine.high %v16435_v32, %v16438_v51  ;;  %v10386_v40 = vcombine.high %v16443_v61, %v16446_v20  ;;  %v9757_v24 = vrot.slane %v9749_v30, %v14581_v21  ;;  %v17068_v32 = vld [vmem:[#allocation2_spill] sm:$0xff] }
0x19c5   :  { %10427 = vrot.lane.b32.xlu1 %v16503_v35, %s14323_s13  ;;  %10417 = vrot.lane.b32.xlu0 %v16544_v29, %s14321_s4  ;;  %v10333_v10 = vcombine.low %v10309_v0, %v10325_v12  ;;  %v10334_v6 = vcombine.high %v10309_v0, %v10325_v12  ;;  %v9773_v3 = vrot.slane %v9765_v19, %v14581_v21 }
0x19c6   :  { %14013 = vmatpush3.xpose.msk.msra.mxu0 %vm1389_vm2, %v10401_v58  ;;  %14020 = vmatpush3.xpose.msk.msra.mxu1 %vm1389_vm2, %v10402_v47  ;;  %v16566_v51 = vadd.f32 %v17068_v32, %v16482_v50  ;;  %v10302_v61 = vcombine.high %v16462_v18, %v16465_v34  ;;  %v10318_v20 = vcombine.high %v16468_v46, %v16471_v22 }
0x19c7   :  { %14014 = vmatprep.subr.mxu0 %v17063_v17  ;;  %14021 = vmatprep.subr.mxu1 %v17063_v17  ;;  %v10384_v15 = vrot.slane %v10370_v1, %v14581_v21  ;;  %v10400_v60 = vrot.slane %v10386_v40, %v14581_v21  ;;  %v9781_v18 = vcombine.low %v9757_v24, %v9773_v3 }
0x19c8   :  { %14016 = vmatprep.mubr.msk.f32.mxu0 %vm14327_vm1, %v17063_v17  ;;  %14023 = vmatprep.mubr.msk.f32.mxu1 %vm14327_vm1, %v17063_v17  ;;  %v9782_v34 = vcombine.high %v9757_v24, %v9773_v3  ;;  %v9750_v46 = vcombine.high %v16507_v36, %v16510_v55  ;;  %v9766_v22 = vcombine.high %v16513_v8, %v16516_v25 }
0x19c9   :  { %10415 = vrot.lane.b32.xlu0 %v16566_v51, %s14322_s12  ;;  %10409 = vrot.lane.b32.xlu1 %v16544_v29, %s14322_s12  ;;  %v10316_v43 = vrot.slane %v10302_v61, %v14581_v21  ;;  %v10403_v52 = vcombine.low %v10384_v15, %v10400_v60  ;;  %v10404_v31 = vcombine.high %v10384_v15, %v10400_v60 }
0x19ca   :  { %14015 = vmatpush3.xpose.msk.msra.mxu0 %vm1389_vm2, %v10333_v10  ;;  %14022 = vmatpush3.xpose.msk.msra.mxu1 %vm1389_vm2, %v10334_v6  ;;  %v10332_v26 = vrot.slane %v10318_v20, %v14581_v21  ;;  %v16602_v2 = vadd.f32 %v16482_v50, %v14511_v42  ;;  %v9764_v9 = vrot.slane %v9750_v46, %v14581_v21 }
0x19cb   :  { %14026 = vmatprep.subr.mxu0 %v17063_v17  ;;  %14033 = vmatprep.subr.mxu1 %v17063_v17  ;;  %v9780_v49 = vrot.slane %v9766_v22, %v14581_v21 }
0x19cc   :  { %v10335_v42 = vcombine.low %v10316_v43, %v10332_v26  ;;  %v10336_v50 = vcombine.high %v10316_v43, %v10332_v26 }
0x19cd   :  { %10431 = vrot.lane.b32.xlu0 %v16566_v51, %s14323_s13  ;;  %10425 = vrot.lane.b32.xlu1 %v16544_v29, %s14323_s13  ;;  %v9783_v56 = vcombine.low %v9764_v9, %v9780_v49  ;;  %v9784_v57 = vcombine.high %v9764_v9, %v9780_v49 }
0x19ce   :  { %14017 = vmatmul.mubr.msk.f32.vlgmr.msra.gmra.mxu0 %vm1389_vm2, %v9781_v18  ;;  %14024 = vmatmul.mubr.msk.f32.vlgmr.msra.gmra.mxu1 %vm1389_vm2, %v9782_v34 }
0x19cf   :  { %14027 = vmatpush3.xpose.msk.msra.mxu0 %vm1389_vm2, %v10403_v52  ;;  %14034 = vmatpush3.xpose.msk.msra.mxu1 %vm1389_vm2, %v10404_v31 }
0x19d0   :  { %14028 = vmatprep.subr.mxu0 %v17063_v17  ;;  %14035 = vmatprep.subr.mxu1 %v17063_v17 }
0x19d1   :  { %10421 = vrot.lane.b32.xlu0 %v16602_v2, %s14321_s4  ;;  %10423 = vrot.lane.b32.xlu1 %v16566_v51, %s14321_s4 }
0x19d2   :  { %14030 = vmatprep.mubr.msk.f32.mxu0 %vm14327_vm1, %v17063_v17  ;;  %14037 = vmatprep.mubr.msk.f32.mxu1 %vm14327_vm1, %v17063_v17 }
0x19d3   :  { %14029 = vmatpush3.xpose.msk.msra.mxu0 %vm1389_vm2, %v10335_v42  ;;  %14036 = vmatpush3.xpose.msk.msra.mxu1 %vm1389_vm2, %v10336_v50 }
0x19d4   :  { %14040 = vmatprep.subr.mxu0 %v17063_v17  ;;  %14047 = vmatprep.subr.mxu1 %v17063_v17 }
0x19d5   :  { %10413 = vrot.lane.b32.xlu1 %v16602_v2, %s14322_s12 }
0x19d6   :  { %14031 = vmatmul.mubr.msk.f32.vlgmr.msra.gmra.mxu0 %vm1389_vm2, %v9783_v56  ;;  %14038 = vmatmul.mubr.msk.f32.vlgmr.msra.gmra.mxu1 %vm1389_vm2, %v9784_v57 }
0x19d7   :  { %14044 = vmatprep.mubr.msk.f32.mxu0 %vm14327_vm1, %v17063_v17  ;;  %14051 = vmatprep.mubr.msk.f32.mxu1 %vm14327_vm1, %v17063_v17 }
0x19d9   :  { %10429 = vrot.lane.b32.xlu1 %v16602_v2, %s14323_s13 }
0x19dd   :  { %10435 = vrot.lane.b32.xlu1 %v16503_v35, %s14324_s14 }
0x1a32   :  { %v10412_v28 = vpop.permute.xlu1 %10411  ;;  %v10420_v33 = vpop.permute.xlu0 %10419 }
0x1a33   :  { %10443 = vrot.lane.b32.xlu0 %v10412_v28, %s14324_s14  ;;  %10451 = vrot.lane.b32.xlu1 %v10420_v33, %s14324_s14 }
0x1a37   :  { %v10428_v11 = vpop.permute.xlu1 %10427  ;;  %10433 = vrot.lane.b32.xlu0 %v16544_v29, %s14324_s14  ;;  %v10418_v37 = vpop.permute.xlu0 %10417 }
0x1a38   :  { %10459 = vrot.lane.b32.xlu1 %v10428_v11, %s14324_s14 }
0x1a3b   :  { %v10410_v38 = vpop.permute.xlu1 %10409  ;;  %10449 = vrot.lane.b32.xlu0 %v10418_v37, %s14324_s14  ;;  %v10416_v35 = vpop.permute.xlu0 %10415 }
0x1a3c   :  { %10441 = vrot.lane.b32.xlu1 %v10410_v38, %s14324_s14 }
0x1a3f   :  { %v10426_v36 = vpop.permute.xlu1 %10425  ;;  %10439 = vrot.lane.b32.xlu0 %v16566_v51, %s14324_s14  ;;  %v10432_v12 = vpop.permute.xlu0 %10431 }
0x1a40   :  { %10457 = vrot.lane.b32.xlu1 %v10426_v36, %s14324_s14 }
0x1a43   :  { %v10424_v55 = vpop.permute.xlu1 %10423  ;;  %v16679_v15 = vpop.permute.xlu0 %10421 }
0x1a44   :  { %10455 = vrot.lane.b32.xlu0 %v10424_v55, %s14324_s14  ;;  %10447 = vrot.lane.b32.xlu1 %v10416_v35, %s14324_s14 }
0x1a47   :  { %v16669_v10 = vpop.permute.xlu1 %10413 }
0x1a4b   :  { %v16677_v20 = vpop.permute.xlu1 %10429 }
0x1a4f   :  { %v10436_v60 = vpop.permute.xlu1 %10435 }
0x1a79   :  { %v16646_v8 = vpop.f32.mrf.mxu0 }
0x1a7a   :  { %v16648_v25 = vpop.f32.mrf.mxu1  ;;  %v11657_v39 = vsel %vm2968_vm3, %v16646_v8, -inf }
0x1a7b   :  { %v13990_v5 = vpop.f32.mrf.mxu0  ;;  %11658 = vmax.xlane.f32.xlu0 %v11657_v39  ;;  %v11660_v53 = vsel %vm2968_vm3, %v16648_v25, -inf }
0x1a7c   :  { %v13997_v30 = vpop.f32.mrf.mxu1  ;;  %11661 = vmax.xlane.f32.xlu1 %v11660_v53 }
0x1a84   :  { %v16654_v19 = vpop.f32.mrf.mxu0  ;;  %v16656_v62 = vpop.f32.mrf.mxu1 }
0x1a85   :  { %v11663_v41 = vsel %vm2968_vm3, %v16654_v19, -inf  ;;  %v11666_v0 = vsel %vm2968_vm3, %v16656_v62, -inf }
0x1a86   :  { %v14004_v44 = vpop.f32.mrf.mxu0  ;;  %v14011_v29 = vpop.f32.mrf.mxu1  ;;  %11664 = vmax.xlane.f32.xlu0 %v11663_v41 }
0x1a8a   :  { %11667 = vmax.xlane.f32.xlu0 %v11666_v0 }
0x1a8d   :  { %10463 = vrot.lane.b32.xlu1 %v10432_v12, %s14324_s14 }
0x1a8e   :  { %v16663_v58 = vpop.f32.mrf.mxu0  ;;  %v16665_v47 = vpop.f32.mrf.mxu1 }
0x1a8f   :  { %v11672_v1 = vsel %vm2968_vm3, %v16665_v47, -inf  ;;  %v11669_v38 = vsel %vm2968_vm3, %v16663_v58, -inf }
0x1a90   :  { %v14018_v40 = vpop.f32.mrf.mxu0  ;;  %v14025_v24 = vpop.f32.mrf.mxu1  ;;  %11673 = vmax.xlane.f32.xlu0 %v11672_v1 }
0x1a96   :  { %v16671_v6 = vpop.f32.mrf.mxu0  ;;  %v16673_v3 = vpop.f32.mrf.mxu1 }
0x1a97   :  { %v11678_v32 = vsel %vm2968_vm3, %v16673_v3, -inf  ;;  %v11675_v1 = vsel %vm2968_vm3, %v16671_v6, -inf }
0x1a98   :  { %v14032_v51 = vpop.f32.mrf.mxu0  ;;  %v14039_v61 = vpop.f32.mrf.mxu1  ;;  %11679 = vmax.xlane.f32.xlu0 %v11678_v32 }
0x1aa5   :  { %v10452_v18 = vpop.permute.xlu1 %10451  ;;  %v10444_v34 = vpop.permute.xlu0 %10443 }
0x1aa6   :  { %v10549_v46 = vcombine.low %v10436_v60, %v10452_v18  ;;  %v10550_v22 = vcombine.high %v10436_v60, %v10452_v18 }
0x1aa8   :  { %v10557_v9 = vrot.slane %v10549_v46, %v14574_v13  ;;  %v10564_v49 = vrot.slane %v10550_v22, %v14574_v13 }
0x1aa9   :  { %v10434_v43 = vpop.permute.xlu0 %10433 }
0x1aaa   :  { %v10460_v52 = vpop.permute.xlu1 %10459 }
0x1aab   :  { %v10565_v31 = vcombine.low %v10444_v34, %v10460_v52  ;;  %v10566_v26 = vcombine.high %v10444_v34, %v10460_v52 }
0x1aad   :  { %v10573_v42 = vrot.slane %v10565_v31, %v14574_v13  ;;  %v10580_v50 = vrot.slane %v10566_v26, %v14574_v13  ;;  %v10450_v37 = vpop.permute.xlu0 %10449 }
0x1aae   :  { %10437 = vrot.lane.b32.xlu0 %v16602_v2, %s14324_s14  ;;  %v10442_v56 = vpop.permute.xlu1 %10441  ;;  %v10481_v5 = vcombine.low %v10434_v43, %v10450_v37  ;;  %v10482_v2 = vcombine.high %v10434_v43, %v10450_v37 }
0x1aaf   :  { %v10581_v57 = vcombine.low %v10557_v9, %v10573_v42  ;;  %v10582_v28 = vcombine.high %v10557_v9, %v10573_v42  ;;  %v10597_v33 = vcombine.low %v10564_v49, %v10580_v50  ;;  %v10598_v11 = vcombine.high %v10564_v49, %v10580_v50 }
0x1ab0   :  { %v10489_v61 = vrot.slane %v10481_v5, %v14574_v13  ;;  %v10496_v60 = vrot.slane %v10482_v2, %v14574_v13 }
0x1ab1   :  { %v10589_v36 = vrot.slane %v10581_v57, %v14581_v21  ;;  %v10596_v35 = vrot.slane %v10582_v28, %v14581_v21  ;;  %v10605_v55 = vrot.slane %v10597_v33, %v14581_v21  ;;  %v10612_v39 = vrot.slane %v10598_v11, %v14581_v21  ;;  %11670 = vmax.xlane.f32.xlu1 %v11669_v38 }
0x1ab2   :  { %v10458_v53 = vpop.permute.xlu1 %10457 }
0x1ab3   :  { %v10821_v30 = vcombine.low %v10589_v36, %v10596_v35  ;;  %v13243_v41 = vcombine.high %v10589_v36, %v10596_v35  ;;  %v10837_v44 = vcombine.low %v10605_v55, %v10612_v39  ;;  %v13244_v29 = vcombine.high %v10605_v55, %v10612_v39 }
0x1ab4   :  { %v10497_v0 = vcombine.low %v10442_v56, %v10458_v53  ;;  %v10498_v12 = vcombine.high %v10442_v56, %v10458_v53 }
0x1ab5   :  { %v10828_v40 = vrot.slane %v10821_v30, %v14574_v13  ;;  %v10836_v24 = vrot.slane %v13243_v41, %v14574_v13  ;;  %v10844_v32 = vrot.slane %v10837_v44, %v14574_v13  ;;  %v10852_v51 = vrot.slane %v13244_v29, %v14574_v13  ;;  %11676 = vmax.xlane.f32.xlu1 %v11675_v1 }
0x1ab6   :  { %v10505_v18 = vrot.slane %v10497_v0, %v14574_v13  ;;  %v10512_v34 = vrot.slane %v10498_v12, %v14574_v13 }
0x1ab7   :  { %v10853_v46 = vcombine.low %v10828_v40, %v10836_v24  ;;  %v10869_v22 = vcombine.low %v10844_v32, %v10852_v51  ;;  %v10854_v11 = vcombine.high %v10828_v40, %v10836_v24  ;;  %v10870_v37 = vcombine.high %v10844_v32, %v10852_v51 }
0x1ab8   :  { %v10513_v43 = vcombine.low %v10489_v61, %v10505_v18  ;;  %v10514_v52 = vcombine.high %v10489_v61, %v10505_v18  ;;  %v10529_v31 = vcombine.low %v10496_v60, %v10512_v34  ;;  %v10530_v26 = vcombine.high %v10496_v60, %v10512_v34 }
0x1ab9   :  { %v10861_v9 = vrot.slane %v10853_v46, %v14581_v21  ;;  %v10877_v49 = vrot.slane %v10869_v22, %v14581_v21  ;;  %v16710_v39 = vrot.slane %v10854_v11, %v14581_v21  ;;  %v16713_v5 = vrot.slane %v10870_v37, %v14581_v21  ;;  %v10440_v22 = vpop.permute.xlu0 %10439 }
0x1aba   :  { %v10521_v42 = vrot.slane %v10513_v43, %v14581_v21  ;;  %v10528_v50 = vrot.slane %v10514_v52, %v14581_v21  ;;  %v10537_v56 = vrot.slane %v10529_v31, %v14581_v21  ;;  %v10544_v57 = vrot.slane %v10530_v26, %v14581_v21  ;;  %v10448_v52 = vpop.permute.xlu1 %10447 }
0x1abb   :  { %v10885_v28 = vcombine.low %v10861_v9, %v10877_v49  ;;  %v10886_v33 = vcombine.high %v10861_v9, %v10877_v49  ;;  %v10887_v44 = vcombine.low %v16710_v39, %v16713_v5  ;;  %v10888_v29 = vcombine.high %v16710_v39, %v16713_v5 }
0x1abc   :  { %v10753_v38 = vcombine.low %v10521_v42, %v10528_v50  ;;  %v13241_v36 = vcombine.high %v10521_v42, %v10528_v50  ;;  %v10769_v35 = vcombine.low %v10537_v56, %v10544_v57  ;;  %v13242_v55 = vcombine.high %v10537_v56, %v10544_v57 }
0x1abd   :  { %14041 = vmatpush3.msra.mxu0 %v10885_v28  ;;  %14048 = vmatpush3.msra.mxu1 %v10886_v33  ;;  %v10456_v43 = vpop.permute.xlu0 %10455 }
0x1abe   :  { %v10760_v2 = vrot.slane %v10753_v38, %v14574_v13  ;;  %v10768_v53 = vrot.slane %v13241_v36, %v14574_v13  ;;  %v10776_v30 = vrot.slane %v10769_v35, %v14574_v13  ;;  %v10784_v41 = vrot.slane %v13242_v55, %v14574_v13  ;;  %14042 = vmatprep.subr.mxu0 %v17063_v17 }
0x1abf   :  { %14049 = vmatprep.subr.mxu1 %v17063_v17  ;;  %v10685_v50 = vcombine.low %v10440_v22, %v10456_v43  ;;  %v10686_v56 = vcombine.high %v10440_v22, %v10456_v43 }
0x1ac0   :  { %v10785_v0 = vcombine.low %v10760_v2, %v10768_v53  ;;  %v10801_v12 = vcombine.low %v10776_v30, %v10784_v41  ;;  %v10786_v1 = vcombine.high %v10760_v2, %v10768_v53  ;;  %v10802_v40 = vcombine.high %v10776_v30, %v10784_v41 }
0x1ac1   :  { %v10693_v11 = vrot.slane %v10685_v50, %v14574_v13  ;;  %v10700_v37 = vrot.slane %v10686_v56, %v14574_v13 }
0x1ac2   :  { %v10793_v24 = vrot.slane %v10785_v0, %v14581_v21  ;;  %v10809_v32 = vrot.slane %v10801_v12, %v14581_v21  ;;  %v16728_v51 = vrot.slane %v10786_v1, %v14581_v21  ;;  %v16731_v61 = vrot.slane %v10802_v40, %v14581_v21 }
0x1ac4   :  { %v10817_v60 = vcombine.low %v10793_v24, %v10809_v32  ;;  %v10818_v18 = vcombine.high %v10793_v24, %v10809_v32  ;;  %v10819_v34 = vcombine.low %v16728_v51, %v16731_v61  ;;  %v10820_v46 = vcombine.high %v16728_v51, %v16731_v61 }
0x1ac6   :  { %14043 = vmatpush3.msra.mxu0 %v10817_v60  ;;  %14050 = vmatpush3.msra.mxu1 %v10818_v18 }
0x1ac7   :  { %10445 = vrot.lane.b32.xlu1 %v16669_v10, %s14324_s14  ;;  %14054 = vmatprep.subr.mxu0 %v17063_v17 }
0x1ac8   :  { %14061 = vmatprep.subr.mxu1 %v17063_v17 }
0x1b04   :  { %v11659_v31 = vpop.xlane.xlu0 %11658 }
0x1b05   :  { %v11662_v26 = vpop.xlane.xlu1 %11661  ;;  %v11681_v9 = vsub.f32 %v16646_v8, %v11659_v31 }
0x1b06   :  { %v11682_v49 = vsub.f32 %v16648_v25, %v11662_v26 }
0x1b07   :  { %v11689_v42 = vmul.f32 1.442695, %v11681_v9 }
0x1b08   :  { %v11691_v57 = vmul.f32 1.442695, %v11682_v49 }
0x1b09   :  { %14262 = vpow2.f32 %v11689_v42  ;;  %v10464_v28 = vpop.permute.xlu1 %10463 }
0x1b0a   :  { %14264 = vpow2.f32 %v11691_v57  ;;  %v10701_v10 = vcombine.low %v10448_v52, %v10464_v28  ;;  %v10702_v33 = vcombine.high %v10448_v52, %v10464_v28 }
0x1b0c   :  { %v10709_v38 = vrot.slane %v10701_v10, %v14574_v13  ;;  %v10716_v36 = vrot.slane %v10702_v33, %v14574_v13 }
0x1b0e   :  { %v10717_v8 = vcombine.low %v10693_v11, %v10709_v38  ;;  %v10718_v35 = vcombine.high %v10693_v11, %v10709_v38  ;;  %v10733_v25 = vcombine.low %v10700_v37, %v10716_v36  ;;  %v10734_v55 = vcombine.high %v10700_v37, %v10716_v36 }
0x1b0f   :  { %v11665_v2 = vpop.xlane.xlu0 %11664 }
0x1b10   :  { %v10725_v53 = vrot.slane %v10717_v8, %v14581_v21  ;;  %v10732_v30 = vrot.slane %v10718_v35, %v14581_v21  ;;  %v10741_v41 = vrot.slane %v10733_v25, %v14581_v21  ;;  %v10748_v0 = vrot.slane %v10734_v55, %v14581_v21 }
0x1b11   :  { %v11683_v12 = vsub.f32 %v16654_v19, %v11665_v2 }
0x1b12   :  { %v10957_v1 = vcombine.low %v10725_v53, %v10732_v30  ;;  %v13247_v40 = vcombine.high %v10725_v53, %v10732_v30  ;;  %v10973_v24 = vcombine.low %v10741_v41, %v10748_v0  ;;  %v13248_v32 = vcombine.high %v10741_v41, %v10748_v0 }
0x1b13   :  { %v11693_v60 = vmul.f32 1.442695, %v11683_v12  ;;  %v11668_v18 = vpop.xlane.xlu0 %11667 }
0x1b14   :  { %v10964_v22 = vrot.slane %v10957_v1, %v14574_v13  ;;  %v10972_v43 = vrot.slane %v13247_v40, %v14574_v13  ;;  %v10980_v52 = vrot.slane %v10973_v24, %v14574_v13  ;;  %v10988_v31 = vrot.slane %v13248_v32, %v14574_v13 }
0x1b15   :  { %14266 = vpow2.f32 %v11693_v60  ;;  %v11684_v26 = vsub.f32 %v16656_v62, %v11668_v18 }
0x1b16   :  { %v16757_v9 = vpop.eup %14262  ;;  %v10989_v19 = vcombine.low %v10964_v22, %v10972_v43  ;;  %v11005_v49 = vcombine.low %v10980_v52, %v10988_v31  ;;  %v10990_v42 = vcombine.high %v10964_v22, %v10972_v43  ;;  %v11006_v50 = vcombine.high %v10980_v52, %v10988_v31 }
0x1b17   :  { %v16759_v56 = vpop.eup %14264  ;;  %v11695_v57 = vmul.f32 1.442695, %v11684_v26  ;;  %v11705_v28 = vsel %vm2968_vm3, %v16757_v9, 0.0 }
0x1b18   :  { %v11708_v10 = vsel %vm2968_vm3, %v16759_v56, 0.0  ;;  %11706 = vadd.xlane.f32.xlu0 %v11705_v28  ;;  %v16766_v33 = vrot.slane %v10989_v19, %v14581_v21  ;;  %v16769_v62 = vrot.slane %v11005_v49, %v14581_v21  ;;  %v16772_v11 = vrot.slane %v10990_v42, %v14581_v21 }
0x1b19   :  { %14268 = vpow2.f32 %v11695_v57  ;;  %v11674_v37 = vpop.xlane.xlu0 %11673  ;;  %11709 = vadd.xlane.f32.xlu1 %v11708_v10  ;;  %v16775_v38 = vrot.slane %v11006_v50, %v14581_v21 }
0x1b1a   :  { %v11686_v36 = vsub.f32 %v16665_v47, %v11674_v37  ;;  %v11021_v8 = vcombine.low %v16766_v33, %v16769_v62  ;;  %v11022_v35 = vcombine.high %v16766_v33, %v16769_v62 }
0x1b1b   :  { %v11023_v25 = vcombine.low %v16772_v11, %v16775_v38  ;;  %v11024_v55 = vcombine.high %v16772_v11, %v16775_v38 }
0x1b1c   :  { %v11699_v2 = vmul.f32 1.442695, %v11686_v36 }
0x1b1e   :  { %14270 = vpow2.f32 %v11699_v2 }
0x1b21   :  { %v11680_v53 = vpop.xlane.xlu0 %11679 }
0x1b22   :  { %v14267_v30 = vpop.eup %14266  ;;  %v11688_v41 = vsub.f32 %v16673_v3, %v11680_v53 }
0x1b23   :  { %v11711_v47 = vsel %vm2968_vm3, %v14267_v30, 0.0 }
0x1b24   :  { %v11703_v0 = vmul.f32 1.442695, %v11688_v41  ;;  %11712 = vadd.xlane.f32.xlu0 %v11711_v47 }
0x1b26   :  { %v14269_v12 = vpop.eup %14268  ;;  %14272 = vpow2.f32 %v11703_v0 }
0x1b27   :  { %v11714_v1 = vsel %vm2968_vm3, %v14269_v12, 0.0 }
0x1b28   :  { %11715 = vadd.xlane.f32.xlu0 %v11714_v1 }
0x1b2b   :  { %v16789_v40 = vpop.eup %14270 }
0x1b2c   :  { %v11720_v24 = vsel %vm2968_vm3, %v16789_v40, 0.0 }
0x1b2d   :  { %11721 = vadd.xlane.f32.xlu1 %v11720_v24 }
0x1b33   :  { %v16793_v32 = vpop.eup %14272 }
0x1b34   :  { %v11726_v3 = vsel %vm2968_vm3, %v16793_v32, 0.0 }
0x1b35   :  { %11727 = vadd.xlane.f32.xlu1 %v11726_v3 }
0x1b3a   :  { %v11671_v60 = vpop.xlane.xlu1 %11670 }
0x1b3b   :  { %v11685_v18 = vsub.f32 %v16663_v58, %v11671_v60 }
0x1b3d   :  { %v11697_v22 = vmul.f32 1.442695, %v11685_v18 }
0x1b3e   :  { %v11677_v43 = vpop.xlane.xlu1 %11676 }
0x1b3f   :  { %14274 = vpow2.f32 %v11697_v22  ;;  %v11687_v52 = vsub.f32 %v16671_v6, %v11677_v43  ;;  %v10438_v6 = vpop.permute.xlu0 %10437 }
0x1b41   :  { %v11701_v31 = vmul.f32 1.442695, %v11687_v52 }
0x1b42   :  { %v10446_v42 = vpop.permute.xlu1 %10445 }
0x1b43   :  { %14276 = vpow2.f32 %v11701_v31 }
0x1b46   :  { %10461 = vrot.lane.b32.xlu1 %v16677_v20, %s14324_s14 }
0x1b4c   :  { %v16801_v26 = vpop.eup %14274 }
0x1b4d   :  { %v11717_v19 = vsel %vm2968_vm3, %v16801_v26, 0.0 }
0x1b4e   :  { %11718 = vadd.xlane.f32.xlu0 %v11717_v19 }
0x1b50   :  { %v16805_v49 = vpop.eup %14276 }
0x1b51   :  { %v11723_v58 = vsel %vm2968_vm3, %v16805_v49, 0.0 }
0x1b52   :  { %11724 = vadd.xlane.f32.xlu0 %v11723_v58 }
0x1b68   :  { %10453 = vrot.lane.b32.xlu0 %v16679_v15, %s14324_s14 }
0x1ba1   :  { %v11707_v50 = vpop.xlane.xlu0 %11706 }
0x1ba2   :  { %v11710_v57 = vpop.xlane.xlu1 %11709  ;;  %14278 = vrcp.f32 %v11707_v50 }
0x1ba3   :  { %14280 = vrcp.f32 %v11710_v57 }
0x1bad   :  { %v11713_v20 = vpop.xlane.xlu0 %11712 }
0x1bae   :  { %14282 = vrcp.f32 %v11713_v20 }
0x1baf   :  { %v14279_v28 = vpop.eup %14278 }
0x1bb0   :  { %v14281_v10 = vpop.eup %14280  ;;  %v11737_v37 = vmul.f32 %v14279_v28, %v16757_v9 }
0x1bb1   :  { %v11716_v36 = vpop.xlane.xlu0 %11715  ;;  %v11738_v2 = vmul.f32 %v14281_v10, %v16759_v56 }
0x1bb2   :  { %14284 = vrcp.f32 %v11716_v36  ;;  %14045 = vmatmul.mubr.msk.f32.vlgmr.msra.gmra.mxu0 %vm2968_vm3, %v11737_v37 }
0x1bb3   :  { %14052 = vmatmul.mubr.msk.f32.vlgmr.msra.gmra.mxu1 %vm2968_vm3, %v11738_v2  ;;  %14055 = vmatpush3.msra.mxu0 %v10887_v44 }
0x1bb4   :  { %14062 = vmatpush3.msra.mxu1 %v10888_v29  ;;  %14056 = vmatprep.subr.mxu0 %v17063_v17 }
0x1bb5   :  { %14063 = vmatprep.subr.mxu1 %v17063_v17  ;;  %14057 = vmatpush3.msra.mxu0 %v10819_v34 }
0x1bb6   :  { %14064 = vmatpush3.msra.mxu1 %v10820_v46  ;;  %14058 = vmatprep.mubr.msk.f32.mxu0 %vm14327_vm1, %v17063_v17  ;;  %v11722_v29 = vpop.xlane.xlu1 %11721 }
0x1bb7   :  { %14068 = vmatprep.subr.mxu0 %v17063_v17  ;;  %14065 = vmatprep.mubr.msk.f32.mxu1 %vm14327_vm1, %v17063_v17  ;;  %14286 = vrcp.f32 %v11722_v29 }
0x1bb8   :  { %14075 = vmatprep.subr.mxu1 %v17063_v17 }
0x1bbb   :  { %v14283_v15 = vpop.eup %14282 }
0x1bbc   :  { %v11739_v39 = vmul.f32 %v14283_v15, %v14267_v30 }
0x1bbe   :  { %14059 = vmatmul.mubr.msk.f32.vlgmr.msra.gmra.mxu0 %vm2968_vm3, %v11739_v39  ;;  %v11728_v51 = vpop.xlane.xlu1 %11727 }
0x1bbf   :  { %v14285_v5 = vpop.eup %14284  ;;  %14069 = vmatpush3.msra.mxu0 %v11021_v8  ;;  %14072 = vmatprep.mubr.msk.f32.mxu0 %vm14327_vm1, %v17063_v17 }
0x1bc0   :  { %v11740_v44 = vmul.f32 %v14285_v5, %v14269_v12  ;;  %14070 = vmatprep.subr.mxu0 %v17063_v17 }
0x1bc2   :  { %14066 = vmatmul.mubr.msk.f32.vlgmr.msra.gmra.mxu1 %vm2968_vm3, %v11740_v44  ;;  %v10462_v34 = vpop.permute.xlu1 %10461 }
0x1bc3   :  { %14076 = vmatpush3.msra.mxu1 %v11022_v35  ;;  %14079 = vmatprep.mubr.msk.f32.mxu1 %vm14327_vm1, %v17063_v17  ;;  %v10633_v9 = vcombine.low %v10446_v42, %v10462_v34  ;;  %v10634_v56 = vcombine.high %v10446_v42, %v10462_v34 }
0x1bc4   :  { %14077 = vmatprep.subr.mxu1 %v17063_v17  ;;  %v14287_v10 = vpop.eup %14286 }
0x1bc5   :  { %v10641_v33 = vrot.slane %v10633_v9, %v14574_v13  ;;  %v10648_v62 = vrot.slane %v10634_v56, %v14574_v13  ;;  %v11742_v34 = vmul.f32 %v14287_v10, %v16789_v40 }
0x1bd7   :  { %v11719_v61 = vpop.xlane.xlu0 %11718 }
0x1bd8   :  { %14288 = vrcp.f32 %v11719_v61 }
0x1bd9   :  { %14290 = vrcp.f32 %v11728_v51 }
0x1bdb   :  { %v11725_v46 = vpop.xlane.xlu0 %11724 }
0x1bdc   :  { %14292 = vrcp.f32 %v11725_v46 }
0x1bdf   :  { %v10454_v8 = vpop.permute.xlu0 %10453 }
0x1be0   :  { %v10617_v53 = vcombine.low %v10438_v6, %v10454_v8  ;;  %v10618_v30 = vcombine.high %v10438_v6, %v10454_v8 }
0x1be2   :  { %v10625_v35 = vrot.slane %v10617_v53, %v14574_v13  ;;  %v10632_v41 = vrot.slane %v10618_v30, %v14574_v13 }
0x1be4   :  { %v10649_v47 = vcombine.low %v10625_v35, %v10641_v33  ;;  %v10650_v0 = vcombine.high %v10625_v35, %v10641_v33  ;;  %v10665_v12 = vcombine.low %v10632_v41, %v10648_v62  ;;  %v10666_v1 = vcombine.high %v10632_v41, %v10648_v62 }
0x1be5   :  { %v14289_v37 = vpop.eup %14288 }
0x1be6   :  { %v10657_v24 = vrot.slane %v10649_v47, %v14581_v21  ;;  %v10664_v3 = vrot.slane %v10650_v0, %v14581_v21  ;;  %v10673_v60 = vrot.slane %v10665_v12, %v14581_v21  ;;  %v10680_v18 = vrot.slane %v10666_v1, %v14581_v21  ;;  %v14291_v46 = vpop.eup %14290 }
0x1be7   :  { %v11741_v61 = vmul.f32 %v14289_v37, %v16801_v26  ;;  %v11744_v26 = vmul.f32 %v14291_v46, %v16793_v32 }
0x1be8   :  { %v10889_v22 = vcombine.low %v10657_v24, %v10664_v3  ;;  %v13245_v43 = vcombine.high %v10657_v24, %v10664_v3  ;;  %v10905_v52 = vcombine.low %v10673_v60, %v10680_v18  ;;  %v13246_v31 = vcombine.high %v10673_v60, %v10680_v18 }
0x1be9   :  { %v14293_v9 = vpop.eup %14292 }
0x1bea   :  { %v10896_v19 = vrot.slane %v10889_v22, %v14574_v13  ;;  %v10904_v58 = vrot.slane %v13245_v43, %v14574_v13  ;;  %v10912_v6 = vrot.slane %v10905_v52, %v14574_v13  ;;  %v10920_v42 = vrot.slane %v13246_v31, %v14574_v13 }
0x1beb   :  { %v11743_v40 = vmul.f32 %v14293_v9, %v16805_v49 }
0x1bec   :  { %v10921_v50 = vcombine.low %v10896_v19, %v10904_v58  ;;  %v10937_v57 = vcombine.low %v10912_v6, %v10920_v42  ;;  %v10922_v20 = vcombine.high %v10896_v19, %v10904_v58  ;;  %v10938_v28 = vcombine.high %v10912_v6, %v10920_v42 }
0x1bee   :  { %v10929_v36 = vrot.slane %v10921_v50, %v14581_v21  ;;  %v10945_v2 = vrot.slane %v10937_v57, %v14581_v21  ;;  %v10936_v15 = vrot.slane %v10922_v20, %v14581_v21  ;;  %v10952_v39 = vrot.slane %v10938_v28, %v14581_v21 }
0x1bf0   :  { %v10953_v5 = vcombine.low %v10929_v36, %v10945_v2  ;;  %v10954_v44 = vcombine.high %v10929_v36, %v10945_v2  ;;  %v10955_v29 = vcombine.low %v10936_v15, %v10952_v39  ;;  %v10956_v51 = vcombine.high %v10936_v15, %v10952_v39 }
0x1bf2   :  { %14071 = vmatpush3.msra.mxu0 %v10953_v5  ;;  %14078 = vmatpush3.msra.mxu1 %v10954_v44 }
0x1bf3   :  { %14073 = vmatmul.mubr.msk.f32.vlgmr.msra.gmra.mxu0 %vm2968_vm3, %v11741_v61  ;;  %14080 = vmatmul.mubr.msk.f32.vlgmr.msra.gmra.mxu1 %vm2968_vm3, %v11742_v34 }
0x1bf4   :  { %14082 = vmatprep.subr.mxu0 %v17063_v17  ;;  %14089 = vmatprep.subr.mxu1 %v17063_v17 }
0x1bf5   :  { %14083 = vmatpush3.msra.mxu0 %v11023_v25  ;;  %14090 = vmatpush3.msra.mxu1 %v11024_v55 }
0x1bf6   :  { %14084 = vmatprep.subr.mxu0 %v17063_v17  ;;  %14091 = vmatprep.subr.mxu1 %v17063_v17 }
0x1bf7   :  { %14085 = vmatpush3.msra.mxu0 %v10955_v29  ;;  %14086 = vmatprep.mubr.msk.f32.mxu0 %vm14327_vm1, %v17063_v17 }
0x1bf8   :  { %14092 = vmatpush3.msra.mxu1 %v10956_v51  ;;  %14093 = vmatprep.mubr.msk.f32.mxu1 %vm14327_vm1, %v17063_v17 }
0x1bf9   :  { %14087 = vmatmul.mubr.msk.f32.vlgmr.msra.gmra.mxu0 %vm2968_vm3, %v11743_v40  ;;  %14094 = vmatmul.mubr.msk.f32.vlgmr.msra.gmra.mxu1 %vm2968_vm3, %v11744_v26 }
0x1c72   :  { %v11814_v11 = vpop.f32.mrf.mxu0 }
0x1c73   :  { %v11887_v38 = vpop.f32.mrf.mxu1 }
0x1c74   :  { %v14046_v25 = vpop.f32.mrf.mxu0 }
0x1c75   :  { %v14053_v55 = vpop.f32.mrf.mxu1 }
0x1c7e   :  { %v11960_v56 = vpop.f32.mrf.mxu0 }
0x1c7f   :  { %v12329_v53 = vcombine.low %v11814_v11, %v11960_v56  ;;  %v12330_v30 = vcombine.high %v11814_v11, %v11960_v56 }
0x1c80   :  { %v14060_v8 = vpop.f32.mrf.mxu0 }
0x1c81   :  { %v12337_v35 = vrot.slane %v12329_v53, %v14574_v13  ;;  %v12344_v17 = vrot.slane %v12330_v30, %v14574_v13 }
0x1c82   :  { %v12033_v33 = vpop.f32.mrf.mxu1 }
0x1c83   :  { %v12345_v49 = vcombine.low %v11887_v38, %v12033_v33  ;;  %v12346_v62 = vcombine.high %v11887_v38, %v12033_v33 }
0x1c84   :  { %v14067_v32 = vpop.f32.mrf.mxu1 }
0x1c85   :  { %v12353_v41 = vrot.slane %v12345_v49, %v14574_v13  ;;  %v12360_v47 = vrot.slane %v12346_v62, %v14574_v13 }
0x1c87   :  { %v12361_v0 = vcombine.low %v12337_v35, %v12353_v41  ;;  %v12362_v12 = vcombine.high %v12337_v35, %v12353_v41  ;;  %v12377_v1 = vcombine.low %v12344_v17, %v12360_v47  ;;  %v12378_v24 = vcombine.high %v12344_v17, %v12360_v47  ;;  %v13178_v17 = vld [vmem:[%s17051_s3 + $0xb8] sm:$0xff]  ;;  %v13177_v41 = vld [vmem:[%s17051_s3 + $0xb0] sm:$0xff] }
0x1c88   :  { %14096 = vmatprep.subr.mxu0 %v13178_v17 }
0x1c89   :  { %v12369_v3 = vrot.slane %v12361_v0, %v14581_v21  ;;  %v12376_v60 = vrot.slane %v12362_v12, %v14581_v21  ;;  %v12385_v18 = vrot.slane %v12377_v1, %v14581_v21  ;;  %v12392_v22 = vrot.slane %v12378_v24, %v14581_v21  ;;  %14097 = vmatpush3.msra.mxu0 %v13178_v17 }
0x1c8a   :  { %14098 = vmatprep.subr.mxu0 %v13177_v41 }
0x1c8b   :  { %v12465_v43 = vcombine.low %v12369_v3, %v12376_v60  ;;  %v13281_v52 = vcombine.high %v12369_v3, %v12376_v60  ;;  %v12481_v31 = vcombine.low %v12385_v18, %v12392_v22  ;;  %v13282_v19 = vcombine.high %v12385_v18, %v12392_v22  ;;  %14099 = vmatpush3.msra.mxu0 %v13177_v41  ;;  %v13176_v22 = vld [vmem:[%s17051_s3 + $0xa8] sm:$0xff] }
0x1c8c   :  { %14100 = vmatprep.subr.mxu0 %v13176_v22 }
0x1c8d   :  { %v12472_v58 = vrot.slane %v12465_v43, %v14574_v13  ;;  %v12480_v6 = vrot.slane %v13281_v52, %v14574_v13  ;;  %v12488_v42 = vrot.slane %v12481_v31, %v14574_v13  ;;  %v12496_v50 = vrot.slane %v13282_v19, %v14574_v13  ;;  %v13175_v43 = vld [vmem:[%s17051_s3 + $0xa0] sm:$0xff]  ;;  %14101 = vmatpush3.msra.mxu0 %v13176_v22 }
0x1c8e   :  { %14102 = vmatprep.subr.mxu0 %v13175_v43  ;;  %v13298_v22 = vld [vmem:[%s17053_s6 + $0x60] sm:$0xff] }
0x1c8f   :  { %v12497_v57 = vcombine.low %v12472_v58, %v12480_v6  ;;  %v12513_v20 = vcombine.low %v12488_v42, %v12496_v50  ;;  %v12498_v28 = vcombine.high %v12472_v58, %v12480_v6  ;;  %v12514_v10 = vcombine.high %v12488_v42, %v12496_v50  ;;  %14103 = vmatpush3.msra.mxu0 %v13175_v43 }
0x1c91   :  { %v16900_v37 = vrot.slane %v12497_v57, %v14581_v21  ;;  %v16903_v36 = vrot.slane %v12513_v20, %v14581_v21  ;;  %v12512_v15 = vrot.slane %v12498_v28, %v14581_v21  ;;  %v12528_v39 = vrot.slane %v12514_v10, %v14581_v21 }
0x1c93   :  { %v12530_v2 = vcombine.high %v16900_v37, %v16903_v36  ;;  %v12529_v5 = vcombine.low %v16900_v37, %v16903_v36  ;;  %v12531_v44 = vcombine.low %v12512_v15, %v12528_v39  ;;  %v12532_v29 = vcombine.high %v12512_v15, %v12528_v39  ;;  %v14318_v37 = vld [vmem:[%s17049_s7 + $0x10] sm:$0xff] }
0x1c94   :  { %v12634_v36 = vrot.slane %v14318_v37, %v6271_v14 }
0x1c95   :  { %12603 = vrot.lane.b32.xlu0 %v12530_v2, %s14330_s16 }
0x1c99   :  { %12611 = vrot.lane.b32.xlu0 %v12531_v44, %s14331_s17 }
0x1c9d   :  { %12619 = vrot.lane.b32.xlu0 %v12532_v29, %s14332_s18 }
0x1cb3   :  { %v12106_v51 = vpop.f32.mrf.mxu0  ;;  %v12179_v61 = vpop.f32.mrf.mxu1 }
0x1cb5   :  { %v14074_v34 = vpop.f32.mrf.mxu0  ;;  %v14081_v46 = vpop.f32.mrf.mxu1 }
0x1cb9   :  { %v12252_v9 = vpop.f32.mrf.mxu0  ;;  %v12325_v40 = vpop.f32.mrf.mxu1 }
0x1cba   :  { %v12397_v26 = vcombine.low %v12106_v51, %v12252_v9  ;;  %v12398_v11 = vcombine.high %v12106_v51, %v12252_v9  ;;  %v12413_v38 = vcombine.low %v12179_v61, %v12325_v40  ;;  %v12414_v25 = vcombine.high %v12179_v61, %v12325_v40 }
0x1cbb   :  { %v14088_v55 = vpop.f32.mrf.mxu0  ;;  %v14095_v56 = vpop.f32.mrf.mxu1 }
0x1cbc   :  { %v12405_v8 = vrot.slane %v12397_v26, %v14574_v13  ;;  %v12412_v53 = vrot.slane %v12398_v11, %v14574_v13  ;;  %v12421_v30 = vrot.slane %v12413_v38, %v14574_v13  ;;  %v12428_v33 = vrot.slane %v12414_v25, %v14574_v13 }
0x1cbe   :  { %v12429_v49 = vcombine.low %v12405_v8, %v12421_v30  ;;  %v12430_v62 = vcombine.high %v12405_v8, %v12421_v30  ;;  %v12445_v32 = vcombine.low %v12412_v53, %v12428_v33  ;;  %v12446_v35 = vcombine.high %v12412_v53, %v12428_v33 }
0x1cc0   :  { %v12437_v47 = vrot.slane %v12429_v49, %v14581_v21  ;;  %v12444_v0 = vrot.slane %v12430_v62, %v14581_v21  ;;  %v12453_v12 = vrot.slane %v12445_v32, %v14581_v21  ;;  %v12460_v1 = vrot.slane %v12446_v35, %v14581_v21 }
0x1cc2   :  { %v12533_v24 = vcombine.low %v12437_v47, %v12444_v0  ;;  %v13283_v3 = vcombine.high %v12437_v47, %v12444_v0  ;;  %v12549_v60 = vcombine.low %v12453_v12, %v12460_v1  ;;  %v13284_v18 = vcombine.high %v12453_v12, %v12460_v1  ;;  %v13289_v12 = vld [vmem:[%s17052_s5 + $0x30] sm:$0xff]  ;;  %v13288_v1 = vld [vmem:[%s17052_s5 + $0x28] sm:$0xff] }
0x1cc4   :  { %v12540_v52 = vrot.slane %v12533_v24, %v14574_v13  ;;  %v12548_v31 = vrot.slane %v13283_v3, %v14574_v13  ;;  %v12556_v19 = vrot.slane %v12549_v60, %v14574_v13  ;;  %v12564_v58 = vrot.slane %v13284_v18, %v14574_v13  ;;  %v13287_v24 = vld [vmem:[%s17052_s5 + $0x20] sm:$0xff]  ;;  %v13301_v3 = vld [vmem:[%s17053_s6 + $0x78] sm:$0xff]  ;;  %v13300_v60 = vld [vmem:[%s17053_s6 + $0x70] sm:$0xff] }
0x1cc5   :  { %14118 = vmatprep.subr.mxu0 %v13301_v3  ;;  %v13299_v18 = vld [vmem:[%s17053_s6 + $0x68] sm:$0xff] }
0x1cc6   :  { %v12565_v6 = vcombine.low %v12540_v52, %v12548_v31  ;;  %v12581_v42 = vcombine.low %v12556_v19, %v12564_v58  ;;  %v12566_v50 = vcombine.high %v12540_v52, %v12548_v31  ;;  %v12582_v57 = vcombine.high %v12556_v19, %v12564_v58 }
0x1cc8   :  { %v12573_v20 = vrot.slane %v12565_v6, %v14581_v21  ;;  %v12589_v28 = vrot.slane %v12581_v42, %v14581_v21  ;;  %v12580_v2 = vrot.slane %v12566_v50, %v14581_v21  ;;  %v12596_v15 = vrot.slane %v12582_v57, %v14581_v21  ;;  %v16994_v42 = vld [vmem:[%s17049_s7 + $0x18] sm:$0xff] }
0x1cc9   :  { %v12747_v50 = vrot.slane %v16994_v42, %v14552_v59  ;;  %v13296_v59 = vld [vmem:[%s17053_s6 + $0x50] sm:$0xff] }
0x1cca   :  { %v12598_v10 = vcombine.high %v12573_v20, %v12589_v28  ;;  %v12597_v39 = vcombine.low %v12573_v20, %v12589_v28  ;;  %v12599_v13 = vcombine.low %v12580_v2, %v12596_v15  ;;  %v12600_v44 = vcombine.high %v12580_v2, %v12596_v15 }
0x1ccb   :  { %v12753_v28 = vrot.slane %v16994_v42, %v14947_v63  ;;  %v13295_v63 = vld [vmem:[%s17053_s6 + $0x48] sm:$0xff] }
0x1ccc   :  { %12605 = vrot.lane.b32.xlu1 %v12598_v10, %s14330_s16 }
0x1cd0   :  { %12613 = vrot.lane.b32.xlu1 %v12599_v13, %s14331_s17 }
0x1cd4   :  { %12621 = vrot.lane.b32.xlu1 %v12600_v44, %s14332_s18 }
0x1d07   :  { %v12604_v29 = vpop.permute.xlu0 %12603 }
0x1d08   :  { %v12625_v61 = vsel %vm1389_vm2, %v12529_v5, %v12604_v29  ;;  %v13297_v29 = vld [vmem:[%s17053_s6 + $0x58] sm:$0xff] }
0x1d0b   :  { %v12612_v51 = vpop.permute.xlu0 %12611 }
0x1d0c   :  { %v12627_v34 = vsel %vm2968_vm3, %v12625_v61, %v12612_v51  ;;  %v13294_v51 = vld [vmem:[%s17053_s6 + $0x40] sm:$0xff] }
0x1d0d   :  { %v13291_v61 = vld [vmem:[%s17054_s8 + $0x1] ss:$0 sm:$0xff] }
0x1d0f   :  { %v12620_v46 = vpop.permute.xlu0 %12619 }
0x1d10   :  { %v12629_v21 = vsel %vm2971_vm4, %v12627_v34, %v12620_v46 }
0x1d11   :  { %14104 = vmatprep.mubr.msk.f32.mxu0 %vm51_vm0, %v12629_v21 }
0x1d3e   :  { %v12606_v9 = vpop.permute.xlu1 %12605 }
0x1d3f   :  { %v12626_v26 = vsel %vm1389_vm2, %v12597_v39, %v12606_v9 }
0x1d42   :  { %v12614_v40 = vpop.permute.xlu1 %12613 }
0x1d43   :  { %v12628_v11 = vsel %vm2968_vm3, %v12626_v26, %v12614_v40 }
0x1d46   :  { %v12622_v38 = vpop.permute.xlu1 %12621 }
0x1d47   :  { %v12630_v25 = vsel %vm2971_vm4, %v12628_v11, %v12622_v38  ;;  %v12862_v11 = vrot.slane %v16994_v42, %v15115_v16 }
0x1d48   :  { %14105 = vmatmul.mubr.msk.f32.vlgmr.msra.gmra.mxu0 %vm51_vm0, %v12630_v25 }
0x1d49   :  { %14119 = vmatpush3.msra.mxu0 %v13301_v3  ;;  %v12981_v3 = vrot.slane %v16994_v42, %v14965_v23 }
0x1d4a   :  { %14120 = vmatprep.subr.mxu0 %v13300_v60 }
0x1d4b   :  { %14121 = vmatpush3.msra.mxu0 %v13300_v60 }
0x1d4c   :  { %14122 = vmatprep.subr.mxu0 %v13299_v18 }
0x1d4d   :  { %14123 = vmatpush3.msra.mxu0 %v13299_v18 }
0x1d4e   :  { %14124 = vmatprep.subr.mxu0 %v13298_v22 }
0x1d4f   :  { %14125 = vmatpush3.msra.mxu0 %v13298_v22 }
0x1d50   :  { %14126 = vmatprep.subr.mxu0 %v13297_v29 }
0x1d51   :  { %14127 = vmatpush3.msra.mxu0 %v13297_v29 }
0x1d52   :  { %14128 = vmatprep.subr.mxu0 %v13296_v59 }
0x1d53   :  { %14129 = vmatpush3.msra.mxu0 %v13296_v59 }
0x1d54   :  { %14130 = vmatprep.subr.mxu0 %v13295_v63 }
0x1d55   :  { %14131 = vmatpush3.msra.mxu0 %v13295_v63  ;;  %v12984_v63 = vld [vmem:[%s17055_s9] sm:$0x3] }
0x1d56   :  { %14132 = vmatprep.subr.mxu0 %v13294_v51 }
0x1d57   :  { %14133 = vmatpush3.msra.mxu0 %v13294_v51  ;;  %v13014_v51 = vrot.slane %v12984_v63, %v14524_v48 }
0x1e08   :  { %v14106_v5 = vpop.f32.mrf.mxu0 }
0x1e09   :  { %v12713_v55 = vadd.f32 %v14106_v5, %v12634_v36 }
0x1e0a   :  { %v12707_v56 = vpop.f32.mrf.mxu0 }
0x1e0b   :  { %v12717_v8 = vadd.f32 %v12713_v55, %v16299_v54  ;;  %v12708_v53 = vadd.f32 %v12707_v56, %v12634_v36 }
0x1e0d   :  { %v12716_v30 = vadd.f32 %v12708_v53, %v16292_v27  ;;  %v12721_v33 = vsel %vm51_vm0, %v12717_v8, 0.0  ;;  %v13290_v27 = vld [vmem:[%s17052_s5 + $0x38] sm:$0xff] }
0x1e0e   :  { %12722 = vadd.xlane.f32.xlu1 %v12721_v33  ;;  %14107 = vmatprep.subr.mxu1 %v13290_v27 }
0x1e0f   :  { %v12718_v49 = vsel %vm51_vm0, %v12716_v30, 0.0  ;;  %14108 = vmatpush3.msra.mxu1 %v13290_v27 }
0x1e10   :  { %12719 = vadd.xlane.f32.xlu0 %v12718_v49  ;;  %14109 = vmatprep.subr.mxu1 %v13289_v12 }
0x1e11   :  { %14110 = vmatpush3.msra.mxu1 %v13289_v12  ;;  %v12975_v12 = vrot.slane %v16994_v42, %v15097_v45 }
0x1e12   :  { %14111 = vmatprep.subr.mxu1 %v13288_v1 }
0x1e13   :  { %14112 = vmatpush3.msra.mxu1 %v13288_v1 }
0x1e14   :  { %14113 = vmatprep.subr.mxu1 %v13287_v24 }
0x1e15   :  { %14114 = vmatpush3.msra.mxu1 %v13287_v24 }
0x1e97   :  { %v12723_v62 = vpop.xlane.xlu1 %12722 }
0x1e98   :  { %v12725_v32 = vmul.f32 0.03125, %v12723_v62 }
0x1e99   :  { %v12720_v35 = vpop.xlane.xlu0 %12719 }
0x1e9a   :  { %v12724_v17 = vmul.f32 0.03125, %v12720_v35  ;;  %v12727_v4 = vsub.f32 %v12717_v8, %v12725_v32 }
0x1e9c   :  { %v12726_v14 = vsub.f32 %v12716_v30, %v12724_v17  ;;  %v12729_v0 = vmul.f32 %v12727_v4, %v12727_v4 }
0x1e9e   :  { %v12728_v41 = vmul.f32 %v12726_v14, %v12726_v14  ;;  %v12733_v54 = vsel %vm51_vm0, %v12729_v0, 0.0 }
0x1ea0   :  { %v12730_v47 = vsel %vm51_vm0, %v12728_v41, 0.0 }
0x1ea1   :  { %12731 = vadd.xlane.f32.xlu0 %v12730_v47 }
0x1ea5   :  { %12734 = vadd.xlane.f32.xlu0 %v12733_v54 }
0x1f2a   :  { %v12732_v43 = vpop.xlane.xlu0 %12731 }
0x1f2b   :  { %v12736_v52 = vmul.f32 0.03125, %v12732_v43 }
0x1f2d   :  { %v12738_v31 = vadd.f32 1e-05, %v12736_v52 }
0x1f2e   :  { %v12735_v19 = vpop.xlane.xlu0 %12734 }
0x1f2f   :  { %14294 = vrsqrt.f32 %v12738_v31  ;;  %v12737_v58 = vmul.f32 0.03125, %v12735_v19 }
0x1f31   :  { %v12739_v6 = vadd.f32 1e-05, %v12737_v58 }
0x1f33   :  { %14296 = vrsqrt.f32 %v12739_v6 }
0x1f3c   :  { %v14295_v57 = vpop.eup %14294 }
0x1f3d   :  { %v12742_v20 = vmul.f32 %v14295_v57, %v12726_v14 }
0x1f3f   :  { %v12748_v10 = vmul.f32 %v12747_v50, %v12742_v20 }
0x1f40   :  { %v14297_v2 = vpop.eup %14296 }
0x1f41   :  { %v12743_v15 = vmul.f32 %v14297_v2, %v12727_v4  ;;  %v12754_v39 = vadd.f32 %v12753_v28, %v12748_v10 }
0x1f43   :  { %v12749_v13 = vmul.f32 %v12747_v50, %v12743_v15  ;;  %14115 = vmatprep.mubr.msk.f32.mxu1 %vm51_vm0, %v12754_v39 }
0x1f45   :  { %v12755_v44 = vadd.f32 %v12753_v28, %v12749_v13 }
0x1f47   :  { %14116 = vmatmul.mubr.msk.f32.vlgmr.msra.gmra.mxu1 %vm51_vm0, %v12755_v44 }
0x2007   :  { %v14117_v34 = vpop.f32.mrf.mxu1 }
0x2008   :  { %v12845_v46 = vadd.f32 %v14117_v34, %v13291_v61  ;;  %v13020_v34 = vrot.slane %v12984_v63, %v14407_v7 }
0x2009   :  { %v12839_v21 = vpop.f32.mrf.mxu1 }
0x200a   :  { %v12840_v9 = vadd.f32 %v13291_v61, %v12839_v21  ;;  %v12849_v26 = vmax.f32 %v12845_v46, 0.0 }
0x200c   :  { %v12848_v40 = vmax.f32 %v12840_v9, 0.0 }
0x200e   :  { %14134 = vmatprep.mubr.msk.f32.mxu0 %vm6499_vm5, %v12848_v40 }
0x200f   :  { %14135 = vmatmul.mubr.msk.f32.vlgmr.msra.gmra.mxu0 %vm6499_vm5, %v12849_v26 }
0x20cf   :  { %v14136_v38 = vpop.f32.mrf.mxu0 }
0x20d0   :  { %v12941_v25 = vadd.f32 %v14136_v38, %v12862_v11 }
0x20d1   :  { %v12935_v37 = vpop.f32.mrf.mxu0 }
0x20d2   :  { %v12945_v36 = vadd.f32 %v12941_v25, %v12755_v44  ;;  %v12936_v5 = vadd.f32 %v12935_v37, %v12862_v11 }
0x20d4   :  { %v12944_v55 = vadd.f32 %v12936_v5, %v12754_v39  ;;  %v12949_v56 = vsel %vm51_vm0, %v12945_v36, 0.0 }
0x20d5   :  { %12950 = vadd.xlane.f32.xlu0 %v12949_v56 }
0x20d6   :  { %v12946_v8 = vsel %vm51_vm0, %v12944_v55, 0.0 }
0x20d7   :  { %12947 = vadd.xlane.f32.xlu1 %v12946_v8 }
0x215e   :  { %v12951_v53 = vpop.xlane.xlu0 %12950 }
0x215f   :  { %v12953_v30 = vmul.f32 0.03125, %v12951_v53 }
0x2160   :  { %v12948_v33 = vpop.xlane.xlu1 %12947 }
0x2161   :  { %v12955_v49 = vsub.f32 %v12945_v36, %v12953_v30  ;;  %v12952_v62 = vmul.f32 0.03125, %v12948_v33 }
0x2163   :  { %v12954_v32 = vsub.f32 %v12944_v55, %v12952_v62  ;;  %v12957_v35 = vmul.f32 %v12955_v49, %v12955_v49 }
0x2165   :  { %v12961_v16 = vsel %vm51_vm0, %v12957_v35, 0.0  ;;  %v12956_v17 = vmul.f32 %v12954_v32, %v12954_v32 }
0x2166   :  { %12962 = vadd.xlane.f32.xlu0 %v12961_v16 }
0x2167   :  { %v12958_v4 = vsel %vm51_vm0, %v12956_v17, 0.0 }
0x2168   :  { %12959 = vadd.xlane.f32.xlu1 %v12958_v4 }
0x21ef   :  { %v12963_v14 = vpop.xlane.xlu0 %12962 }
0x21f0   :  { %v12965_v41 = vmul.f32 0.03125, %v12963_v14 }
0x21f1   :  { %v12960_v47 = vpop.xlane.xlu1 %12959 }
0x21f2   :  { %v12967_v0 = vadd.f32 1e-05, %v12965_v41  ;;  %v12964_v54 = vmul.f32 0.03125, %v12960_v47 }
0x21f4   :  { %14298 = vrsqrt.f32 %v12967_v0  ;;  %v12966_v27 = vadd.f32 1e-05, %v12964_v54 }
0x21f6   :  { %14300 = vrsqrt.f32 %v12966_v27 }
0x2201   :  { %v14299_v1 = vpop.eup %14298 }
0x2202   :  { %v12971_v24 = vmul.f32 %v14299_v1, %v12955_v49 }
0x2203   :  { %v14301_v60 = vpop.eup %14300 }
0x2204   :  { %v12977_v18 = vmul.f32 %v12975_v12, %v12971_v24  ;;  %v12970_v22 = vmul.f32 %v14301_v60, %v12954_v32 }
0x2206   :  { %v12983_v43 = vadd.f32 %v12981_v3, %v12977_v18  ;;  %v12976_v52 = vmul.f32 %v12975_v12, %v12970_v22 }
0x2208   :  { %v12988_v31 = vsel %vm51_vm0, %v12983_v43, 0.0  ;;  %v12982_v19 = vadd.f32 %v12981_v3, %v12976_v52 }
0x2209   :  { %12989 = vadd.xlane.f32.xlu0 %v12988_v31 }
0x220a   :  { %v12985_v58 = vsel %vm51_vm0, %v12982_v19, 0.0 }
0x220b   :  { %12986 = vadd.xlane.f32.xlu1 %v12985_v58 }
0x2292   :  { %v12990_v6 = vpop.xlane.xlu0 %12989 }
0x2293   :  { %v12992_v50 = vmul.f32 0.03125, %v12990_v6 }
0x2294   :  { %v12987_v45 = vpop.xlane.xlu1 %12986 }
0x2295   :  { %v12994_v57 = vsub.f32 %v12983_v43, %v12992_v50  ;;  %v12991_v20 = vmul.f32 0.03125, %v12987_v45 }
0x2297   :  { %v12993_v28 = vsub.f32 %v12982_v19, %v12991_v20  ;;  %v12996_v10 = vmul.f32 %v12994_v57, %v12994_v57 }
0x2299   :  { %v13000_v23 = vsel %vm51_vm0, %v12996_v10, 0.0  ;;  %v12995_v42 = vmul.f32 %v12993_v28, %v12993_v28 }
0x229a   :  { %13001 = vadd.xlane.f32.xlu0 %v13000_v23 }
0x229b   :  { %v12997_v2 = vsel %vm51_vm0, %v12995_v42, 0.0 }
0x229c   :  { %12998 = vadd.xlane.f32.xlu1 %v12997_v2 }
0x2323   :  { %v13002_v15 = vpop.xlane.xlu0 %13001 }
0x2324   :  { %v13004_v39 = vmul.f32 0.03125, %v13002_v15 }
0x2325   :  { %v12999_v13 = vpop.xlane.xlu1 %12998 }
0x2326   :  { %v13006_v44 = vadd.f32 1e-05, %v13004_v39  ;;  %v13003_v29 = vmul.f32 0.03125, %v12999_v13 }
0x2328   :  { %14302 = vrsqrt.f32 %v13006_v44  ;;  %v13005_v59 = vadd.f32 1e-05, %v13003_v29 }
0x232a   :  { %14304 = vrsqrt.f32 %v13005_v59 }
0x2335   :  { %v14303_v61 = vpop.eup %14302 }
0x2336   :  { %v13010_v46 = vmul.f32 %v14303_v61, %v12994_v57 }
0x2337   :  { %v14305_v21 = vpop.eup %14304 }
0x2338   :  { %v13016_v9 = vmul.f32 %v13014_v51, %v13010_v46  ;;  %v13009_v40 = vmul.f32 %v14305_v21, %v12993_v28 }
0x233a   :  { %v13022_v26 = vadd.f32 %v13020_v34, %v13016_v9  ;;  %v13015_v11 = vmul.f32 %v13014_v51, %v13009_v40 }
0x233c   :  { %13024 = vst.msk [vmem:[%s17056_s10 + $0x8] sm:$0xff] %vm51_vm0, %v13022_v26  ;;  %v13021_v38 = vadd.f32 %v13020_v34, %v13015_v11 }
0x233e   :  { %13023 = vst.msk [vmem:[%s17056_s10] sm:$0xff] %vm51_vm0, %v13021_v38 }

</bundles_post_ra>
